<compile_context>
chip_gen: v6e
topology: v6e:2x2x1
jax: 0.10.0
libtpu: 0.0.40
codegen_flags: <defaults>
</compile_context>

<pallas_src>
import numpy as np
import jax
import jax.numpy as jnp
from jax import lax
from jax.experimental import pallas as pl
from jax.experimental.pallas import tpu as pltpu


# ----------------------------- Pallas kernel ---------------------------------

def bottleneck_kernel(xc_ref, xh_ref, w1_ref, b1_ref, w2_ref, b2_ref,
                      w3_ref, b3_ref, ws_ref, bs_ref, o_ref, y_ref, acc_ref):
    # xc_ref : (TH, WpA, CinP)  bf16   center rows of this H-tile (W zero-padded)
    # xh_ref : (2,  WpA, CinP)  bf16   halo rows (above / below the tile)
    # y_ref  : (TH+2, WpA, CmP) bf16   VMEM scratch: conv1 output incl. halo & W-pad
    # acc_ref: (TH*W, CmP)      f32    VMEM scratch: conv2 accumulator
    th, wout, cop = o_ref.shape
    wpa = y_ref.shape[1]
    cmp_ = y_ref.shape[2]
    cinp = xc_ref.shape[-1]
    bh = pl.program_id(1)
    nbh = pl.num_programs(1)

    # ---- conv1 (1x1; mask1 and bn1 scale folded into the weight) + bias + ReLU ----
    xc = xc_ref[...]                                               # (th, wpa, cinp)
    y_c = jnp.dot(xc.reshape(th * wpa, cinp), w1_ref[...],
                  preferred_element_type=jnp.float32)
    y_c = jnp.maximum(y_c + b1_ref[...], 0.0).astype(jnp.bfloat16)
    y_ref[1:th + 1, :, :] = y_c.reshape(th, wpa, cmp_)

    xh = xh_ref[...]                                               # (2, wpa, cinp)
    y_h = jnp.dot(xh.reshape(2 * wpa, cinp), w1_ref[...],
                  preferred_element_type=jnp.float32)
    y_h = jnp.maximum(y_h + b1_ref[...], 0.0).astype(jnp.bfloat16)
    y_h = y_h.reshape(2, wpa, cmp_)
    y_ref[0:1, :, :] = y_h[0:1]
    y_ref[th + 1:th + 2, :, :] = y_h[1:2]

    # conv2's spatial padding must be zeros of the conv1 *output* -> zero only the
    # 1-wide border (two W columns always, the halo row at the image top/bottom).
    y_ref[:, 0:1, :] = jnp.zeros((th + 2, 1, cmp_), jnp.bfloat16)
    y_ref[:, wout + 1:wout + 2, :] = jnp.zeros((th + 2, 1, cmp_), jnp.bfloat16)

    @pl.when(bh == 0)
    def _():
        y_ref[0:1, :, :] = jnp.zeros((1, wpa, cmp_), jnp.bfloat16)

    @pl.when(bh == nbh - 1)
    def _():
        y_ref[th + 1:th + 2, :, :] = jnp.zeros((1, wpa, cmp_), jnp.bfloat16)

    # ---- conv2 (3x3, stride 1; bn2 scale folded): 9 taps into an f32 VMEM accumulator ----
    acc_ref[...] = jnp.broadcast_to(b2_ref[...], acc_ref.shape)    # start from the bias
    for k in range(9):
        dy, dx = k // 3, k % 3
        patch = y_ref[dy:dy + th, dx:dx + wout, :]                 # (th, wout, cmp) bf16
        acc_ref[...] += jnp.dot(patch.reshape(th * wout, cmp_), w2_ref[k],
                                preferred_element_type=jnp.float32)
    z = jnp.maximum(acc_ref[...], 0.0).astype(jnp.bfloat16)        # ReLU, bf16 for the MXU

    # ---- conv3 (1x1; bn3 scale folded) + (projection or identity) shortcut + ReLU ----
    out = jnp.dot(z, w3_ref[...], preferred_element_type=jnp.float32) + b3_ref[...]
    xs = xc[:, 1:wout + 1, :].reshape(th * wout, cinp)             # shortcut input (interior)
    out = out + jnp.dot(xs, ws_ref[...],
                        preferred_element_type=jnp.float32) + bs_ref[...]
    o_ref[...] = jnp.maximum(out, 0.0).reshape(th, wout, cop)


# ------------------------------ host-side glue --------------------------------

def kse_indicator(weight_oihw):
    """Reproduces KSE() from the reference (NumPy, on the conv weight)."""
    w = np.asarray(weight_oihw, dtype=np.float32)
    cout, cin = w.shape[0], w.shape[1]
    w = np.transpose(w, (1, 0, 2, 3)).reshape(cin, cout, -1)
    ks = np.sum(np.linalg.norm(w, ord=1, axis=2), 1)
    ks = (ks - np.min(ks)) / (np.max(ks) - np.min(ks))
    ind = np.sqrt(ks)
    ind = (ind - np.min(ind)) / (np.max(ind) - np.min(ind))
    idx = np.argsort(ind)
    thre = ind[idx[int(idx.shape[0] * 0.2)]]
    return ind, thre


def effective_mask(mask_param, conv_weight):
    """Mask.forward with 0 < epoch_g < 17: channels with indicator > threshold are
    forced to 1 (in-place Parameter override).  The original indexes the mask by the
    KSE channel index; it only runs when that index stays in range."""
    ind, thre = kse_indicator(conv_weight)
    mask = np.asarray(mask_param, dtype=np.float32).copy()
    n = min(ind.shape[0], mask.shape[0])
    mask[:n] = np.where(ind[:n] > thre, np.float32(1.0), mask[:n])
    return mask


def fold_bn(gamma, beta, mean, var, eps=1e-5):
    gamma = np.asarray(gamma, np.float32)
    beta = np.asarray(beta, np.float32)
    mean = np.asarray(mean, np.float32)
    var = np.asarray(var, np.float32)
    s = gamma / np.sqrt(var + eps)
    return s, beta - mean * s


def _round_up(v, m):
    return ((v + m - 1) // m) * m


def _pad_to(a, shape):
    out = np.zeros(shape, np.float32)
    out[tuple(slice(0, s) for s in a.shape)] = np.asarray(a, np.float32)
    return out


def bottleneck_forward(x_nchw, p, *, tile_h=8):
    N, Cin, H, W = x_nchw.shape
    planes = p["conv1_w"].shape[0]
    Co = 4 * planes                                 # Bottleneck.expansion = 4
    assert p["stride"] == 1, "TODO(synk): stride != 1 path not implemented"
    assert p["conv1_w"].shape[1] == Cin
    assert H % tile_h == 0
    TH, HT = tile_h, H // tile_h

    CinP = _round_up(Cin, 128)
    CmP = _round_up(planes, 128)
    CoP = _round_up(Co, 128)
    WpA = _round_up(W + 2, 8)                       # W-padded width, sublane aligned

    # ---- fold BN scales (inference) and the KSE-overridden mask into the weights ----
    s1, t1 = fold_bn(p["bn1_gamma"], p["bn1_beta"], p["bn1_mean"], p["bn1_var"])
    s2, t2 = fold_bn(p["bn2_gamma"], p["bn2_beta"], p["bn2_mean"], p["bn2_var"])
    s3, t3 = fold_bn(p["bn3_gamma"], p["bn3_beta"], p["bn3_mean"], p["bn3_var"])
    m1 = np.asarray(p["mask1_eff"], np.float32)

    w1 = np.asarray(p["conv1_w"], np.float32)[:, :, 0, 0].T * (m1 * s1)[None, :]
    w2 = np.transpose(np.asarray(p["conv2_w"], np.float32), (2, 3, 1, 0)).reshape(9, planes, planes)
    w2 = w2 * s2[None, None, :]
    w3 = np.asarray(p["conv3_w"], np.float32)[:, :, 0, 0].T * s3[None, :]

    if "sc_w" in p:                                 # projection shortcut: 1x1 conv + BN, folded
        ss, ts = fold_bn(p["bnsc_gamma"], p["bnsc_beta"], p["bnsc_mean"], p["bnsc_var"])
        ws = np.asarray(p["sc_w"], np.float32)[:, :, 0, 0].T * ss[None, :]
        bs = ts
    else:                                           # identity shortcut == identity matmul (exact)
        assert Cin == Co
        ws = np.eye(Cin, dtype=np.float32)
        bs = np.zeros((Co,), np.float32)

    w1p = jnp.asarray(_pad_to(w1, (CinP, CmP)), jnp.bfloat16)
    w2p = jnp.asarray(_pad_to(w2, (9, CmP, CmP)), jnp.bfloat16)
    w3p = jnp.asarray(_pad_to(w3, (CmP, CoP)), jnp.bfloat16)
    wsp = jnp.asarray(_pad_to(ws, (CinP, CoP)), jnp.bfloat16)
    b1p = jnp.asarray(_pad_to(t1[None, :], (1, CmP)), jnp.float32)
    b2p = jnp.asarray(_pad_to(t2[None, :], (1, CmP)), jnp.float32)
    b3p = jnp.asarray(_pad_to(t3[None, :], (1, CoP)), jnp.float32)
    bsp = jnp.asarray(_pad_to(bs[None, :], (1, CoP)), jnp.float32)

    # ---- activations: NHWC, W zero-padded, channels padded to 128 lanes, bf16 ----
    x = jnp.transpose(x_nchw, (0, 2, 3, 1)).astype(jnp.float32)
    x = jnp.pad(x, ((0, 0), (0, 0), (1, WpA - 1 - W), (0, CinP - Cin)))
    xc = x.astype(jnp.bfloat16)                                     # (N, H, WpA, CinP)
    xhp = jnp.pad(xc, ((0, 0), (1, 1), (0, 0), (0, 0)))             # zero row above/below image
    top = jnp.arange(HT) * TH
    xh = jnp.stack([xhp[:, top], xhp[:, top + TH + 1]], axis=2)     # (N, HT, 2, WpA, CinP)

    flops = 2 * N * H * W * (CinP * CmP + 9 * CmP * CmP + CmP * CoP + CinP * CoP)
    bytes_accessed = int(xc.size * 2 + xh.size * 2 + N * H * W * CoP * 4
                         + (w1p.size + w2p.size + w3p.size + wsp.size) * 2
                         + (b1p.size + b2p.size + b3p.size + bsp.size) * 4)

    out = pl.pallas_call(
        bottleneck_kernel,
        out_shape=jax.ShapeDtypeStruct((N, H, W, CoP), jnp.float32),
        grid=(N, HT),
        in_specs=[
            pl.BlockSpec((None, TH, WpA, CinP), lambda n, h: (n, h, 0, 0)),
            pl.BlockSpec((None, None, 2, WpA, CinP), lambda n, h: (n, h, 0, 0, 0)),
            pl.BlockSpec((CinP, CmP), lambda n, h: (0, 0)),
            pl.BlockSpec((1, CmP), lambda n, h: (0, 0)),
            pl.BlockSpec((9, CmP, CmP), lambda n, h: (0, 0, 0)),
            pl.BlockSpec((1, CmP), lambda n, h: (0, 0)),
            pl.BlockSpec((CmP, CoP), lambda n, h: (0, 0)),
            pl.BlockSpec((1, CoP), lambda n, h: (0, 0)),
            pl.BlockSpec((CinP, CoP), lambda n, h: (0, 0)),
            pl.BlockSpec((1, CoP), lambda n, h: (0, 0)),
        ],
        out_specs=pl.BlockSpec((None, TH, W, CoP), lambda n, h: (n, h, 0, 0)),
        scratch_shapes=[
            pltpu.VMEM((TH + 2, WpA, CmP), jnp.bfloat16),   # conv1 output (incl. halo / pad)
            pltpu.VMEM((TH * W, CmP), jnp.float32),         # conv2 accumulator
        ],
        compiler_params=pltpu.CompilerParams(
            dimension_semantics=("parallel", "parallel"),
            vmem_limit_bytes=32 * 1024 * 1024),
        cost_estimate=pl.CostEstimate(flops=flops, transcendentals=0,
                                      bytes_accessed=bytes_accessed),
    )(xc, xh, w1p, b1p, w2p, b2p, w3p, b3p, wsp, bsp)

    return jnp.transpose(out[..., :Co], (0, 3, 1, 2))               # back to NCHW


def bottleneck_reference(x, p):
    """Pure-JAX reference (NCHW, like the PyTorch module) for validation."""
    eps = 1e-5

    def conv(inp, w, stride=1, pad=0):
        return lax.conv_general_dilated(
            inp, jnp.asarray(w, jnp.float32), (stride, stride), ((pad, pad), (pad, pad)),
            dimension_numbers=("NCHW", "OIHW", "NCHW"),
            precision=lax.Precision.HIGHEST)

    def bn(z, g, b, m, v):
        c = lambda a: jnp.asarray(a, jnp.float32)[None, :, None, None]
        return (z - c(m)) / jnp.sqrt(c(v) + eps) * c(g) + c(b)

    out = conv(x, p["conv1_w"])
    out = out * jnp.asarray(p["mask1_eff"])[None, :, None, None]
    out = jnp.maximum(bn(out, p["bn1_gamma"], p["bn1_beta"], p["bn1_mean"], p["bn1_var"]), 0.0)
    out = conv(out, p["conv2_w"], stride=p["stride"], pad=1)
    out = jnp.maximum(bn(out, p["bn2_gamma"], p["bn2_beta"], p["bn2_mean"], p["bn2_var"]), 0.0)
    out = conv(out, p["conv3_w"])
    out = bn(out, p["bn3_gamma"], p["bn3_beta"], p["bn3_mean"], p["bn3_var"])
    if "sc_w" in p:
        sc = bn(conv(x, p["sc_w"], stride=p["stride"]),
                p["bnsc_gamma"], p["bnsc_beta"], p["bnsc_mean"], p["bnsc_var"])
    else:
        sc = x
    return jnp.maximum(out + sc, 0.0)


# ----------------------------------- main --------------------------------------

if __name__ == "__main__":
    key = jax.random.PRNGKey(0)
    ks = jax.random.split(key, 10)

    N, H, W = 2, 16, 16
    in_planes, planes, stride = 8, 8, 1      # typical first bottleneck: projection shortcut
    co = 4 * planes

    x = jax.random.normal(ks[0], (N, in_planes, H, W), jnp.float32)
    conv1_w = 0.1 * jax.random.normal(ks[1], (planes, in_planes, 1, 1), jnp.float32)
    conv2_w = 0.1 * jax.random.normal(ks[2], (planes, planes, 3, 3), jnp.float32)
    conv3_w = 0.1 * jax.random.normal(ks[3], (co, planes, 1, 1), jnp.float32)
    sc_w = 0.1 * jax.random.normal(ks[4], (co, in_planes, 1, 1), jnp.float32)
    mask1_w = jax.random.normal(ks[5], (planes,), jnp.float32)       # torch.randn(planes)

    def bn_params(k, c):
        kg, kb, km, kv = jax.random.split(k, 4)
        return (1.0 + 0.1 * jax.random.normal(kg, (c,), jnp.float32),
                0.1 * jax.random.normal(kb, (c,), jnp.float32),
                0.1 * jax.random.normal(km, (c,), jnp.float32),
                jnp.abs(1.0 + 0.1 * jax.random.normal(kv, (c,), jnp.float32)))

    bn1 = bn_params(ks[6], planes)
    bn2 = bn_params(ks[7], planes)
    bn3 = bn_params(ks[8], co)
    bnsc = bn_params(ks[9], co)

    params = dict(
        stride=stride,
        conv1_w=np.asarray(conv1_w), conv2_w=np.asarray(conv2_w), conv3_w=np.asarray(conv3_w),
        mask1_eff=effective_mask(np.asarray(mask1_w), np.asarray(conv1_w)),
        bn1_gamma=bn1[0], bn1_beta=bn1[1], bn1_mean=bn1[2], bn1_var=bn1[3],
        bn2_gamma=bn2[0], bn2_beta=bn2[1], bn2_mean=bn2[2], bn2_var=bn2[3],
        bn3_gamma=bn3[0], bn3_beta=bn3[1], bn3_mean=bn3[2], bn3_var=bn3[3],
        sc_w=np.asarray(sc_w),
        bnsc_gamma=bnsc[0], bnsc_beta=bnsc[1], bnsc_mean=bnsc[2], bnsc_var=bnsc[3],
    )

    out = jax.block_until_ready(bottleneck_forward(x, params, tile_h=8))
    ref = jax.block_until_ready(bottleneck_reference(x, params))

    # bf16 MXU inputs with f32 accumulation -> tolerance re-validated for the mixed path.
    np.testing.assert_allclose(np.asarray(out), np.asarray(ref), rtol=2e-2, atol=2e-2)

    print("KERNEL_OK")
</pallas_src>

<mosaic_0001>
module attributes {stable_mosaic.version = 11 : i64} {
  func.func @bottleneck_kernel(%arg0: i32, %arg1: i32, %arg2: memref<1x8x24x128xbf16, #tpu.memory_space<vmem>>, %arg3: memref<1x1x2x24x128xbf16, #tpu.memory_space<vmem>>, %arg4: memref<128x128xbf16, #tpu.memory_space<vmem>>, %arg5: memref<1x128xf32, #tpu.memory_space<vmem>>, %arg6: memref<9x128x128xbf16, #tpu.memory_space<vmem>>, %arg7: memref<1x128xf32, #tpu.memory_space<vmem>>, %arg8: memref<128x128xbf16, #tpu.memory_space<vmem>>, %arg9: memref<1x128xf32, #tpu.memory_space<vmem>>, %arg10: memref<128x128xbf16, #tpu.memory_space<vmem>>, %arg11: memref<1x128xf32, #tpu.memory_space<vmem>>, %arg12: memref<1x8x16x128xf32, #tpu.memory_space<vmem>>, %arg13: memref<10x24x128xbf16, #tpu.memory_space<vmem>>, %arg14: memref<128x128xf32, #tpu.memory_space<vmem>>) attributes {dimension_semantics = [#tpu.dimension_semantics<parallel>, #tpu.dimension_semantics<parallel>], iteration_bounds = array<i64: 2, 2>, scalar_prefetch = 0 : i64, scratch_operands = 2 : i64, tpu.core_type = #tpu.core_type<tc>, window_params = [{transform_indices = @transform_0, window_bounds = array<i64: 1, 8, 24, 128>}, {transform_indices = @transform_1, window_bounds = array<i64: 1, 1, 2, 24, 128>}, {pipeline_mode = #tpu.pipeline_mode<synchronous>, transform_indices = @transform_2, window_bounds = array<i64: 128, 128>}, {pipeline_mode = #tpu.pipeline_mode<synchronous>, transform_indices = @transform_3, window_bounds = array<i64: 1, 128>}, {pipeline_mode = #tpu.pipeline_mode<synchronous>, transform_indices = @transform_4, window_bounds = array<i64: 9, 128, 128>}, {pipeline_mode = #tpu.pipeline_mode<synchronous>, transform_indices = @transform_5, window_bounds = array<i64: 1, 128>}, {pipeline_mode = #tpu.pipeline_mode<synchronous>, transform_indices = @transform_6, window_bounds = array<i64: 128, 128>}, {pipeline_mode = #tpu.pipeline_mode<synchronous>, transform_indices = @transform_7, window_bounds = array<i64: 1, 128>}, {pipeline_mode = #tpu.pipeline_mode<synchronous>, transform_indices = @transform_8, window_bounds = array<i64: 128, 128>}, {pipeline_mode = #tpu.pipeline_mode<synchronous>, transform_indices = @transform_9, window_bounds = array<i64: 1, 128>}, {transform_indices = @transform_10, window_bounds = array<i64: 1, 8, 16, 128>}]} {
    %c0 = arith.constant 0 : index
    %c0_0 = arith.constant 0 : index
    %c0_1 = arith.constant 0 : index
    %c0_2 = arith.constant 0 : index
    %0 = vector.load %arg2[%c0, %c0_0, %c0_1, %c0_2] : memref<1x8x24x128xbf16, #tpu.memory_space<vmem>>, vector<1x8x24x128xbf16>
    %1 = vector.shape_cast %0 : vector<1x8x24x128xbf16> to vector<8x24x128xbf16>
    %2 = vector.shape_cast %1 : vector<8x24x128xbf16> to vector<192x128xbf16>
    %c0_3 = arith.constant 0 : index
    %c0_4 = arith.constant 0 : index
    %3 = vector.load %arg4[%c0_3, %c0_4] : memref<128x128xbf16, #tpu.memory_space<vmem>>, vector<128x128xbf16>
    %cst = arith.constant dense<0.000000e+00> : vector<192x128xf32>
    %4 = tpu.matmul %2, %3, %cst {dimension_numbers = #tpu.dot_dimension_numbers<[1], [0], [0], [1], [0, 0, 1, 1], [], []>} : vector<192x128xbf16>, vector<128x128xbf16>, vector<192x128xf32> -> vector<192x128xf32>
    %c0_5 = arith.constant 0 : index
    %c0_6 = arith.constant 0 : index
    %5 = vector.load %arg5[%c0_5, %c0_6] : memref<1x128xf32, #tpu.memory_space<vmem>>, vector<1x128xf32>
    %6 = vector.broadcast %5 : vector<1x128xf32> to vector<192x128xf32>
    %7 = arith.addf %4, %6 : vector<192x128xf32>
    %cst_7 = arith.constant 0.000000e+00 : f32
    %8 = vector.broadcast %cst_7 : f32 to vector<192x128xf32>
    %9 = arith.maximumf %7, %8 : vector<192x128xf32>
    %10 = arith.truncf %9 : vector<192x128xf32> to vector<192x128xbf16>
    %11 = vector.shape_cast %10 : vector<192x128xbf16> to vector<8x24x128xbf16>
    %c1 = arith.constant 1 : index
    %c0_8 = arith.constant 0 : index
    %c0_9 = arith.constant 0 : index
    %12 = vector.load %arg13[%c1, %c0_8, %c0_9] : memref<10x24x128xbf16, #tpu.memory_space<vmem>>, vector<8x24x128xbf16>
    tpu.vector_store %arg13[%c1, %c0_8, %c0_9], %11 {strides = array<i32>} : memref<10x24x128xbf16, #tpu.memory_space<vmem>>, vector<8x24x128xbf16>,
    %c0_10 = arith.constant 0 : index
    %c0_11 = arith.constant 0 : index
    %c0_12 = arith.constant 0 : index
    %c0_13 = arith.constant 0 : index
    %c0_14 = arith.constant 0 : index
    %13 = vector.load %arg3[%c0_10, %c0_11, %c0_12, %c0_13, %c0_14] : memref<1x1x2x24x128xbf16, #tpu.memory_space<vmem>>, vector<1x1x2x24x128xbf16>
    %14 = vector.shape_cast %13 : vector<1x1x2x24x128xbf16> to vector<2x24x128xbf16>
    %15 = vector.shape_cast %14 : vector<2x24x128xbf16> to vector<48x128xbf16>
    %c0_15 = arith.constant 0 : index
    %c0_16 = arith.constant 0 : index
    %16 = vector.load %arg4[%c0_15, %c0_16] : memref<128x128xbf16, #tpu.memory_space<vmem>>, vector<128x128xbf16>
    %cst_17 = arith.constant dense<0.000000e+00> : vector<48x128xf32>
    %17 = tpu.matmul %15, %16, %cst_17 {dimension_numbers = #tpu.dot_dimension_numbers<[1], [0], [0], [1], [0, 0, 1, 1], [], []>} : vector<48x128xbf16>, vector<128x128xbf16>, vector<48x128xf32> -> vector<48x128xf32>
    %c0_18 = arith.constant 0 : index
    %c0_19 = arith.constant 0 : index
    %18 = vector.load %arg5[%c0_18, %c0_19] : memref<1x128xf32, #tpu.memory_space<vmem>>, vector<1x128xf32>
    %19 = vector.broadcast %18 : vector<1x128xf32> to vector<48x128xf32>
    %20 = arith.addf %17, %19 : vector<48x128xf32>
    %cst_20 = arith.constant 0.000000e+00 : f32
    %21 = vector.broadcast %cst_20 : f32 to vector<48x128xf32>
    %22 = arith.maximumf %20, %21 : vector<48x128xf32>
    %23 = arith.truncf %22 : vector<48x128xf32> to vector<48x128xbf16>
    %24 = vector.shape_cast %23 : vector<48x128xbf16> to vector<2x24x128xbf16>
    %25 = vector.extract_strided_slice %24 {offsets = [0, 0, 0], sizes = [1, 24, 128], strides = [1, 1, 1]} : vector<2x24x128xbf16> to vector<1x24x128xbf16>
    %c0_21 = arith.constant 0 : index
    %c0_22 = arith.constant 0 : index
    %c0_23 = arith.constant 0 : index
    %26 = vector.load %arg13[%c0_21, %c0_22, %c0_23] : memref<10x24x128xbf16, #tpu.memory_space<vmem>>, vector<1x24x128xbf16>
    tpu.vector_store %arg13[%c0_21, %c0_22, %c0_23], %25 {strides = array<i32>} : memref<10x24x128xbf16, #tpu.memory_space<vmem>>, vector<1x24x128xbf16>,
    %27 = vector.extract_strided_slice %24 {offsets = [1, 0, 0], sizes = [1, 24, 128], strides = [1, 1, 1]} : vector<2x24x128xbf16> to vector<1x24x128xbf16>
    %c9 = arith.constant 9 : index
    %c0_24 = arith.constant 0 : index
    %c0_25 = arith.constant 0 : index
    %28 = vector.load %arg13[%c9, %c0_24, %c0_25] : memref<10x24x128xbf16, #tpu.memory_space<vmem>>, vector<1x24x128xbf16>
    tpu.vector_store %arg13[%c9, %c0_24, %c0_25], %27 {strides = array<i32>} : memref<10x24x128xbf16, #tpu.memory_space<vmem>>, vector<1x24x128xbf16>,
    %cst_26 = arith.constant 0.000000e+00 : bf16
    %29 = vector.broadcast %cst_26 : bf16 to vector<10x1x128xbf16>
    %c0_27 = arith.constant 0 : index
    %c0_28 = arith.constant 0 : index
    %c0_29 = arith.constant 0 : index
    %30 = vector.load %arg13[%c0_27, %c0_28, %c0_29] : memref<10x24x128xbf16, #tpu.memory_space<vmem>>, vector<10x1x128xbf16>
    tpu.vector_store %arg13[%c0_27, %c0_28, %c0_29], %29 {strides = array<i32>} : memref<10x24x128xbf16, #tpu.memory_space<vmem>>, vector<10x1x128xbf16>,
    %cst_30 = arith.constant 0.000000e+00 : bf16
    %31 = vector.broadcast %cst_30 : bf16 to vector<10x1x128xbf16>
    %c0_31 = arith.constant 0 : index
    %c17 = arith.constant 17 : index
    %c0_32 = arith.constant 0 : index
    %32 = vector.load %arg13[%c0_31, %c17, %c0_32] : memref<10x24x128xbf16, #tpu.memory_space<vmem>>, vector<10x1x128xbf16>
    tpu.vector_store %arg13[%c0_31, %c17, %c0_32], %31 {strides = array<i32>} : memref<10x24x128xbf16, #tpu.memory_space<vmem>>, vector<10x1x128xbf16>,
    %c0_i32 = arith.constant 0 : i32
    %33 = arith.cmpi eq, %arg1, %c0_i32 : i32
    %34 = arith.extui %33 : i1 to i32
    %c0_i32_33 = arith.constant 0 : i32
    %35 = arith.cmpi ne, %34, %c0_i32_33 : i32
    scf.if %35 {
      %cst_149 = arith.constant 0.000000e+00 : bf16
      %138 = vector.broadcast %cst_149 : bf16 to vector<1x24x128xbf16>
      %c0_150 = arith.constant 0 : index
      %c0_151 = arith.constant 0 : index
      %c0_152 = arith.constant 0 : index
      %139 = vector.load %arg13[%c0_150, %c0_151, %c0_152] : memref<10x24x128xbf16, #tpu.memory_space<vmem>>, vector<1x24x128xbf16>
      tpu.vector_store %arg13[%c0_150, %c0_151, %c0_152], %138 {strides = array<i32>} : memref<10x24x128xbf16, #tpu.memory_space<vmem>>, vector<1x24x128xbf16>,
    } else {
    }
    %c1_i32 = arith.constant 1 : i32
    %36 = arith.cmpi eq, %arg1, %c1_i32 : i32
    %37 = arith.extui %36 : i1 to i32
    %c0_i32_34 = arith.constant 0 : i32
    %38 = arith.cmpi ne, %37, %c0_i32_34 : i32
    scf.if %38 {
      %cst_149 = arith.constant 0.000000e+00 : bf16
      %138 = vector.broadcast %cst_149 : bf16 to vector<1x24x128xbf16>
      %c9_150 = arith.constant 9 : index
      %c0_151 = arith.constant 0 : index
      %c0_152 = arith.constant 0 : index
      %139 = vector.load %arg13[%c9_150, %c0_151, %c0_152] : memref<10x24x128xbf16, #tpu.memory_space<vmem>>, vector<1x24x128xbf16>
      tpu.vector_store %arg13[%c9_150, %c0_151, %c0_152], %138 {strides = array<i32>} : memref<10x24x128xbf16, #tpu.memory_space<vmem>>, vector<1x24x128xbf16>,
    } else {
    }
    %c0_35 = arith.constant 0 : index
    %c0_36 = arith.constant 0 : index
    %39 = vector.load %arg7[%c0_35, %c0_36] : memref<1x128xf32, #tpu.memory_space<vmem>>, vector<1x128xf32>
    %40 = vector.shape_cast %39 : vector<1x128xf32> to vector<1x128xf32>
    %41 = vector.broadcast %40 : vector<1x128xf32> to vector<128x128xf32>
    %c0_37 = arith.constant 0 : index
    %c0_38 = arith.constant 0 : index
    %42 = vector.load %arg14[%c0_37, %c0_38] : memref<128x128xf32, #tpu.memory_space<vmem>>, vector<128x128xf32>
    tpu.vector_store %arg14[%c0_37, %c0_38], %41 {strides = array<i32>} : memref<128x128xf32, #tpu.memory_space<vmem>>, vector<128x128xf32>,
    %c0_39 = arith.constant 0 : index
    %c0_40 = arith.constant 0 : index
    %c0_41 = arith.constant 0 : index
    %43 = vector.load %arg13[%c0_39, %c0_40, %c0_41] : memref<10x24x128xbf16, #tpu.memory_space<vmem>>, vector<8x16x128xbf16>
    %c0_42 = arith.constant 0 : index
    %c0_43 = arith.constant 0 : index
    %44 = vector.load %arg14[%c0_42, %c0_43] : memref<128x128xf32, #tpu.memory_space<vmem>>, vector<128x128xf32>
    %45 = vector.shape_cast %43 : vector<8x16x128xbf16> to vector<128x128xbf16>
    %c0_44 = arith.constant 0 : index
    %c0_45 = arith.constant 0 : index
    %c0_46 = arith.constant 0 : index
    %46 = vector.load %arg6[%c0_44, %c0_45, %c0_46] : memref<9x128x128xbf16, #tpu.memory_space<vmem>>, vector<1x128x128xbf16>
    %47 = vector.shape_cast %46 : vector<1x128x128xbf16> to vector<128x128xbf16>
    %cst_47 = arith.constant dense<0.000000e+00> : vector<128x128xf32>
    %48 = tpu.matmul %45, %47, %cst_47 {dimension_numbers = #tpu.dot_dimension_numbers<[1], [0], [0], [1], [0, 0, 1, 1], [], []>} : vector<128x128xbf16>, vector<128x128xbf16>, vector<128x128xf32> -> vector<128x128xf32>
    %49 = arith.addf %44, %48 : vector<128x128xf32>
    %c0_48 = arith.constant 0 : index
    %c0_49 = arith.constant 0 : index
    %50 = vector.load %arg14[%c0_48, %c0_49] : memref<128x128xf32, #tpu.memory_space<vmem>>, vector<128x128xf32>
    tpu.vector_store %arg14[%c0_48, %c0_49], %49 {strides = array<i32>} : memref<128x128xf32, #tpu.memory_space<vmem>>, vector<128x128xf32>,
    %c0_50 = arith.constant 0 : index
    %c1_51 = arith.constant 1 : index
    %c0_52 = arith.constant 0 : index
    %51 = vector.load %arg13[%c0_50, %c1_51, %c0_52] : memref<10x24x128xbf16, #tpu.memory_space<vmem>>, vector<8x16x128xbf16>
    %c0_53 = arith.constant 0 : index
    %c0_54 = arith.constant 0 : index
    %52 = vector.load %arg14[%c0_53, %c0_54] : memref<128x128xf32, #tpu.memory_space<vmem>>, vector<128x128xf32>
    %53 = vector.shape_cast %51 : vector<8x16x128xbf16> to vector<128x128xbf16>
    %c1_55 = arith.constant 1 : index
    %c0_56 = arith.constant 0 : index
    %c0_57 = arith.constant 0 : index
    %54 = vector.load %arg6[%c1_55, %c0_56, %c0_57] : memref<9x128x128xbf16, #tpu.memory_space<vmem>>, vector<1x128x128xbf16>
    %55 = vector.shape_cast %54 : vector<1x128x128xbf16> to vector<128x128xbf16>
    %cst_58 = arith.constant dense<0.000000e+00> : vector<128x128xf32>
    %56 = tpu.matmul %53, %55, %cst_58 {dimension_numbers = #tpu.dot_dimension_numbers<[1], [0], [0], [1], [0, 0, 1, 1], [], []>} : vector<128x128xbf16>, vector<128x128xbf16>, vector<128x128xf32> -> vector<128x128xf32>
    %57 = arith.addf %52, %56 : vector<128x128xf32>
    %c0_59 = arith.constant 0 : index
    %c0_60 = arith.constant 0 : index
    %58 = vector.load %arg14[%c0_59, %c0_60] : memref<128x128xf32, #tpu.memory_space<vmem>>, vector<128x128xf32>
    tpu.vector_store %arg14[%c0_59, %c0_60], %57 {strides = array<i32>} : memref<128x128xf32, #tpu.memory_space<vmem>>, vector<128x128xf32>,
    %c0_61 = arith.constant 0 : index
    %c2 = arith.constant 2 : index
    %c0_62 = arith.constant 0 : index
    %59 = vector.load %arg13[%c0_61, %c2, %c0_62] : memref<10x24x128xbf16, #tpu.memory_space<vmem>>, vector<8x16x128xbf16>
    %c0_63 = arith.constant 0 : index
    %c0_64 = arith.constant 0 : index
    %60 = vector.load %arg14[%c0_63, %c0_64] : memref<128x128xf32, #tpu.memory_space<vmem>>, vector<128x128xf32>
    %61 = vector.shape_cast %59 : vector<8x16x128xbf16> to vector<128x128xbf16>
    %c2_65 = arith.constant 2 : index
    %c0_66 = arith.constant 0 : index
    %c0_67 = arith.constant 0 : index
    %62 = vector.load %arg6[%c2_65, %c0_66, %c0_67] : memref<9x128x128xbf16, #tpu.memory_space<vmem>>, vector<1x128x128xbf16>
    %63 = vector.shape_cast %62 : vector<1x128x128xbf16> to vector<128x128xbf16>
    %cst_68 = arith.constant dense<0.000000e+00> : vector<128x128xf32>
    %64 = tpu.matmul %61, %63, %cst_68 {dimension_numbers = #tpu.dot_dimension_numbers<[1], [0], [0], [1], [0, 0, 1, 1], [], []>} : vector<128x128xbf16>, vector<128x128xbf16>, vector<128x128xf32> -> vector<128x128xf32>
    %65 = arith.addf %60, %64 : vector<128x128xf32>
    %c0_69 = arith.constant 0 : index
    %c0_70 = arith.constant 0 : index
    %66 = vector.load %arg14[%c0_69, %c0_70] : memref<128x128xf32, #tpu.memory_space<vmem>>, vector<128x128xf32>
    tpu.vector_store %arg14[%c0_69, %c0_70], %65 {strides = array<i32>} : memref<128x128xf32, #tpu.memory_space<vmem>>, vector<128x128xf32>,
    %c1_71 = arith.constant 1 : index
    %c0_72 = arith.constant 0 : index
    %c0_73 = arith.constant 0 : index
    %67 = vector.load %arg13[%c1_71, %c0_72, %c0_73] : memref<10x24x128xbf16, #tpu.memory_space<vmem>>, vector<8x16x128xbf16>
    %c0_74 = arith.constant 0 : index
    %c0_75 = arith.constant 0 : index
    %68 = vector.load %arg14[%c0_74, %c0_75] : memref<128x128xf32, #tpu.memory_space<vmem>>, vector<128x128xf32>
    %69 = vector.shape_cast %67 : vector<8x16x128xbf16> to vector<128x128xbf16>
    %c3 = arith.constant 3 : index
    %c0_76 = arith.constant 0 : index
    %c0_77 = arith.constant 0 : index
    %70 = vector.load %arg6[%c3, %c0_76, %c0_77] : memref<9x128x128xbf16, #tpu.memory_space<vmem>>, vector<1x128x128xbf16>
    %71 = vector.shape_cast %70 : vector<1x128x128xbf16> to vector<128x128xbf16>
    %cst_78 = arith.constant dense<0.000000e+00> : vector<128x128xf32>
    %72 = tpu.matmul %69, %71, %cst_78 {dimension_numbers = #tpu.dot_dimension_numbers<[1], [0], [0], [1], [0, 0, 1, 1], [], []>} : vector<128x128xbf16>, vector<128x128xbf16>, vector<128x128xf32> -> vector<128x128xf32>
    %73 = arith.addf %68, %72 : vector<128x128xf32>
    %c0_79 = arith.constant 0 : index
    %c0_80 = arith.constant 0 : index
    %74 = vector.load %arg14[%c0_79, %c0_80] : memref<128x128xf32, #tpu.memory_space<vmem>>, vector<128x128xf32>
    tpu.vector_store %arg14[%c0_79, %c0_80], %73 {strides = array<i32>} : memref<128x128xf32, #tpu.memory_space<vmem>>, vector<128x128xf32>,
    %c1_81 = arith.constant 1 : index
    %c1_82 = arith.constant 1 : index
    %c0_83 = arith.constant 0 : index
    %75 = vector.load %arg13[%c1_81, %c1_82, %c0_83] : memref<10x24x128xbf16, #tpu.memory_space<vmem>>, vector<8x16x128xbf16>
    %c0_84 = arith.constant 0 : index
    %c0_85 = arith.constant 0 : index
    %76 = vector.load %arg14[%c0_84, %c0_85] : memref<128x128xf32, #tpu.memory_space<vmem>>, vector<128x128xf32>
    %77 = vector.shape_cast %75 : vector<8x16x128xbf16> to vector<128x128xbf16>
    %c4 = arith.constant 4 : index
    %c0_86 = arith.constant 0 : index
    %c0_87 = arith.constant 0 : index
    %78 = vector.load %arg6[%c4, %c0_86, %c0_87] : memref<9x128x128xbf16, #tpu.memory_space<vmem>>, vector<1x128x128xbf16>
    %79 = vector.shape_cast %78 : vector<1x128x128xbf16> to vector<128x128xbf16>
    %cst_88 = arith.constant dense<0.000000e+00> : vector<128x128xf32>
    %80 = tpu.matmul %77, %79, %cst_88 {dimension_numbers = #tpu.dot_dimension_numbers<[1], [0], [0], [1], [0, 0, 1, 1], [], []>} : vector<128x128xbf16>, vector<128x128xbf16>, vector<128x128xf32> -> vector<128x128xf32>
    %81 = arith.addf %76, %80 : vector<128x128xf32>
    %c0_89 = arith.constant 0 : index
    %c0_90 = arith.constant 0 : index
    %82 = vector.load %arg14[%c0_89, %c0_90] : memref<128x128xf32, #tpu.memory_space<vmem>>, vector<128x128xf32>
    tpu.vector_store %arg14[%c0_89, %c0_90], %81 {strides = array<i32>} : memref<128x128xf32, #tpu.memory_space<vmem>>, vector<128x128xf32>,
    %c1_91 = arith.constant 1 : index
    %c2_92 = arith.constant 2 : index
    %c0_93 = arith.constant 0 : index
    %83 = vector.load %arg13[%c1_91, %c2_92, %c0_93] : memref<10x24x128xbf16, #tpu.memory_space<vmem>>, vector<8x16x128xbf16>
    %c0_94 = arith.constant 0 : index
    %c0_95 = arith.constant 0 : index
    %84 = vector.load %arg14[%c0_94, %c0_95] : memref<128x128xf32, #tpu.memory_space<vmem>>, vector<128x128xf32>
    %85 = vector.shape_cast %83 : vector<8x16x128xbf16> to vector<128x128xbf16>
    %c5 = arith.constant 5 : index
    %c0_96 = arith.constant 0 : index
    %c0_97 = arith.constant 0 : index
    %86 = vector.load %arg6[%c5, %c0_96, %c0_97] : memref<9x128x128xbf16, #tpu.memory_space<vmem>>, vector<1x128x128xbf16>
    %87 = vector.shape_cast %86 : vector<1x128x128xbf16> to vector<128x128xbf16>
    %cst_98 = arith.constant dense<0.000000e+00> : vector<128x128xf32>
    %88 = tpu.matmul %85, %87, %cst_98 {dimension_numbers = #tpu.dot_dimension_numbers<[1], [0], [0], [1], [0, 0, 1, 1], [], []>} : vector<128x128xbf16>, vector<128x128xbf16>, vector<128x128xf32> -> vector<128x128xf32>
    %89 = arith.addf %84, %88 : vector<128x128xf32>
    %c0_99 = arith.constant 0 : index
    %c0_100 = arith.constant 0 : index
    %90 = vector.load %arg14[%c0_99, %c0_100] : memref<128x128xf32, #tpu.memory_space<vmem>>, vector<128x128xf32>
    tpu.vector_store %arg14[%c0_99, %c0_100], %89 {strides = array<i32>} : memref<128x128xf32, #tpu.memory_space<vmem>>, vector<128x128xf32>,
    %c2_101 = arith.constant 2 : index
    %c0_102 = arith.constant 0 : index
    %c0_103 = arith.constant 0 : index
    %91 = vector.load %arg13[%c2_101, %c0_102, %c0_103] : memref<10x24x128xbf16, #tpu.memory_space<vmem>>, vector<8x16x128xbf16>
    %c0_104 = arith.constant 0 : index
    %c0_105 = arith.constant 0 : index
    %92 = vector.load %arg14[%c0_104, %c0_105] : memref<128x128xf32, #tpu.memory_space<vmem>>, vector<128x128xf32>
    %93 = vector.shape_cast %91 : vector<8x16x128xbf16> to vector<128x128xbf16>
    %c6 = arith.constant 6 : index
    %c0_106 = arith.constant 0 : index
    %c0_107 = arith.constant 0 : index
    %94 = vector.load %arg6[%c6, %c0_106, %c0_107] : memref<9x128x128xbf16, #tpu.memory_space<vmem>>, vector<1x128x128xbf16>
    %95 = vector.shape_cast %94 : vector<1x128x128xbf16> to vector<128x128xbf16>
    %cst_108 = arith.constant dense<0.000000e+00> : vector<128x128xf32>
    %96 = tpu.matmul %93, %95, %cst_108 {dimension_numbers = #tpu.dot_dimension_numbers<[1], [0], [0], [1], [0, 0, 1, 1], [], []>} : vector<128x128xbf16>, vector<128x128xbf16>, vector<128x128xf32> -> vector<128x128xf32>
    %97 = arith.addf %92, %96 : vector<128x128xf32>
    %c0_109 = arith.constant 0 : index
    %c0_110 = arith.constant 0 : index
    %98 = vector.load %arg14[%c0_109, %c0_110] : memref<128x128xf32, #tpu.memory_space<vmem>>, vector<128x128xf32>
    tpu.vector_store %arg14[%c0_109, %c0_110], %97 {strides = array<i32>} : memref<128x128xf32, #tpu.memory_space<vmem>>, vector<128x128xf32>,
    %c2_111 = arith.constant 2 : index
    %c1_112 = arith.constant 1 : index
    %c0_113 = arith.constant 0 : index
    %99 = vector.load %arg13[%c2_111, %c1_112, %c0_113] : memref<10x24x128xbf16, #tpu.memory_space<vmem>>, vector<8x16x128xbf16>
    %c0_114 = arith.constant 0 : index
    %c0_115 = arith.constant 0 : index
    %100 = vector.load %arg14[%c0_114, %c0_115] : memref<128x128xf32, #tpu.memory_space<vmem>>, vector<128x128xf32>
    %101 = vector.shape_cast %99 : vector<8x16x128xbf16> to vector<128x128xbf16>
    %c7 = arith.constant 7 : index
    %c0_116 = arith.constant 0 : index
    %c0_117 = arith.constant 0 : index
    %102 = vector.load %arg6[%c7, %c0_116, %c0_117] : memref<9x128x128xbf16, #tpu.memory_space<vmem>>, vector<1x128x128xbf16>
    %103 = vector.shape_cast %102 : vector<1x128x128xbf16> to vector<128x128xbf16>
    %cst_118 = arith.constant dense<0.000000e+00> : vector<128x128xf32>
    %104 = tpu.matmul %101, %103, %cst_118 {dimension_numbers = #tpu.dot_dimension_numbers<[1], [0], [0], [1], [0, 0, 1, 1], [], []>} : vector<128x128xbf16>, vector<128x128xbf16>, vector<128x128xf32> -> vector<128x128xf32>
    %105 = arith.addf %100, %104 : vector<128x128xf32>
    %c0_119 = arith.constant 0 : index
    %c0_120 = arith.constant 0 : index
    %106 = vector.load %arg14[%c0_119, %c0_120] : memref<128x128xf32, #tpu.memory_space<vmem>>, vector<128x128xf32>
    tpu.vector_store %arg14[%c0_119, %c0_120], %105 {strides = array<i32>} : memref<128x128xf32, #tpu.memory_space<vmem>>, vector<128x128xf32>,
    %c2_121 = arith.constant 2 : index
    %c2_122 = arith.constant 2 : index
    %c0_123 = arith.constant 0 : index
    %107 = vector.load %arg13[%c2_121, %c2_122, %c0_123] : memref<10x24x128xbf16, #tpu.memory_space<vmem>>, vector<8x16x128xbf16>
    %c0_124 = arith.constant 0 : index
    %c0_125 = arith.constant 0 : index
    %108 = vector.load %arg14[%c0_124, %c0_125] : memref<128x128xf32, #tpu.memory_space<vmem>>, vector<128x128xf32>
    %109 = vector.shape_cast %107 : vector<8x16x128xbf16> to vector<128x128xbf16>
    %c8 = arith.constant 8 : index
    %c0_126 = arith.constant 0 : index
    %c0_127 = arith.constant 0 : index
    %110 = vector.load %arg6[%c8, %c0_126, %c0_127] : memref<9x128x128xbf16, #tpu.memory_space<vmem>>, vector<1x128x128xbf16>
    %111 = vector.shape_cast %110 : vector<1x128x128xbf16> to vector<128x128xbf16>
    %cst_128 = arith.constant dense<0.000000e+00> : vector<128x128xf32>
    %112 = tpu.matmul %109, %111, %cst_128 {dimension_numbers = #tpu.dot_dimension_numbers<[1], [0], [0], [1], [0, 0, 1, 1], [], []>} : vector<128x128xbf16>, vector<128x128xbf16>, vector<128x128xf32> -> vector<128x128xf32>
    %113 = arith.addf %108, %112 : vector<128x128xf32>
    %c0_129 = arith.constant 0 : index
    %c0_130 = arith.constant 0 : index
    %114 = vector.load %arg14[%c0_129, %c0_130] : memref<128x128xf32, #tpu.memory_space<vmem>>, vector<128x128xf32>
    tpu.vector_store %arg14[%c0_129, %c0_130], %113 {strides = array<i32>} : memref<128x128xf32, #tpu.memory_space<vmem>>, vector<128x128xf32>,
    %c0_131 = arith.constant 0 : index
    %c0_132 = arith.constant 0 : index
    %115 = vector.load %arg14[%c0_131, %c0_132] : memref<128x128xf32, #tpu.memory_space<vmem>>, vector<128x128xf32>
    %cst_133 = arith.constant 0.000000e+00 : f32
    %116 = vector.broadcast %cst_133 : f32 to vector<128x128xf32>
    %117 = arith.maximumf %115, %116 : vector<128x128xf32>
    %118 = arith.truncf %117 : vector<128x128xf32> to vector<128x128xbf16>
    %c0_134 = arith.constant 0 : index
    %c0_135 = arith.constant 0 : index
    %119 = vector.load %arg8[%c0_134, %c0_135] : memref<128x128xbf16, #tpu.memory_space<vmem>>, vector<128x128xbf16>
    %cst_136 = arith.constant dense<0.000000e+00> : vector<128x128xf32>
    %120 = tpu.matmul %118, %119, %cst_136 {dimension_numbers = #tpu.dot_dimension_numbers<[1], [0], [0], [1], [0, 0, 1, 1], [], []>} : vector<128x128xbf16>, vector<128x128xbf16>, vector<128x128xf32> -> vector<128x128xf32>
    %c0_137 = arith.constant 0 : index
    %c0_138 = arith.constant 0 : index
    %121 = vector.load %arg9[%c0_137, %c0_138] : memref<1x128xf32, #tpu.memory_space<vmem>>, vector<1x128xf32>
    %122 = vector.broadcast %121 : vector<1x128xf32> to vector<128x128xf32>
    %123 = arith.addf %120, %122 : vector<128x128xf32>
    %124 = vector.extract_strided_slice %1 {offsets = [0, 1, 0], sizes = [8, 16, 128], strides = [1, 1, 1]} : vector<8x24x128xbf16> to vector<8x16x128xbf16>
    %125 = vector.shape_cast %124 : vector<8x16x128xbf16> to vector<128x128xbf16>
    %c0_139 = arith.constant 0 : index
    %c0_140 = arith.constant 0 : index
    %126 = vector.load %arg10[%c0_139, %c0_140] : memref<128x128xbf16, #tpu.memory_space<vmem>>, vector<128x128xbf16>
    %cst_141 = arith.constant dense<0.000000e+00> : vector<128x128xf32>
    %127 = tpu.matmul %125, %126, %cst_141 {dimension_numbers = #tpu.dot_dimension_numbers<[1], [0], [0], [1], [0, 0, 1, 1], [], []>} : vector<128x128xbf16>, vector<128x128xbf16>, vector<128x128xf32> -> vector<128x128xf32>
    %128 = arith.addf %123, %127 : vector<128x128xf32>
    %c0_142 = arith.constant 0 : index
    %c0_143 = arith.constant 0 : index
    %129 = vector.load %arg11[%c0_142, %c0_143] : memref<1x128xf32, #tpu.memory_space<vmem>>, vector<1x128xf32>
    %130 = vector.broadcast %129 : vector<1x128xf32> to vector<128x128xf32>
    %131 = arith.addf %128, %130 : vector<128x128xf32>
    %cst_144 = arith.constant 0.000000e+00 : f32
    %132 = vector.broadcast %cst_144 : f32 to vector<128x128xf32>
    %133 = arith.maximumf %131, %132 : vector<128x128xf32>
    %134 = vector.shape_cast %133 : vector<128x128xf32> to vector<8x16x128xf32>
    %c0_145 = arith.constant 0 : index
    %c0_146 = arith.constant 0 : index
    %c0_147 = arith.constant 0 : index
    %c0_148 = arith.constant 0 : index
    %135 = vector.load %arg12[%c0_145, %c0_146, %c0_147, %c0_148] : memref<1x8x16x128xf32, #tpu.memory_space<vmem>>, vector<1x8x16x128xf32>
    %136 = vector.shape_cast %135 : vector<1x8x16x128xf32> to vector<8x16x128xf32>
    %137 = vector.shape_cast %134 : vector<8x16x128xf32> to vector<1x8x16x128xf32>
    tpu.vector_store %arg12[%c0_145, %c0_146, %c0_147, %c0_148], %137 {strides = array<i32>} : memref<1x8x16x128xf32, #tpu.memory_space<vmem>>, vector<1x8x16x128xf32>,
    return
  }
  func.func @transform_0(%arg0: i32, %arg1: i32) -> (i32, i32, i32, i32) {
    %c0_i32 = arith.constant 0 : i32
    %c0_i32_0 = arith.constant 0 : i32
    %c0_i32_1 = arith.constant 0 : i32
    return %arg0, %arg1, %c0_i32, %c0_i32_0 : i32, i32, i32, i32
  }
  func.func @transform_1(%arg0: i32, %arg1: i32) -> (i32, i32, i32, i32, i32) {
    %c0_i32 = arith.constant 0 : i32
    %c0_i32_0 = arith.constant 0 : i32
    %c0_i32_1 = arith.constant 0 : i32
    %c0_i32_2 = arith.constant 0 : i32
    return %arg0, %arg1, %c0_i32, %c0_i32_0, %c0_i32_1 : i32, i32, i32, i32, i32
  }
  func.func @transform_2(%arg0: i32, %arg1: i32) -> (i32, i32) {
    %c0_i32 = arith.constant 0 : i32
    %c0_i32_0 = arith.constant 0 : i32
    %c0_i32_1 = arith.constant 0 : i32
    return %c0_i32, %c0_i32_0 : i32, i32
  }
  func.func @transform_3(%arg0: i32, %arg1: i32) -> (i32, i32) {
    %c0_i32 = arith.constant 0 : i32
    %c0_i32_0 = arith.constant 0 : i32
    %c0_i32_1 = arith.constant 0 : i32
    return %c0_i32, %c0_i32_0 : i32, i32
  }
  func.func @transform_4(%arg0: i32, %arg1: i32) -> (i32, i32, i32) {
    %c0_i32 = arith.constant 0 : i32
    %c0_i32_0 = arith.constant 0 : i32
    %c0_i32_1 = arith.constant 0 : i32
    %c0_i32_2 = arith.constant 0 : i32
    return %c0_i32, %c0_i32_0, %c0_i32_1 : i32, i32, i32
  }
  func.func @transform_5(%arg0: i32, %arg1: i32) -> (i32, i32) {
    %c0_i32 = arith.constant 0 : i32
    %c0_i32_0 = arith.constant 0 : i32
    %c0_i32_1 = arith.constant 0 : i32
    return %c0_i32, %c0_i32_0 : i32, i32
  }
  func.func @transform_6(%arg0: i32, %arg1: i32) -> (i32, i32) {
    %c0_i32 = arith.constant 0 : i32
    %c0_i32_0 = arith.constant 0 : i32
    %c0_i32_1 = arith.constant 0 : i32
    return %c0_i32, %c0_i32_0 : i32, i32
  }
  func.func @transform_7(%arg0: i32, %arg1: i32) -> (i32, i32) {
    %c0_i32 = arith.constant 0 : i32
    %c0_i32_0 = arith.constant 0 : i32
    %c0_i32_1 = arith.constant 0 : i32
    return %c0_i32, %c0_i32_0 : i32, i32
  }
  func.func @transform_8(%arg0: i32, %arg1: i32) -> (i32, i32) {
    %c0_i32 = arith.constant 0 : i32
    %c0_i32_0 = arith.constant 0 : i32
    %c0_i32_1 = arith.constant 0 : i32
    return %c0_i32, %c0_i32_0 : i32, i32
  }
  func.func @transform_9(%arg0: i32, %arg1: i32) -> (i32, i32) {
    %c0_i32 = arith.constant 0 : i32
    %c0_i32_0 = arith.constant 0 : i32
    %c0_i32_1 = arith.constant 0 : i32
    return %c0_i32, %c0_i32_0 : i32, i32
  }
  func.func @transform_10(%arg0: i32, %arg1: i32) -> (i32, i32, i32, i32) {
    %c0_i32 = arith.constant 0 : i32
    %c0_i32_0 = arith.constant 0 : i32
    %c0_i32_1 = arith.constant 0 : i32
    return %arg0, %arg1, %c0_i32, %c0_i32_0 : i32, i32, i32, i32
  }
}

</mosaic_0001>

<bundles_post_ra>
// kernel: tpu_custom_call.1
= control target key start
LH: loop header
LB: loop body
LE: loop exit
PB: predicated region body
PF: predicated region fallthrough
CT: control target
= control target key end

     0   :  { %s8182_s0 = inlined_call_operand.hbm [shape: bf16[2,16,24,128], index: 0, kind: input, shape index: {}]   ;;  %s8183_s1 = inlined_call_operand.hbm [shape: bf16[2,2,2,24,128], index: 1, kind: input, shape index: {}]   ;;  %s8184_s2 = inlined_call_operand.hbm [shape: bf16[128,128], index: 2, kind: input, shape index: {}]   ;;  %s8185_s3 = inlined_call_operand.vmem [shape: f32[1,128], index: 3, kind: input, shape index: {}]   ;;  %s8186_s4 = inlined_call_operand.hbm [shape: bf16[9,128,128], index: 4, kind: input, shape index: {}]   ;;  %s8187_s5 = inlined_call_operand.vmem [shape: f32[1,128], index: 5, kind: input, shape index: {}]   ;;  %s8188_s6 = inlined_call_operand.hbm [shape: bf16[128,128], index: 6, kind: input, shape index: {}]   ;;  %s8189_s7 = inlined_call_operand.vmem [shape: f32[1,128], index: 7, kind: input, shape index: {}]   ;;  %s8190_s8 = inlined_call_operand.hbm [shape: bf16[128,128], index: 8, kind: input, shape index: {}]   ;;  %s8191_s9 = inlined_call_operand.vmem [shape: f32[1,128], index: 9, kind: input, shape index: {}]   ;;  %s8192_s10 = inlined_call_operand.hbm [shape: f32[2,16,16,128], index: 10, kind: output, shape index: {}]  }
   0x1   :  { %8233 = sst [smem:[#allocation76_spill]] %s8182_s0 }
   0x2   :  { %8234 = sst [smem:[#allocation77_spill]] %s8184_s2 }
   0x3   :  { %8235 = sst [smem:[#allocation78_spill]] %s8186_s4 }
   0x4   :  { %8236 = sst [smem:[#allocation79_spill]] %s8188_s6 }
   0x5   :  { %8237 = sst [smem:[#allocation80_spill]] %s8189_s7 }
   0x6   :  { %8238 = sst [smem:[#allocation81_spill]] %s8190_s8 }
   0x7   :  { %8239 = sst [smem:[#allocation82_spill]] %s8191_s9 }
   0x8   :  { %8240 = sst [smem:[#allocation83_spill]] %s8192_s10 }
   0x9   :  { %15 = vsyncpa [#allocation5], 0 }
   0xa   :  { %17 = vsyncpa [#allocation5 + $0x1], 0 }
   0xb   :  { %18 = vsyncpa [#allocation8], 0 }
   0xc   :  { %20 = vsyncpa [#allocation8 + $0x1], 0 }
   0xd   :  { %21 = vsyncpa [#allocation11], 0 }
   0xe   :  { %22 = vsyncpa [#allocation14], 0 }
   0xf   :  { %23 = vsyncpa [#allocation6], 0 }
  0x10   :  { %25 = vsyncpa [#allocation6 + $0x1], 0  ;;  %s6972_s13 = smov 0   ;;  %s6974_s14 = smov 0  }
  0x11   :  { %s6976_s15 = smov 0   ;;  %s6978_s16 = smov 0  }
  0x12   :  { %s6980_s17 = smov 0   ;;  %s6982_s18 = smov 0  }
  0x13   :  { %s6984_s19 = smov 0   ;;  %s6986_s20 = smov 0  }
  0x14 LB: > { %8241 = sst [smem:[#allocation22_spill]] %s6872_s13  ;;  %s7013_s21 = sadd.s32 4294967295, %s6900_s20   ;;  %s6900_s20 = sphi %s6986_s20, %s31_s20   ;;  %s6896_s19 = sphi %s6984_s19, %s8385_s19   ;;  %s6892_s18 = sphi %s6982_s18, %s8384_s18   ;;  %s6888_s17 = sphi %s6980_s17, %s8383_s17   ;;  %s6884_s16 = sphi %s6978_s16, %s8382_s16   ;;  %s6880_s15 = sphi %s6976_s15, %s8377_s15   ;;  %s6876_s14 = sphi %s6974_s14, %s8381_s14   ;;  %s6872_s13 = sphi %s6972_s13, %s8380_s13  }
  0x15   : > { %8242 = sst [smem:[#allocation23_spill]] %s6880_s15  ;;  %s5310_s22 = sadd.s32 4294967294, %s6900_s20  }
  0x16   : > { %8243 = sst [smem:[#allocation24_spill]] %s6888_s17  ;;  %p65_p0 = scmp.ne.s32.totalorder %s6876_s14, %s6872_s13 }
  0x17   : > { %p8196_p1 = scmp.eq.s32.totalorder %s7013_s21, 0  ;;  %p287_p2 = scmp.eq.s32.totalorder %s7013_s21, 3 }
  0x18   : > { %p293_p3 = scmp.eq.s32.totalorder %s5310_s22, 3  ;;  %p5311_p5 = scmp.ge.s32.totalorder %s6900_s20, 1 }
  0x19   : > { %p7022_p4 = por %p8196_p1, %p65_p0  ;;  %p300_p7 = scmp.lt.s32.totalorder %s6900_s20, 5 }
  0x1a   : > { %p7027_p6 = por %p293_p3, %p65_p0  ;;  %s6902_s26 = smov [#allocation9]  }
  0x1b   : > { %p7032_p8 = pnand %p5311_p5, %p300_p7  ;;  %s312_s27 = sshll.u32 %s6902_s26, 4  ;;  %s313_s27 = int_to_ptr.vmem [resolvable:$true] %s312_s27 }
  0x1c   : > { %s8245_s24 = scalar_select %p7027_p6, 1, 0 }
  0x1d   : > { %p6375_p9 = pneg %p7032_p8  ;;  %s6903_s29 = smov [#allocation10]  }
  0x1e   : > { %8246 = sst [smem:[#allocation25_spill]] %s8245_s24  ;;  %s328_s30 = sshll.u32 %s6903_s29, 4  ;;  %s329_s30 = int_to_ptr.vmem [resolvable:$true] %s328_s30 }
  0x1f   : > { %p7040_p10 = pnand %p6375_p9, %p8196_p1  ;;  %s6904_s11 = smov [#allocation12]  }
  0x20   : > { %s344_s12 = sshll.u32 %s6904_s11, 4  ;;  %s6639_s22 = scalar_lea.vmem %s313_s27, 1024  ;;  %s345_s12 = int_to_ptr.vmem [resolvable:$true] %s344_s12 }
  0x21   : > { %p6630_p11 = pneg %p7040_p10  ;;  %p6640_p12 = scmp.ne.s32.totalorder %s313_s27, %s6639_s22 }
  0x22   : > { %p6647_p3 = scmp.lt.s32.totalorder %s313_s27, %s313_s27  ;;  %p6648_p5 = scmp.lt.s32.totalorder %s6639_s22, %s6639_s22 }
  0x23   : > { %p6642_p13 = pnand %p6640_p12, %p6630_p11 }
  0x24   : > { %p6649_p7 = por %p6648_p5, %p6647_p3 }
  0x25   : > { %p6643_p0 = pneg %p6642_p13 }
  0x27   : > { %p6650_p9 = pnand %p6649_p7, %p6643_p0 }
  0x29   : > { %6653 = shalt.err (!%p6650_p9)
}
  0x2a   : > { %s8197_s26 = smov 64   ;;  %s8199_s29 = smov 4  }
  0x2b   : > { %s8249_s2 = sld [smem:[#allocation77_spill]]  ;;  %s6665_s13 = scalar_lea.vmem %s329_s30, 9216 }
  0x2c   : > { %p6666_p12 = scmp.ne.s32.totalorder %s329_s30, %s6665_s13  ;;  %p6673_p0 = scmp.lt.s32.totalorder %s329_s30, %s329_s30 }
  0x2d   : > { %p6674_p5 = scmp.lt.s32.totalorder %s6665_s13, %s6665_s13 }
  0x2e   : > { %p6668_p13 = pnand %p6666_p12, %p6630_p11 }
  0x2f   : > { %p6675_p7 = por %p6674_p5, %p6673_p0 }
  0x30   : > { %p6669_p3 = pneg %p6668_p13 }
  0x31   : > { %6378 = dma.hbm_to_vmem [thread:$0]  (!%p7040_p10), %s8249_s2, 1024, %s313_s27, [#allocation8], %s8197_s26, %s8197_s26, %s8199_s29  }
  0x32   : > { %p6676_p9 = pnand %p6675_p7, %p6669_p3 }
  0x34   : > { %6679 = shalt.err (!%p6676_p9)
}
  0x35   : > { %s8250_s4 = sld [smem:[#allocation78_spill]]  ;;  %s6691_s24 = scalar_lea.vmem %s345_s12, 1024 }
  0x36   : > { %p6692_p1 = scmp.ne.s32.totalorder %s345_s12, %s6691_s24  ;;  %p6699_p0 = scmp.lt.s32.totalorder %s345_s12, %s345_s12 }
  0x37   : > { %p6700_p3 = scmp.lt.s32.totalorder %s6691_s24, %s6691_s24 }
  0x38   : > { %p6694_p12 = pnand %p6692_p1, %p6630_p11 }
  0x39   : > { %p6701_p5 = por %p6700_p3, %p6699_p0 }
  0x3a   : > { %p6695_p13 = pneg %p6694_p12 }
  0x3b   : > { %6381 = dma.hbm_to_vmem [thread:$0]  (!%p7040_p10), %s8250_s4, 9216, %s329_s30, [#allocation11], %s8197_s26, %s8197_s26, %s8199_s29  }
  0x3c   : > { %p6702_p7 = pnand %p6701_p5, %p6695_p13 }
  0x3e   : > { %6705 = shalt.err (!%p6702_p7)
}
  0x3f   : > { %s8251_s6 = sld [smem:[#allocation79_spill]]  ;;  %s6907_s27 = smov [#allocation13]  }
  0x40   : > { %s360_s30 = sshll.u32 %s6907_s27, 4  ;;  %s361_s30 = int_to_ptr.vmem [resolvable:$true] %s360_s30 }
  0x41   : > { %s6717_s11 = scalar_lea.vmem %s361_s30, 1024  ;;  %p6725_p13 = scmp.lt.s32.totalorder %s361_s30, %s361_s30 }
  0x42   : > { %p6718_p1 = scmp.ne.s32.totalorder %s361_s30, %s6717_s11  ;;  %p6726_p0 = scmp.lt.s32.totalorder %s6717_s11, %s6717_s11 }
  0x44   : > { %p6720_p9 = pnand %p6718_p1, %p6630_p11  ;;  %p6727_p3 = por %p6726_p0, %p6725_p13 }
  0x45   : > { %6384 = dma.hbm_to_vmem [thread:$0]  (!%p7040_p10), %s8251_s6, 1024, %s345_s12, [#allocation11], %s8197_s26, %s8197_s26, %s8199_s29  }
  0x46   : > { %p6721_p12 = pneg %p6720_p9 }
  0x48   : > { %p6728_p5 = pnand %p6727_p3, %p6721_p12 }
  0x4a   : > { %6731 = shalt.err (!%p6728_p5)
}
  0x4b   : > { %s8252_s8 = sld [smem:[#allocation81_spill]]  ;;  %s40_s24 = sadd.s32 1, %s6892_s18 }
  0x4c   : > { %s43_s28 = sadd.s32 1, %s6896_s19  ;;  %p41_p11 = scmp.ge.s32.totalorder %s40_s24, 2 }
  0x4d   : > { %s52_s10 = sadd.s32 1, %s6880_s15  ;;  %p59_p7 = scmp.ne.s32.totalorder %s6880_s15, %s6876_s14 }
  0x4e   : > { %p60_p1 = scmp.eq.s32.totalorder %s6900_s20, 0  ;;  %s8387_s24 = smov (%p41_p11, %s40_s24), 0 }
  0x4f   : > { %8253 = sst [smem:[#allocation26_spill]] %s8387_s24  ;;  %s8389_s28 = smov (!%p41_p11, %s43_s28), %s6896_s19 }
  0x50   : > { %s48_s13 = ssub.s32 %s6892_s18, %s8387_s24  ;;  %p7101_p9 = por %p60_p1, %p59_p7 }
  0x51   : > { %6387 = dma.hbm_to_vmem [thread:$0]  (!%p7040_p10), %s8252_s8, 1024, %s361_s30, [#allocation14], %s8197_s26, %s8197_s26, %s8199_s29  }
  0x52   : > { %p45_p10 = scmp.ge.s32.totalorder %s8389_s28, 2  ;;  %p7107_p12 = por %p287_p2, %p59_p7 }
  0x53   : > { %p6403_p13 = scmp.lt.s32.totalorder %s6900_s20, 4  ;;  %s7113_s11 = sand.u32 1, %s6880_s15  }
  0x54   : > { %s8255_s30 = scalar_select %p7107_p12, 1, 0 }
  0x55   : > { %s8391_s28 = smov (%p45_p10, %s8389_s28), 0  ;;  %s6345_s12 = smul.u32 96, %s7113_s11 }
  0x56   : > { %8256 = sst [smem:[#allocation27_spill]] %s8255_s30  ;;  %s47_s22 = ssub.s32 %s6896_s19, %s8391_s28 }
  0x57   : > { %8257 = sst [smem:[#allocation28_spill]] %s8391_s28  ;;  %s6346_s26 = smul.u32 24, %s6892_s18 }
  0x58   : > { %s49_s29 = sor.u32 %s48_s13, %s47_s22  ;;  %s6347_s2 = smul.u32 48, %s6896_s19 }
  0x59   : > { %p50_p0 = scmp.eq.s32.totalorder %s49_s29, 0  ;;  %s381_s4 = scalar_lea.vmem [#allocation4], %s6345_s12 }
  0x5a   : > { %s391_s6 = sshll.u32 %s381_s4, 4  ;;  %p7124_p2 = pnand %p6403_p13, %p7101_p9  ;;  %s392_s6 = int_to_ptr.vmem [resolvable:$true] %s391_s6 }
  0x5b   : > { %s7129_s24 = scalar_select %p50_p0, %s6880_s15, %s52_s10  }
  0x5c   : > { %s388_s30 = sadd.s32 %s6347_s2, %s6346_s26  ;;  %s8260_s0 = sld [smem:[#allocation76_spill]] }
  0x5d   : > { %8259 = sst [smem:[#allocation29_spill]] %s7129_s24  ;;  %s5319_s17 = sshll.u32 %s388_s30, 6 }
  0x5e   : > { %s378_s29 = scalar_lea.sflag [#allocation5], %s7113_s11  ;;  %p6734_p3 = pneg %p7124_p2 }
  0x5f   : > { %s6745_s4 = scalar_lea.vmem %s392_s6, 1536  ;;  %s6908_s27 = smov [#allocation4]  }
  0x60   : > { %p6746_p5 = scmp.ne.s32.totalorder %s392_s6, %s6745_s4  ;;  %s6750_s12 = sshll.u32 %s6908_s27, 4  ;;  %s6751_s12 = int_to_ptr.vmem [resolvable:$false] %s6750_s12 }
  0x61   : > { %s6752_s10 = scalar_lea.vmem %s6751_s12, 3072  ;;  %p6753_p1 = scmp.lt.s32.totalorder %s392_s6, %s6751_s12 }
  0x62   : > { %s390_s13 = scalar_lea.hbm %s8260_s0, %s5319_s17  ;;  %p6748_p11 = pnand %p6746_p5, %p6734_p3 }
  0x63   : > { %p6754_p9 = scmp.lt.s32.totalorder %s6752_s10, %s6745_s4 }
  0x64   : > { %p6749_p7 = pneg %p6748_p11 }
  0x65   : > { %p6755_p10 = por %p6754_p9, %p6753_p1 }
  0x67   : > { %p6756_p13 = pnand %p6755_p10, %p6749_p7 }
  0x69   : > { %6759 = shalt.err (!%p6756_p13)
}
  0x6a   : > { %s8261_s2 = smov 4   ;;  %s8262_s9 = smov 64  }
  0x6b   : > { %6391 = dma.hbm_to_vmem [thread:$0]  (!%p7124_p2), %s390_s13, 1536, %s392_s6, %s378_s29, %s8262_s9, %s8262_s9, %s8261_s2  }
  0x6c   : > { %s401_s17 = sand.u32 1, %s6900_s20   ;;  %s6348_s26 = smul.u32 24, %s7113_s11 }
  0x6d   : > { %s6349_s28 = smul.u32 6, %s6892_s18  ;;  %s402_s15 = scalar_lea.sflag [#allocation8], %s401_s17 }
  0x6e   : > { %s6350_s30 = smul.u32 12, %s6896_s19  ;;  %s405_s22 = scalar_lea.vmem [#allocation7], %s6348_s26 }
  0x6f   : > { %s414_s4 = sshll.u32 %s405_s22, 4  ;;  %s6909_s6 = smov [#allocation7]   ;;  %s415_s4 = int_to_ptr.vmem [resolvable:$true] %s414_s4 }
  0x70   : > { %s411_s27 = sadd.s32 %s6350_s30, %s6349_s28  ;;  %s6773_s7 = scalar_lea.vmem %s415_s4, 384 }
  0x71   : > { %s5320_s12 = sshll.u32 %s411_s27, 6  ;;  %p6774_p0 = scmp.ne.s32.totalorder %s415_s4, %s6773_s7 }
  0x72   : > { %s413_s24 = scalar_lea.hbm %s8183_s1, %s5320_s12  ;;  %s6778_s11 = sshll.u32 %s6909_s6, 4  ;;  %s6779_s11 = int_to_ptr.vmem [resolvable:$false] %s6778_s11 }
  0x73   : > { %p6776_p5 = pnand %p6774_p0, %p6734_p3  ;;  %s6780_s13 = scalar_lea.vmem %s6779_s11, 768 }
  0x74   : > { %p6781_p7 = scmp.lt.s32.totalorder %s415_s4, %s6779_s11  ;;  %p6782_p1 = scmp.lt.s32.totalorder %s6780_s13, %s6773_s7 }
  0x75   : > { %p6777_p11 = pneg %p6776_p5 }
  0x76   : > { %p6783_p9 = por %p6782_p1, %p6781_p7 }
  0x78   : > { %p6784_p10 = pnand %p6783_p9, %p6777_p11 }
  0x7a   : > { %6787 = shalt.err (!%p6784_p10)
}
  0x7b   : > { %6394 = dma.hbm_to_vmem [thread:$0]  (!%p7124_p2), %s413_s24, 384, %s415_s4, %s402_s15, %s8262_s9, %s8262_s9, %s8261_s2  }
  0x7c   : > { %426 = sbr.rel (%p7032_p8) target bundleno = 1086 (0x43e), region = 60 }
  0x81   : > { %s7163_s0 = sand.u32 1, %s6876_s14  }
  0x82   : > { %s6351_s29 = smul.u32 96, %s7163_s0  ;;  %s429_s7 = scalar_lea.sflag [#allocation5], %s7163_s0 }
  0x84   : > { %s7167_s17 = scalar_lea.vmem [#allocation4], %s6351_s29 }
  0x85   : > { %6847 = dma.done.wait (%p7022_p4), %s429_s7, 1536  }
  0x86   : > { %6849 = vsyncadd (%p7022_p4), %s429_s7, 4294965760  ;;  %s437_s8 = sand.u32 1, %s7013_s21   ;;  %s6352_s15 = smul.u32 24, %s7163_s0 }
  0x87   : > { %s438_s25 = scalar_lea.sflag [#allocation8], %s437_s8 }
  0x88   : > { %s7175_s24 = scalar_lea.vmem [#allocation7], %s6352_s15 }
  0x89   : > { %6851 = dma.done.wait (%p7022_p4), %s438_s25, 384  }
  0x8a   : > { %6853 = vsyncadd (%p7022_p4), %s438_s25, 4294966912  ;;  %p8263_p8 = scmp.eq.s32.totalorder %s7013_s21, 0 }
  0x8c   : > { %6855 = dma.done.wait (%p8263_p8), [#allocation8], 1024   ;;  %p8264_p2 = pmov %p8263_p8 }
  0x8e   : > { %6857 = vsyncadd (%p8264_p2), [#allocation8], 4294966272  ;;  %p8265_p3 = pmov %p8264_p2 }
  0x8f   : > { %p8266_p13 = pmov %p8264_p2 }
  0x90   : > { %6859 = dma.done.wait (%p8265_p3), [#allocation11], 10240  }
  0x91   : > { %6861 = vsyncadd (%p8266_p13), [#allocation11], 4294957056  ;;  %p8267_p0 = pmov %p8264_p2 }
  0x93   : > { %6863 = dma.done.wait (%p8267_p0), [#allocation14], 1024   ;;  %p8268_p5 = pmov %p8267_p0 }
  0x94   : > { %s5326_s23 = sshll.u32 %s7163_s0, 7  ;;  %v6910_v0 = vmov 0.0   ;;  %vm6911_vm0 = vmmov 0   ;;  %v6485_v1 = vld [vmem:[#allocation9 + $0x38] sm:$0xff]   ;;  %v6486_v2 = vld [vmem:[#allocation9 + $0x30] sm:$0xff]   ;;  %v6487_v3 = vld [vmem:[#allocation9 + $0x28] sm:$0xff]  }
  0x95   : > { %6865 = vsyncadd (%p8268_p5), [#allocation14], 4294966272  ;;  %5949 = vmatprep.subr.bf16.mxu1 %v6910_v0  ;;  %5965 = vmatprep.mubr.msk.bf16.mxu1 %vm6911_vm0, %v6910_v0  ;;  %v6491_v4 = vld [vmem:[#allocation9 + $0x38] sm:$0xff]   ;;  %v6488_v5 = vld [vmem:[#allocation9 + $0x20] sm:$0xff]   ;;  %vm1132_vm1 = vcmask 1040384   ;;  %s7395_s9 = scalar_lea.vmem [#allocation15], %s5326_s23 }
  0x96   : > { %5909 = vmatprep.subr.bf16.mxu0 %v6485_v1  ;;  %5950 = vmatpush3.bf16.msra.mxu1 %v6491_v4  ;;  %v6493_v6 = vld [vmem:[#allocation9 + $0x30] sm:$0xff]   ;;  %v6489_v7 = vld [vmem:[#allocation9 + $0x18] sm:$0xff]   ;;  %v6495_v10 = vld [vmem:[#allocation9 + $0x28] sm:$0xff]   ;;  %vm1133_vm2 = vsmask.f32 256  ;;  %p5390_p4 = scmp.ne.s32.totalorder %s6884_s16, 0 }
  0x97   : > { %5910 = vmatpush3.bf16.msra.mxu0 %v6485_v1  ;;  %5951 = vmatprep.subr.bf16.mxu1 %v6910_v0  ;;  %v7199_v8 = vld [vmem:[%s7167_s17] sm:$0xf]  ;;  %v7202_v9 = vld [vmem:[%s7167_s17 + $0x4] sm:$0xf]  ;;  %v6498_v13 = vld [vmem:[#allocation9 + $0x20] sm:$0xff]  }
  0x98   : > { %5911 = vmatprep.subr.bf16.mxu0 %v6486_v2  ;;  %8269 = vst [vmem:[#allocation30_spill] sm:$0xff] %v7199_v8  ;;  %8270 = vst [vmem:[#allocation31_spill] sm:$0xff] %v7202_v9  ;;  %v5328_v11 = vcombine.low %v7199_v8, %v7202_v9  ;;  %v6490_v12 = vld [vmem:[#allocation9 + $0x10] sm:$0xff]   ;;  %v6492_v14 = vld [vmem:[#allocation9 + $0x8] sm:$0xff]   ;;  %vm1165_vm4 = vsmask.f32 7938 }
  0x99   : > { %v6499_v15 = vld [vmem:[#allocation9 + $0x18] sm:$0xff]   ;;  %v6494_v16 = vld [vmem:[#allocation9] sm:$0xff]   ;;  %v6502_v17 = vld [vmem:[#allocation9 + $0x10] sm:$0xff]  }
  0x9a   : > { %5952 = vmatpush3.bf16.msra.mxu1 %v6493_v6  ;;  %5925 = vmatprep.mubr.bf16.mxu0 %v5328_v11  ;;  %v7211_v18 = vld [vmem:[%s7167_s17 + $0x8] sm:$0xf]  ;;  %v7214_v19 = vld [vmem:[%s7167_s17 + $0xc] sm:$0xf]  ;;  %v7217_v20 = vld [vmem:[%s7167_s17 + $0x10] sm:$0xf] }
  0x9b   : > { %5912 = vmatpush3.bf16.msra.mxu0 %v6486_v2  ;;  %5953 = vmatprep.subr.bf16.mxu1 %v6910_v0  ;;  %8271 = vst [vmem:[#allocation32_spill] sm:$0xff] %v7211_v18  ;;  %8272 = vst [vmem:[#allocation33_spill] sm:$0xff] %v7214_v19  ;;  %v7220_v21 = vld [vmem:[%s7167_s17 + $0x14] sm:$0xf]  ;;  %v6503_v22 = vld [vmem:[#allocation9 + $0x8] sm:$0xff]   ;;  %v5329_v23 = vcombine.low %v7211_v18, %v7214_v19 }
  0x9c   : > { %5913 = vmatprep.subr.bf16.mxu0 %v6487_v3  ;;  %8273 = vst [vmem:[#allocation34_spill] sm:$0xff] %v7217_v20  ;;  %8274 = vst [vmem:[#allocation35_spill] sm:$0xff] %v7220_v21  ;;  %v5330_v24 = vcombine.low %v7217_v20, %v7220_v21  ;;  %v6506_v25 = vld [vmem:[#allocation9] sm:$0xff]   ;;  %v7229_v26 = vld [vmem:[%s7167_s17 + $0x18] sm:$0xf] }
  0x9d   : > { %v7232_v27 = vld [vmem:[%s7167_s17 + $0x1c] sm:$0xf]  ;;  %v7236_v29 = vld [vmem:[%s7167_s17 + $0x20] sm:$0xf]  ;;  %v7239_v30 = vld [vmem:[%s7167_s17 + $0x24] sm:$0xf] }
  0x9e   : > { %5954 = vmatpush3.bf16.msra.mxu1 %v6495_v10  ;;  %v6507_v28 = vld [vmem:[%s7175_s24] sm:$0xff]   ;;  %v5331_v31 = vcombine.low %v7229_v26, %v7232_v27  ;;  %v5332_v32 = vcombine.low %v7236_v29, %v7239_v30  ;;  %v7248_v33 = vld [vmem:[%s7167_s17 + $0x28] sm:$0xf]  ;;  %v7251_v34 = vld [vmem:[%s7167_s17 + $0x2c] sm:$0xf] }
  0x9f   : > { %5914 = vmatpush3.bf16.msra.mxu0 %v6487_v3  ;;  %5955 = vmatprep.subr.bf16.mxu1 %v6910_v0  ;;  %v6510_v35 = vld [vmem:[%s7175_s24 + $0x8] sm:$0xff]   ;;  %v7255_v36 = vld [vmem:[%s7167_s17 + $0x30] sm:$0xf]  ;;  %v7258_v37 = vld [vmem:[%s7167_s17 + $0x34] sm:$0xf]  ;;  %v5333_v38 = vcombine.low %v7248_v33, %v7251_v34 }
  0xa0   : > { %5915 = vmatprep.subr.bf16.mxu0 %v6488_v5  ;;  %v5334_v39 = vcombine.low %v7255_v36, %v7258_v37  ;;  %v7267_v40 = vld [vmem:[%s7167_s17 + $0x38] sm:$0xf]  ;;  %v7270_v41 = vld [vmem:[%s7167_s17 + $0x3c] sm:$0xf]  ;;  %v6513_v42 = vld [vmem:[%s7175_s24 + $0x10] sm:$0xff]  }
  0xa1   : > { %v7274_v43 = vld [vmem:[%s7167_s17 + $0x40] sm:$0xf]  ;;  %v7277_v44 = vld [vmem:[%s7167_s17 + $0x44] sm:$0xf]  ;;  %v5335_v45 = vcombine.low %v7267_v40, %v7270_v41  ;;  %v7284_v47 = vld [vmem:[%s7167_s17 + $0x48] sm:$0xf] }
  0xa2   : > { %5956 = vmatpush3.bf16.msra.mxu1 %v6498_v13  ;;  %v5336_v46 = vcombine.low %v7274_v43, %v7277_v44  ;;  %v7287_v48 = vld [vmem:[%s7167_s17 + $0x4c] sm:$0xf]  ;;  %v7290_v49 = vld [vmem:[%s7167_s17 + $0x50] sm:$0xf]  ;;  %v7293_v50 = vld [vmem:[%s7167_s17 + $0x54] sm:$0xf] }
  0xa3   : > { %5916 = vmatpush3.bf16.msra.mxu0 %v6488_v5  ;;  %5957 = vmatprep.subr.bf16.mxu1 %v6910_v0  ;;  %v5337_v51 = vcombine.low %v7284_v47, %v7287_v48  ;;  %v5338_v52 = vcombine.low %v7290_v49, %v7293_v50  ;;  %v7300_v53 = vld [vmem:[%s7167_s17 + $0x58] sm:$0xf]  ;;  %v7303_v54 = vld [vmem:[%s7167_s17 + $0x5c] sm:$0xf]  ;;  %v7310_v57 = vld [vmem:[%s8185_s3] ss:$0 sm:$0xff] }
  0xa4   : > { %5917 = vmatprep.subr.bf16.mxu0 %v6489_v7  ;;  %v5339_v55 = vcombine.low %v7300_v53, %v7303_v54  ;;  %vm7321_vm3 = vmand %vm1132_vm1, %vm1133_vm2 }
  0xa5   : > { %vm7332_vm5 = vmand %vm1132_vm1, %vm1165_vm4 }
  0xa6   : > { %5958 = vmatpush3.bf16.msra.mxu1 %v6499_v15 }
  0xa7   : > { %5918 = vmatpush3.bf16.msra.mxu0 %v6489_v7  ;;  %5959 = vmatprep.subr.bf16.mxu1 %v6910_v0 }
  0xa8   : > { %5919 = vmatprep.subr.bf16.mxu0 %v6490_v12 }
  0xaa   : > { %5960 = vmatpush3.bf16.msra.mxu1 %v6502_v17 }
  0xab   : > { %5920 = vmatpush3.bf16.msra.mxu0 %v6490_v12  ;;  %5961 = vmatprep.subr.bf16.mxu1 %v6910_v0 }
  0xac   : > { %5921 = vmatprep.subr.bf16.mxu0 %v6492_v14 }
  0xae   : > { %5962 = vmatpush3.bf16.msra.mxu1 %v6503_v22 }
  0xaf   : > { %5922 = vmatpush3.bf16.msra.mxu0 %v6492_v14  ;;  %5963 = vmatprep.subr.bf16.mxu1 %v6910_v0 }
  0xb0   : > { %5923 = vmatprep.subr.bf16.mxu0 %v6494_v16 }
  0xb2   : > { %5964 = vmatpush3.bf16.msra.mxu1 %v6506_v25 }
  0xb3   : > { %5924 = vmatpush3.bf16.msra.mxu0 %v6494_v16 }
  0xb5   : > { %5966 = vmatmul.mubr.bf16.vlgmr.msra.gmra.mxu1 %v6507_v28 }
  0xb6   : > { %5926 = vmatmul.mubr.bf16.vlgmr.msra.gmra.mxu0 %v5329_v23  ;;  %5969 = vmatprep.mubr.msk.bf16.mxu1 %vm6911_vm0, %v6910_v0 }
  0xb7   : > { %5929 = vmatprep.mubr.bf16.mxu0 %v5330_v24 }
  0xbd   : > { %5970 = vmatmul.mubr.bf16.gmra.mxu1 %v6510_v35 }
  0xbe   : > { %5930 = vmatmul.mubr.bf16.gmra.mxu0 %v5331_v31  ;;  %5973 = vmatprep.mubr.msk.bf16.mxu1 %vm6911_vm0, %v6910_v0 }
  0xbf   : > { %5933 = vmatprep.mubr.bf16.mxu0 %v5332_v32 }
  0xc5   : > { %5974 = vmatmul.mubr.bf16.gmra.mxu1 %v6513_v42 }
  0xc6   : > { %5934 = vmatmul.mubr.bf16.gmra.mxu0 %v5333_v38 }
  0xc7   : > { %5937 = vmatprep.mubr.bf16.mxu0 %v5334_v39 }
  0xce   : > { %5938 = vmatmul.mubr.bf16.gmra.mxu0 %v5335_v45 }
  0xcf   : > { %5941 = vmatprep.mubr.bf16.mxu0 %v5336_v46 }
  0xd6   : > { %5942 = vmatmul.mubr.bf16.gmra.mxu0 %v5337_v51 }
  0xd7   : > { %5945 = vmatprep.mubr.bf16.mxu0 %v5338_v52 }
  0xde   : > { %5946 = vmatmul.mubr.bf16.gmra.mxu0 %v5339_v55 }
 0x175   : > { %v1072_v63 = vpop.f32.mrf.mxu1 }
 0x176   : > { %v5927_v56 = vpop.f32.mrf.mxu0  ;;  %v1073_v1 = vadd.f32 %v7310_v57, %v1072_v63 }
 0x177   : > { %v712_v61 = vadd.f32 %v5927_v56, %v7310_v57  ;;  %v5967_v4 = vpop.f32.mrf.mxu1 }
 0x178   : > { %v703_v58 = vpop.f32.mrf.mxu0  ;;  %v1095_v13 = vmax.f32 %v1073_v1, 0.0 }
 0x179   : > { %v704_v59 = vadd.f32 %v7310_v57, %v703_v58  ;;  %v800_v6 = vmax.f32 %v712_v61, 0.0  ;;  %v1075_v11 = vpop.f32.mrf.mxu1 }
 0x17a   : > { %v5928_v60 = vpop.f32.mrf.mxu0  ;;  %v1076_v14 = vadd.f32 %v7310_v57, %v1075_v11 }
 0x17b   : > { %v798_v62 = vmax.f32 %v704_v59, 0.0  ;;  %v715_v7 = vadd.f32 %v5928_v60, %v7310_v57  ;;  %v5968_v17 = vpop.f32.mrf.mxu1 }
 0x17c   : > { %v706_v0 = vpop.f32.mrf.mxu0  ;;  %v1096_v23 = vmax.f32 %v1076_v14, 0.0 }
 0x17d   : > { %v5594_v2 = vpack.c.bf16 %v798_v62, %v798_v62  ;;  %v707_v3 = vadd.f32 %v7310_v57, %v706_v0  ;;  %v801_v24 = vmax.f32 %v715_v7, 0.0  ;;  %v1080_v31 = vpop.f32.mrf.mxu1 }
 0x17e   : > { %v5931_v5 = vpop.f32.mrf.mxu0  ;;  %v5683_v38 = vpack.c.bf16 %v1096_v23, %v1095_v13  ;;  %v1081_v39 = vadd.f32 %v7310_v57, %v1080_v31 }
 0x17f   : > { %919 = vst [vmem:[#allocation2 + $0xc] sm:$0xf] %v5594_v2  ;;  %v799_v10 = vmax.f32 %v707_v3, 0.0  ;;  %v728_v25 = vadd.f32 %v5931_v5, %v7310_v57  ;;  %v5971_v46 = vpop.f32.mrf.mxu1 }
 0x180   : > { %v719_v12 = vpop.f32.mrf.mxu0  ;;  %5684 = vst [vmem:[#allocation2] sm:$0xff] %v5683_v38   ;;  %v1097_v55 = vmax.f32 %v1081_v39, 0.0 }
 0x181   : > { %v5628_v15 = vpack.c.bf16 %v800_v6, %v799_v10  ;;  %v720_v16 = vadd.f32 %v7310_v57, %v719_v12  ;;  %v804_v58 = vmax.f32 %v728_v25, 0.0  ;;  %v1083_v61 = vpop.f32.mrf.mxu1 }
 0x182   : > { %v5932_v22 = vpop.f32.mrf.mxu0  ;;  %v5620_v0 = vpack.c.bf16 %v1097_v55, %v1097_v55  ;;  %v1084_v1 = vadd.f32 %v7310_v57, %v1083_v61 }
 0x183   : > { %5690 = vst [vmem:[#allocation2 + $0x10] sm:$0xff] %v5628_v15   ;;  %v802_v28 = vmax.f32 %v720_v16, 0.0  ;;  %v731_v59 = vadd.f32 %v5932_v22, %v7310_v57  ;;  %v5972_v4 = vpop.f32.mrf.mxu1 }
 0x184   : > { %v722_v35 = vpop.f32.mrf.mxu0  ;;  %1127 = vst [vmem:[#allocation2 + $0x8] sm:$0xf] %v5620_v0  ;;  %v1098_v7 = vmax.f32 %v1084_v1, 0.0 }
 0x185   : > { %v5633_v42 = vpack.c.bf16 %v802_v28, %v801_v24  ;;  %v723_v45 = vadd.f32 %v7310_v57, %v722_v35  ;;  %v805_v11 = vmax.f32 %v731_v59, 0.0  ;;  %v1088_v14 = vpop.f32.mrf.mxu1 }
 0x186   : > { %v1138_v51 = vld [vmem:[#allocation2 + $0xc] sm:$0x1]  ;;  %v5935_v52 = vpop.f32.mrf.mxu0  ;;  %v5621_v16 = vpack.c.bf16 %v1098_v7, %v1098_v7  ;;  %v1089_v17 = vadd.f32 %v7310_v57, %v1088_v14 }
 0x187   : > { %v1139_v56 = vsel %vm7321_vm3, 0, %v1138_v51  ;;  %5691 = vst [vmem:[#allocation2 + $0x18] sm:$0xff] %v5633_v42   ;;  %v803_v60 = vmax.f32 %v723_v45, 0.0  ;;  %v744_v12 = vadd.f32 %v5935_v52, %v7310_v57  ;;  %v1135_v25 = vld [vmem:[#allocation2] sm:$0x1]  ;;  %v5975_v28 = vpop.f32.mrf.mxu1 }
 0x188   : > { %1140 = vst [vmem:[#allocation2 + $0xc] sm:$0x1] %v1139_v56  ;;  %v735_v63 = vpop.f32.mrf.mxu0  ;;  %v1136_v38 = vsel %vm7321_vm3, 0, %v1135_v25  ;;  %1129 = vst [vmem:[#allocation2 + $0x6c] sm:$0xf] %v5621_v16  ;;  %v1099_v52 = vmax.f32 %v1089_v17, 0.0 }
 0x189   : > { %v5638_v2 = vpack.c.bf16 %v804_v58, %v803_v60  ;;  %v736_v3 = vadd.f32 %v7310_v57, %v735_v63  ;;  %v808_v42 = vmax.f32 %v744_v12, 0.0  ;;  %1137 = vst [vmem:[#allocation2] sm:$0x1] %v1136_v38  ;;  %v1091_v46 = vpop.f32.mrf.mxu1 }
 0x18a   : > { %v1170_v5 = vld [vmem:[#allocation2 + $0x14] sm:$0x1]  ;;  %v5936_v6 = vpop.f32.mrf.mxu0  ;;  %v1092_v55 = vadd.f32 %v7310_v57, %v1091_v46 }
 0x18b   : > { %v1171_v10 = vsel %vm7332_vm5, 0, %v1170_v5  ;;  %5692 = vst [vmem:[#allocation2 + $0x20] sm:$0xff] %v5638_v2   ;;  %v806_v13 = vmax.f32 %v736_v3, 0.0  ;;  %v747_v23 = vadd.f32 %v5936_v6, %v7310_v57  ;;  %v1167_v60 = vld [vmem:[#allocation2 + $0x8] sm:$0x1]  ;;  %v5976_v61 = vpop.f32.mrf.mxu1 }
 0x18c   : > { %1172 = vst [vmem:[#allocation2 + $0x14] sm:$0x1] %v1171_v10  ;;  %v738_v15 = vpop.f32.mrf.mxu0  ;;  %v1168_v2 = vsel %vm7332_vm5, 0, %v1167_v60  ;;  %v1100_v3 = vmax.f32 %v1092_v55, 0.0 }
 0x18d   : > { %v5643_v22 = vpack.c.bf16 %v806_v13, %v805_v11  ;;  %v739_v24 = vadd.f32 %v7310_v57, %v738_v15  ;;  %v809_v56 = vmax.f32 %v747_v23, 0.0  ;;  %1169 = vst [vmem:[#allocation2 + $0x8] sm:$0x1] %v1168_v2 }
 0x18e   : > { %v1141_v31 = vld [vmem:[#allocation2 + $0x18] sm:$0x1]  ;;  %v5939_v35 = vpop.f32.mrf.mxu0  ;;  %v5688_v11 = vpack.c.bf16 %v1100_v3, %v1099_v52 }
 0x18f   : > { %v1142_v39 = vsel %vm7321_vm3, 0, %v1141_v31  ;;  %5693 = vst [vmem:[#allocation2 + $0x28] sm:$0xff] %v5643_v22   ;;  %v807_v45 = vmax.f32 %v739_v24, 0.0  ;;  %v760_v6 = vadd.f32 %v5939_v35, %v7310_v57  ;;  %v1162_v14 = vld [vmem:[#allocation2 + $0x6c] sm:$0x1] }
 0x190   : > { %1143 = vst [vmem:[#allocation2 + $0x18] sm:$0x1] %v1142_v39  ;;  %v751_v51 = vpop.f32.mrf.mxu0  ;;  %v1163_v17 = vsel %vm7321_vm3, 0, %v1162_v14  ;;  %5701 = vst [vmem:[#allocation2 + $0x70] sm:$0xff] %v5688_v11  }
 0x191   : > { %v5648_v58 = vpack.c.bf16 %v808_v42, %v807_v45  ;;  %v752_v59 = vadd.f32 %v7310_v57, %v751_v51  ;;  %v812_v23 = vmax.f32 %v760_v6, 0.0  ;;  %1164 = vst [vmem:[#allocation2 + $0x6c] sm:$0x1] %v1163_v17 }
 0x192   : > { %v1144_v63 = vld [vmem:[#allocation2 + $0x24] sm:$0x1]  ;;  %v1173_v0 = vld [vmem:[#allocation2 + $0x20] sm:$0x1]  ;;  %v5940_v1 = vpop.f32.mrf.mxu0 }
 0x193   : > { %v1145_v4 = vsel %vm7321_vm3, 0, %v1144_v63  ;;  %v1174_v5 = vsel %vm7332_vm5, 0, %v1173_v0  ;;  %5694 = vst [vmem:[#allocation2 + $0x30] sm:$0xff] %v5648_v58   ;;  %v810_v7 = vmax.f32 %v752_v59, 0.0  ;;  %v763_v24 = vadd.f32 %v5940_v1, %v7310_v57 }
 0x194   : > { %1146 = vst [vmem:[#allocation2 + $0x24] sm:$0x1] %v1145_v4  ;;  %1175 = vst [vmem:[#allocation2 + $0x20] sm:$0x1] %v1174_v5  ;;  %v754_v10 = vpop.f32.mrf.mxu0 }
 0x195   : > { %v5653_v12 = vpack.c.bf16 %v810_v7, %v809_v56  ;;  %v755_v13 = vadd.f32 %v7310_v57, %v754_v10  ;;  %v813_v45 = vmax.f32 %v763_v24, 0.0 }
 0x196   : > { %v1176_v15 = vld [vmem:[#allocation2 + $0x2c] sm:$0x1]  ;;  %v5943_v16 = vpop.f32.mrf.mxu0 }
 0x197   : > { %v1177_v22 = vsel %vm7332_vm5, 0, %v1176_v15  ;;  %5695 = vst [vmem:[#allocation2 + $0x38] sm:$0xff] %v5653_v12   ;;  %v811_v25 = vmax.f32 %v755_v13, 0.0  ;;  %v776_v46 = vadd.f32 %v5943_v16, %v7310_v57  ;;  %v1194_v58 = vld [vmem:[#allocation2 + $0x74] sm:$0x1] }
 0x198   : > { %1178 = vst [vmem:[#allocation2 + $0x2c] sm:$0x1] %v1177_v22  ;;  %v767_v28 = vpop.f32.mrf.mxu0  ;;  %v1195_v0 = vsel %vm7332_vm5, 0, %v1194_v58 }
 0x199   : > { %v5658_v31 = vpack.c.bf16 %v812_v23, %v811_v25  ;;  %v768_v35 = vadd.f32 %v7310_v57, %v767_v28  ;;  %v816_v3 = vmax.f32 %v776_v46, 0.0  ;;  %1196 = vst [vmem:[#allocation2 + $0x74] sm:$0x1] %v1195_v0 }
 0x19a   : > { %v1147_v38 = vld [vmem:[#allocation2 + $0x30] sm:$0x1]  ;;  %v5944_v39 = vpop.f32.mrf.mxu0 }
 0x19b   : > { %v1148_v42 = vsel %vm7321_vm3, 0, %v1147_v38  ;;  %5696 = vst [vmem:[#allocation2 + $0x40] sm:$0xff] %v5658_v31   ;;  %v814_v51 = vmax.f32 %v768_v35, 0.0  ;;  %v779_v61 = vadd.f32 %v5944_v39, %v7310_v57 }
 0x19c   : > { %1149 = vst [vmem:[#allocation2 + $0x30] sm:$0x1] %v1148_v42  ;;  %v770_v52 = vpop.f32.mrf.mxu0 }
 0x19d   : > { %v5663_v55 = vpack.c.bf16 %v814_v51, %v813_v45  ;;  %v771_v56 = vadd.f32 %v7310_v57, %v770_v52  ;;  %v817_v11 = vmax.f32 %v779_v61, 0.0 }
 0x19e   : > { %v1150_v59 = vld [vmem:[#allocation2 + $0x3c] sm:$0x1]  ;;  %v1179_v60 = vld [vmem:[#allocation2 + $0x38] sm:$0x1]  ;;  %v5947_v63 = vpop.f32.mrf.mxu0 }
 0x19f   : > { %v1151_v1 = vsel %vm7321_vm3, 0, %v1150_v59  ;;  %v1180_v2 = vsel %vm7332_vm5, 0, %v1179_v60  ;;  %5697 = vst [vmem:[#allocation2 + $0x48] sm:$0xff] %v5663_v55   ;;  %v815_v4 = vmax.f32 %v771_v56, 0.0  ;;  %v792_v14 = vadd.f32 %v5947_v63, %v7310_v57 }
 0x1a0   : > { %1152 = vst [vmem:[#allocation2 + $0x3c] sm:$0x1] %v1151_v1  ;;  %1181 = vst [vmem:[#allocation2 + $0x38] sm:$0x1] %v1180_v2  ;;  %v783_v5 = vpop.f32.mrf.mxu0 }
 0x1a1   : > { %v5668_v6 = vpack.c.bf16 %v816_v3, %v815_v4  ;;  %v784_v7 = vadd.f32 %v7310_v57, %v783_v5  ;;  %v820_v31 = vmax.f32 %v792_v14, 0.0 }
 0x1a2   : > { %v1182_v10 = vld [vmem:[#allocation2 + $0x44] sm:$0x1]  ;;  %v5948_v12 = vpop.f32.mrf.mxu0 }
 0x1a3   : > { %v1183_v13 = vsel %vm7332_vm5, 0, %v1182_v10  ;;  %5698 = vst [vmem:[#allocation2 + $0x50] sm:$0xff] %v5668_v6   ;;  %v818_v15 = vmax.f32 %v784_v7, 0.0  ;;  %v795_v16 = vadd.f32 %v5948_v12, %v7310_v57 }
 0x1a4   : > { %1184 = vst [vmem:[#allocation2 + $0x44] sm:$0x1] %v1183_v13  ;;  %v786_v17 = vpop.f32.mrf.mxu0 }
 0x1a5   : > { %v5673_v22 = vpack.c.bf16 %v818_v15, %v817_v11  ;;  %v821_v23 = vmax.f32 %v795_v16, 0.0  ;;  %v787_v24 = vadd.f32 %v7310_v57, %v786_v17 }
 0x1a6   : > { %v1153_v25 = vld [vmem:[#allocation2 + $0x48] sm:$0x1] }
 0x1a7   : > { %v1154_v28 = vsel %vm7321_vm3, 0, %v1153_v25  ;;  %5699 = vst [vmem:[#allocation2 + $0x58] sm:$0xff] %v5673_v22   ;;  %v5617_v35 = vpack.c.bf16 %v821_v23, %v821_v23  ;;  %v819_v38 = vmax.f32 %v787_v24, 0.0 }
 0x1a8   : > { %1155 = vst [vmem:[#allocation2 + $0x48] sm:$0x1] %v1154_v28 }
 0x1a9   : > { %942 = vst [vmem:[#allocation2 + $0x68] sm:$0xf] %v5617_v35  ;;  %v5678_v39 = vpack.c.bf16 %v820_v31, %v819_v38 }
 0x1aa   : > { %v1156_v42 = vld [vmem:[#allocation2 + $0x54] sm:$0x1]  ;;  %v1185_v45 = vld [vmem:[#allocation2 + $0x50] sm:$0x1] }
 0x1ab   : > { %v1157_v46 = vsel %vm7321_vm3, 0, %v1156_v42  ;;  %v1186_v57 = vsel %vm7332_vm5, 0, %v1185_v45  ;;  %5700 = vst [vmem:[#allocation2 + $0x60] sm:$0xff] %v5678_v39  }
 0x1ac   : > { %1158 = vst [vmem:[#allocation2 + $0x54] sm:$0x1] %v1157_v46  ;;  %1187 = vst [vmem:[#allocation2 + $0x50] sm:$0x1] %v1186_v57 }
 0x1ae   : > { %v1188_v51 = vld [vmem:[#allocation2 + $0x5c] sm:$0x1] }
 0x1af   : > { %v1189_v52 = vsel %vm7332_vm5, 0, %v1188_v51 }
 0x1b0   : > { %1190 = vst [vmem:[#allocation2 + $0x5c] sm:$0x1] %v1189_v52  ;;  %v1191_v55 = vld [vmem:[#allocation2 + $0x68] sm:$0x1]  ;;  %1200 = sbr.rel (%p5390_p4) target bundleno = 440 (0x1b8), region = 88 }
 0x1b1   : > { %v1192_v56 = vsel %vm7332_vm5, 0, %v1191_v55 }
 0x1b2   : > { %1193 = vst [vmem:[#allocation2 + $0x68] sm:$0x1] %v1192_v56  ;;  %v1159_v58 = vld [vmem:[#allocation2 + $0x60] sm:$0x1] }
 0x1b3   : > { %v1160_v59 = vsel %vm7321_vm3, 0, %v1159_v58 }
 0x1b4   : > { %1161 = vst [vmem:[#allocation2 + $0x60] sm:$0x1] %v1160_v59 }
 0x1b5   : > { %v6912_v60 = vmov 0  }
 0x1b6   : > { %1201 = vst [vmem:[#allocation2] sm:$0xf] %v6912_v60  ;;  %1202 = vst [vmem:[#allocation2 + $0x4] sm:$0xf] %v6912_v60 }
 0x1b7   : > { %1203 = vst [vmem:[#allocation2 + $0x8] sm:$0xf] %v6912_v60 }
 0x1b8 PF: > { %p5391_p11 = scmp.ne.s32.totalorder %s6884_s16, 1 }
 0x1ba   : > { %1207 = sbr.rel (%p5391_p11) target bundleno = 450 (0x1c2), region = 92 }
 0x1bf   : > { %v6913_v62 = vmov 0  }
 0x1c0   : > { %1208 = vst [vmem:[#allocation2 + $0x6c] sm:$0xf] %v6913_v62  ;;  %1209 = vst [vmem:[#allocation2 + $0x70] sm:$0xf] %v6913_v62 }
 0x1c1   : > { %1210 = vst [vmem:[#allocation2 + $0x74] sm:$0xf] %v6913_v62 }
 0x1c2 PF: > { %v6516_v32 = vld [vmem:[#allocation10 + $0x38] sm:$0xff]   ;;  %v6518_v63 = vld [vmem:[#allocation10 + $0x30] sm:$0xff]   ;;  %v6520_v1 = vld [vmem:[#allocation10 + $0x28] sm:$0xff]   ;;  %vm1547_vm6 = vsmask.f32 3328  ;;  %v8279_v60 = vmov 0 }
 0x1c3   : > { %v6517_v61 = vld [vmem:[#allocation10 + $0x78] sm:$0xff]   ;;  %5977 = vmatprep.subr.bf16.mxu1 %v6516_v32  ;;  %v6519_v0 = vld [vmem:[#allocation10 + $0x70] sm:$0xff]   ;;  %v6521_v2 = vld [vmem:[#allocation10 + $0x68] sm:$0xff]   ;;  %vm1548_vm7 = vsmask.f32 7440  ;;  %vm2032_vm9 = vcmask 1042432  }
 0x1c4   : > { %5978 = vmatpush3.bf16.msra.mxu1 %v6516_v32  ;;  %6009 = vmatprep.subr.bf16.mxu0 %v6517_v61  ;;  %v6522_v3 = vld [vmem:[#allocation10 + $0x20] sm:$0xff]   ;;  %v6524_v5 = vld [vmem:[#allocation10 + $0x18] sm:$0xff]   ;;  %v6526_v7 = vld [vmem:[#allocation10 + $0x10] sm:$0xff]   ;;  %vm2033_vm10 = vcmask 1046532   ;;  %v4764_v20 = vshll.u32 %v7248_v33, 16  ;;  %s8369_s4 = sld [smem:[#allocation80_spill]] }
 0x1c5   : > { %6010 = vmatpush3.bf16.msra.mxu0 %v6517_v61  ;;  %5979 = vmatprep.subr.bf16.mxu1 %v6518_v63  ;;  %v6523_v4 = vld [vmem:[#allocation10 + $0x60] sm:$0xff]   ;;  %v6525_v6 = vld [vmem:[#allocation10 + $0x58] sm:$0xff]   ;;  %v6527_v11 = vld [vmem:[#allocation10 + $0x50] sm:$0xff]   ;;  %s8370_s10 = sld [smem:[#allocation82_spill]]  ;;  %s5624_s11 = sshll.u32 %s6884_s16, 4 }
 0x1c6   : > { %6011 = vmatprep.subr.bf16.mxu0 %v6519_v0  ;;  %v6532_v10 = vld [vmem:[#allocation2] sm:$0xff]   ;;  %v6528_v12 = vld [vmem:[#allocation10 + $0x8] sm:$0xff]   ;;  %v1509_v15 = vld [vmem:[#allocation2 + $0x8] sm:$0x1]  ;;  %s8371_s6 = sld [smem:[#allocation24_spill]]  ;;  %s5155_s7 = sshll.u32 %s7395_s9, 4  ;;  %s8122_s7 = int_to_ptr.vmem [resolvable:$true] %s5155_s7 }
 0x1c7   : > { %5993 = vmatprep.mubr.bf16.mxu1 %v6532_v10  ;;  %v1507_v13 = vld [vmem:[#allocation2] sm:$0xf]  ;;  %v1508_v14 = vld [vmem:[#allocation2 + $0x4] sm:$0xf]  ;;  %v6529_v22 = vld [vmem:[#allocation10 + $0x48] sm:$0xff]   ;;  %v1570_v25 = vshll.u32 %v1509_v15, 16 }
 0x1c8   : > { %5980 = vmatpush3.bf16.msra.mxu1 %v6518_v63  ;;  %v1551_v16 = vshrl.u32 %v1507_v13, 16  ;;  %v1554_v17 = vshll.u32 %v1507_v13, 16  ;;  %v1560_v23 = vshll.u32 %v1508_v14, 16  ;;  %v1564_v24 = vshrl.u32 %v1508_v14, 16  ;;  %v1510_v28 = vld [vmem:[#allocation2 + $0xc] sm:$0xf]  ;;  %vm7401_vm8 = vmor %vm1547_vm6, %vm1548_vm7 }
 0x1c9   : > { %6012 = vmatpush3.bf16.msra.mxu0 %v6519_v0  ;;  %5981 = vmatprep.subr.bf16.mxu1 %v6520_v1  ;;  %v6530_v31 = vld [vmem:[#allocation10] sm:$0xff]   ;;  %v1511_v39 = vld [vmem:[#allocation2 + $0x10] sm:$0xf]  ;;  %v1512_v42 = vld [vmem:[#allocation2 + $0x14] sm:$0x1]  ;;  %v1572_v57 = vrot.slane %v1570_v25, 5 }
 0x1ca   : > { %6013 = vmatprep.subr.bf16.mxu0 %v6521_v2  ;;  %v1553_v35 = vrot.slane %v1551_v16, 4  ;;  %v1556_v38 = vrot.slane %v1554_v17, 5  ;;  %v1562_v45 = vrot.slane %v1560_v23, 5  ;;  %v1566_v46 = vrot.slane %v1564_v24, 4  ;;  %v6531_v52 = vld [vmem:[#allocation10 + $0x40] sm:$0xff]   ;;  %v6535_v13 = vld [vmem:[#allocation10 + $0xf8] sm:$0xff]   ;;  %vm7433_vm11 = vmor %vm2032_vm9, %vm2033_vm10 }
 0x1cb   : > { %v1575_v51 = vshrl.u32 %v1510_v28, 16  ;;  %v1578_v56 = vshll.u32 %v1510_v28, 16  ;;  %v1584_v58 = vshll.u32 %v1511_v39, 16  ;;  %v1588_v59 = vshrl.u32 %v1511_v39, 16  ;;  %v6533_v14 = vld [vmem:[#allocation2 + $0xc] sm:$0xff]   ;;  %v6537_v23 = vld [vmem:[#allocation10 + $0xf0] sm:$0xff]  }
 0x1cc   : > { %5982 = vmatpush3.bf16.msra.mxu1 %v6520_v1  ;;  %v1557_v55 = vor.u32 %v1556_v38, %v1553_v35  ;;  %v8280_v60 = vsel %vm7401_vm8, 4294967295, %v8279_v60  ;;  %v1567_v62 = vor.u32 %v1566_v46, %v1562_v45  ;;  %v1594_v61 = vshll.u32 %v1512_v42, 16  ;;  %v1513_v24 = vld [vmem:[#allocation2 + $0x18] sm:$0xf]  ;;  %v1515_v25 = vld [vmem:[#allocation2 + $0x20] sm:$0x1] }
 0x1cd   : > { %6014 = vmatpush3.bf16.msra.mxu0 %v6521_v2  ;;  %5983 = vmatprep.subr.bf16.mxu1 %v6522_v3  ;;  %8281 = vst [vmem:[#allocation36_spill] sm:$0xff] %v8280_v60  ;;  %v1577_v32 = vrot.slane %v1575_v51, 4  ;;  %v1580_v0 = vrot.slane %v1578_v56, 5  ;;  %v1586_v1 = vrot.slane %v1584_v58, 5  ;;  %v1590_v2 = vrot.slane %v1588_v59, 4  ;;  %s5590_s13 = sshll.u32 %s8371_s6, 5 }
 0x1ce   : > { %6015 = vmatprep.subr.bf16.mxu0 %v6523_v4  ;;  %v1558_v63 = vrot.slane %v1557_v55, 4  ;;  %v1599_v38 = vshrl.u32 %v1513_v24, 16  ;;  %v1602_v39 = vshll.u32 %v1513_v24, 16  ;;  %v1516_v42 = vld [vmem:[#allocation2 + $0x24] sm:$0xf]  ;;  %v1618_v55 = vshll.u32 %v1515_v25, 16  ;;  %s5152_s16 = sadd.s32 %s5624_s11, %s5590_s13 }
 0x1cf   : > { %v1591_v10 = vor.u32 %v1590_v2, %v1586_v1  ;;  %v1518_v56 = vld [vmem:[#allocation2 + $0x2c] sm:$0x1]  ;;  %v6539_v2 = vld [vmem:[#allocation2 + $0x24] sm:$0xff]   ;;  %s5591_s17 = sshll.u32 %s5152_s16, 7  ;;  %s8373_s25 = sld [smem:[#allocation83_spill]] }
 0x1d0   : > { %5984 = vmatpush3.bf16.msra.mxu1 %v6522_v3  ;;  %v6534_v3 = vld [vmem:[#allocation10 + $0xb8] sm:$0xff]   ;;  %v1601_v58 = vrot.slane %v1599_v38, 4  ;;  %v1604_v59 = vrot.slane %v1602_v39, 5  ;;  %v6543_v25 = vld [vmem:[#allocation10 + $0xe0] sm:$0xff]   ;;  %s5139_s23 = scalar_lea.sflag [#allocation6], %s7163_s0  ;;  %s6788_s21 = scalar_lea.vmem %s8122_s7, 2048 }
 0x1d1   : > { %6016 = vmatpush3.bf16.msra.mxu0 %v6523_v4  ;;  %5985 = vmatprep.subr.bf16.mxu1 %v6524_v5  ;;  %v1568_v4 = vrot.slane %v1567_v62, 4  ;;  %v1592_v17 = vrot.slane %v1591_v10, 4  ;;  %v1623_v62 = vshrl.u32 %v1516_v42, 16  ;;  %v6541_v10 = vld [vmem:[#allocation10 + $0xe8] sm:$0xff]   ;;  %p6789_p7 = scmp.ne.s32.totalorder %s8122_s7, %s6788_s21  ;;  %s6914_s2 = smov [#allocation15]  }
 0x1d2   : > { %6017 = vmatprep.subr.bf16.mxu0 %v6525_v6  ;;  %s6792_s26 = sshll.u32 %s6914_s2, 4  ;;  %s6793_s26 = int_to_ptr.vmem [resolvable:$false] %s6792_s26 }
 0x1d3   : > { %p6790_p1 = pnand %p6789_p7, %p7107_p12  ;;  %s6794_s28 = scalar_lea.vmem %s6793_s26, 4096 }
 0x1d4   : > { %5986 = vmatpush3.bf16.msra.mxu1 %v6524_v5  ;;  %v1596_v5 = vrot.slane %v1594_v61, 5  ;;  %p6795_p10 = scmp.lt.s32.totalorder %s8122_s7, %s6793_s26  ;;  %p6796_p8 = scmp.lt.s32.totalorder %s6794_s28, %s6788_s21 }
 0x1d5   : > { %6018 = vmatpush3.bf16.msra.mxu0 %v6525_v6  ;;  %5987 = vmatprep.subr.bf16.mxu1 %v6526_v7  ;;  %v1563_v6 = vsel %vm7401_vm8, %v1558_v63, %v1562_v45  ;;  %v1517_v45 = vld [vmem:[#allocation2 + $0x28] sm:$0xf]  ;;  %s8128_s24 = scalar_lea.hbm %s8373_s25, %s5591_s17  ;;  %p6791_p9 = pneg %p6790_p1 }
 0x1d6   : > { %6019 = vmatprep.subr.bf16.mxu0 %v6527_v11  ;;  %v1597_v35 = vsel %vm7401_vm8, %v1592_v17, %v1596_v5  ;;  %v1625_v5 = vrot.slane %v1623_v62, 4  ;;  %p6797_p2 = por %p6796_p8, %p6795_p10 }
 0x1d8   : > { %5988 = vmatpush3.bf16.msra.mxu1 %v6526_v7  ;;  %v1581_v7 = vor.u32 %v1580_v0, %v1577_v32  ;;  %v1626_v32 = vshll.u32 %v1516_v42, 16  ;;  %v1620_v0 = vrot.slane %v1618_v55, 5  ;;  %p6798_p3 = pnand %p6797_p2, %p6791_p9 }
 0x1d9   : > { %6020 = vmatpush3.bf16.msra.mxu0 %v6527_v11  ;;  %5989 = vmatprep.subr.bf16.mxu1 %v6528_v12  ;;  %v1573_v11 = vsel %vm7401_vm8, %v1568_v4, %v1572_v57  ;;  %v1605_v4 = vor.u32 %v1604_v59, %v1601_v58 }
 0x1da   : > { %6021 = vmatprep.subr.bf16.mxu0 %v6529_v22  ;;  %v5409_v15 = vcombine.low %v1563_v6, %v1573_v11  ;;  %v1582_v16 = vrot.slane %v1581_v7, 4  ;;  %v1628_v6 = vrot.slane %v1626_v32, 5  ;;  %v1636_v7 = vshrl.u32 %v1517_v45, 16  ;;  %v1522_v32 = vld [vmem:[#allocation2 + $0x3c] sm:$0xf] }
 0x1dc   : > { %5990 = vmatpush3.bf16.msra.mxu1 %v6528_v12  ;;  %v6536_v12 = vld [vmem:[#allocation10 + $0xb0] sm:$0xff]   ;;  %v1587_v28 = vsel %vm7401_vm8, %v1582_v16, %v1586_v1  ;;  %6025 = vmatprep.mubr.bf16.mxu0 %v5409_v15  ;;  %v1632_v1 = vshll.u32 %v1517_v45, 16  ;;  %v1642_v15 = vshll.u32 %v1518_v56, 16  ;;  %v1606_v16 = vrot.slane %v1605_v4, 4  ;;  %v1519_v45 = vld [vmem:[#allocation2 + $0x30] sm:$0xf] }
 0x1dd   : > { %6022 = vmatpush3.bf16.msra.mxu0 %v6529_v22  ;;  %5991 = vmatprep.subr.bf16.mxu1 %v6530_v31  ;;  %v1514_v22 = vld [vmem:[#allocation2 + $0x1c] sm:$0xf]  ;;  %v5410_v46 = vcombine.low %v1587_v28, %v1597_v35  ;;  %v1638_v17 = vrot.slane %v1636_v7, 4  ;;  %v1647_v55 = vshrl.u32 %v1519_v45, 16  ;;  %v1650_v56 = vshll.u32 %v1519_v45, 16 }
 0x1de   : > { %6023 = vmatprep.subr.bf16.mxu0 %v6531_v52  ;;  %v1608_v57 = vshll.u32 %v1514_v22, 16  ;;  %v1612_v51 = vshrl.u32 %v1514_v22, 16  ;;  %v6542_v22 = vld [vmem:[#allocation10 + $0xa0] sm:$0xff]   ;;  %v1644_v39 = vrot.slane %v1642_v15, 5  ;;  %v1671_v4 = vshrl.u32 %v1522_v32, 16 }
 0x1e0   : > { %5992 = vmatpush3.bf16.msra.mxu1 %v6530_v31  ;;  %v6538_v31 = vld [vmem:[#allocation2 + $0x18] sm:$0xff]   ;;  %v1610_v61 = vrot.slane %v1608_v57, 5  ;;  %v1614_v63 = vrot.slane %v1612_v51, 4  ;;  %v6546_v57 = vld [vmem:[#allocation10 + $0x98] sm:$0xff]   ;;  %v1673_v15 = vrot.slane %v1671_v4, 4 }
 0x1e1   : > { %6024 = vmatpush3.bf16.msra.mxu0 %v6531_v52  ;;  %6041 = vmatprep.subr.bf16.mxu1 %v6534_v3  ;;  %v6540_v52 = vld [vmem:[#allocation10 + $0xa8] sm:$0xff]   ;;  %v1521_v51 = vld [vmem:[#allocation2 + $0x38] sm:$0x1] }
 0x1e2   : > { %6073 = vmatprep.subr.bf16.mxu0 %v6535_v13  ;;  %v1615_v11 = vor.u32 %v1614_v63, %v1610_v61  ;;  %v1611_v28 = vsel %vm7401_vm8, %v1606_v16, %v1610_v61  ;;  %v1666_v62 = vshll.u32 %v1521_v51, 16  ;;  %v6545_v63 = vld [vmem:[#allocation2 + $0x3c] sm:$0xff]   ;;  %v1674_v16 = vshll.u32 %v1522_v32, 16  ;;  %v1525_v32 = vld [vmem:[#allocation2 + $0x48] sm:$0xf] }
 0x1e3   : > { %5994 = vmatmul.mubr.bf16.vlgmr.msra.gmra.mxu1 %v6533_v14  ;;  %v1634_v14 = vrot.slane %v1632_v1, 5  ;;  %v1523_v1 = vld [vmem:[#allocation2 + $0x40] sm:$0xf] }
 0x1e4   : > { %6042 = vmatpush3.bf16.msra.mxu1 %v6534_v3  ;;  %6026 = vmatmul.mubr.bf16.vlgmr.msra.gmra.mxu0 %v5410_v46  ;;  %v1629_v3 = vor.u32 %v1628_v6, %v1625_v5  ;;  %v1616_v24 = vrot.slane %v1615_v11, 4  ;;  %v6547_v11 = vld [vmem:[#allocation10 + $0xd8] sm:$0xff]  }
 0x1e5   : > { %6074 = vmatpush3.bf16.msra.mxu0 %v6535_v13  ;;  %6043 = vmatprep.subr.bf16.mxu1 %v6536_v12  ;;  %v6544_v13 = vld [vmem:[#allocation2 + $0x30] sm:$0xff]   ;;  %v1639_v38 = vor.u32 %v1638_v17, %v1634_v14 }
 0x1e6   : > { %6075 = vmatprep.subr.bf16.mxu0 %v6537_v23  ;;  %5997 = vmatprep.mubr.bf16.mxu1 %v6538_v31  ;;  %v1630_v35 = vrot.slane %v1629_v3, 4  ;;  %v1621_v42 = vsel %vm7401_vm8, %v1616_v24, %v1620_v0  ;;  %v1649_v0 = vrot.slane %v1647_v55, 4  ;;  %v1680_v3 = vshll.u32 %v1523_v1, 16 }
 0x1e7   : > { %v5411_v46 = vcombine.low %v1611_v28, %v1621_v42  ;;  %v1640_v31 = vrot.slane %v1639_v38, 4  ;;  %v1684_v24 = vshrl.u32 %v1523_v1, 16  ;;  %v1676_v28 = vrot.slane %v1674_v16, 5  ;;  %v6548_v38 = vld [vmem:[#allocation10 + $0x90] sm:$0xff]  }
 0x1e8   : > { %6044 = vmatpush3.bf16.msra.mxu1 %v6536_v12  ;;  %v1635_v12 = vsel %vm7401_vm8, %v1630_v35, %v1634_v14  ;;  %v1668_v14 = vrot.slane %v1666_v62, 5  ;;  %v1682_v35 = vrot.slane %v1680_v3, 5  ;;  %v1695_v1 = vshrl.u32 %v1525_v32, 16 }
 0x1e9   : > { %6076 = vmatpush3.bf16.msra.mxu0 %v6537_v23  ;;  %6045 = vmatprep.subr.bf16.mxu1 %v6540_v52  ;;  %v1520_v23 = vld [vmem:[#allocation2 + $0x34] sm:$0xf]  ;;  %v1645_v61 = vsel %vm7401_vm8, %v1640_v31, %v1644_v39  ;;  %v1686_v45 = vrot.slane %v1684_v24, 4  ;;  %v6550_v31 = vld [vmem:[#allocation2 + $0x48] sm:$0xff]  }
 0x1ea   : > { %6077 = vmatprep.subr.bf16.mxu0 %v6541_v10  ;;  %v1656_v58 = vshll.u32 %v1520_v23, 16  ;;  %v1660_v59 = vshrl.u32 %v1520_v23, 16  ;;  %6029 = vmatprep.mubr.bf16.mxu0 %v5411_v46  ;;  %v5412_v5 = vcombine.low %v1635_v12, %v1645_v61  ;;  %v6549_v46 = vld [vmem:[#allocation10 + $0xd0] sm:$0xff]   ;;  %v1677_v12 = vor.u32 %v1676_v28, %v1673_v15  ;;  %v1526_v61 = vld [vmem:[#allocation2 + $0x4c] sm:$0xf] }
 0x1eb   : > { %5998 = vmatmul.mubr.bf16.gmra.mxu1 %v6539_v2  ;;  %v1524_v2 = vld [vmem:[#allocation2 + $0x44] sm:$0x1]  ;;  %v1704_v4 = vshll.u32 %v1526_v61, 16  ;;  %v1697_v16 = vrot.slane %v1695_v1, 4  ;;  %v6555_v24 = vld [vmem:[#allocation10 + $0xc0] sm:$0xff]  }
 0x1ec   : > { %6046 = vmatpush3.bf16.msra.mxu1 %v6540_v52  ;;  %6001 = vmatprep.mubr.bf16.mxu1 %v6544_v13  ;;  %v1652_v52 = vrot.slane %v1650_v56, 5  ;;  %v1658_v6 = vrot.slane %v1656_v58, 5  ;;  %v1662_v7 = vrot.slane %v1660_v59, 4  ;;  %v1690_v13 = vshll.u32 %v1524_v2, 16  ;;  %v6551_v58 = vld [vmem:[#allocation2 + $0x54] sm:$0xff]  }
 0x1ed   : > { %6078 = vmatpush3.bf16.msra.mxu0 %v6541_v10  ;;  %6047 = vmatprep.subr.bf16.mxu1 %v6542_v22  ;;  %v1678_v56 = vrot.slane %v1677_v12, 4  ;;  %v6552_v59 = vld [vmem:[#allocation10 + $0x88] sm:$0xff]   ;;  %v1698_v2 = vshll.u32 %v1525_v32, 16  ;;  %v1968_v32 = vld [vmem:[#allocation2] sm:$0xe] }
 0x1ee   : > { %6079 = vmatprep.subr.bf16.mxu0 %v6543_v25  ;;  %6030 = vmatmul.mubr.bf16.gmra.mxu0 %v5412_v5  ;;  %v1653_v17 = vor.u32 %v1652_v52, %v1649_v0  ;;  %v1663_v10 = vor.u32 %v1662_v7, %v1658_v6  ;;  %v1692_v51 = vrot.slane %v1690_v13, 5  ;;  %v1527_v0 = vld [vmem:[#allocation2 + $0x50] sm:$0x1]  ;;  %v6554_v5 = vld [vmem:[#allocation10 + $0x80] sm:$0xff]  }
 0x1ef   : > { %v1714_v7 = vshll.u32 %v1527_v0, 16  ;;  %v1700_v3 = vrot.slane %v1698_v2, 5  ;;  %v1969_v0 = vld [vmem:[#allocation2 + $0x4] sm:$0xf]  ;;  %v1970_v1 = vld [vmem:[#allocation2 + $0x8] sm:$0x1] }
 0x1f0   : > { %6048 = vmatpush3.bf16.msra.mxu1 %v6542_v22  ;;  %v1654_v39 = vrot.slane %v1653_v17, 4  ;;  %v1664_v42 = vrot.slane %v1663_v10, 4  ;;  %v1706_v17 = vrot.slane %v1704_v4, 5  ;;  %v1530_v10 = vld [vmem:[#allocation2 + $0x5c] sm:$0x1] }
 0x1f1   : > { %6080 = vmatpush3.bf16.msra.mxu0 %v6543_v25  ;;  %6049 = vmatprep.subr.bf16.mxu1 %v6546_v57  ;;  %v1687_v25 = vor.u32 %v1686_v45, %v1682_v35  ;;  %v1716_v28 = vrot.slane %v1714_v7, 5  ;;  %v1738_v12 = vshll.u32 %v1530_v10, 16  ;;  %v1971_v7 = vld [vmem:[#allocation2 + $0xc] sm:$0xe] }
 0x1f2   : > { %6081 = vmatprep.subr.bf16.mxu0 %v6547_v11  ;;  %v1659_v22 = vsel %vm7401_vm8, %v1654_v39, %v1658_v6  ;;  %v1669_v23 = vsel %vm7401_vm8, %v1664_v42, %v1668_v14  ;;  %v1708_v6 = vshrl.u32 %v1526_v61, 16  ;;  %v1529_v14 = vld [vmem:[#allocation2 + $0x58] sm:$0xf] }
 0x1f3   : > { %6002 = vmatmul.mubr.bf16.gmra.mxu1 %v6545_v63  ;;  %v5413_v55 = vcombine.low %v1659_v22, %v1669_v23  ;;  %v1688_v62 = vrot.slane %v1687_v25, 4  ;;  %v6553_v63 = vld [vmem:[#allocation10 + $0xc8] sm:$0xff]   ;;  %v1728_v42 = vshll.u32 %v1529_v14, 16  ;;  %v1732_v45 = vshrl.u32 %v1529_v14, 16 }
 0x1f4   : > { %6050 = vmatpush3.bf16.msra.mxu1 %v6546_v57  ;;  %6005 = vmatprep.mubr.bf16.mxu1 %v6550_v31  ;;  %v1683_v57 = vsel %vm7401_vm8, %v1678_v56, %v1682_v35  ;;  %v1710_v13 = vrot.slane %v1708_v6, 4  ;;  %v2040_v6 = vrot.slane %v1970_v1, 5  ;;  %v1979_v1 = vld [vmem:[#allocation2 + $0x2c] sm:$0x1] }
 0x1f5   : > { %6082 = vmatpush3.bf16.msra.mxu0 %v6547_v11  ;;  %6051 = vmatprep.subr.bf16.mxu1 %v6548_v38  ;;  %v1693_v52 = vsel %vm7401_vm8, %v1688_v62, %v1692_v51  ;;  %v1528_v11 = vld [vmem:[#allocation2 + $0x54] sm:$0xf]  ;;  %v1730_v25 = vrot.slane %v1728_v42, 5  ;;  %v1734_v51 = vrot.slane %v1732_v45, 4 }
 0x1f6   : > { %6083 = vmatprep.subr.bf16.mxu0 %v6549_v46  ;;  %6033 = vmatprep.mubr.bf16.mxu0 %v5413_v55  ;;  %v5414_v15 = vcombine.low %v1683_v57, %v1693_v52  ;;  %v1719_v35 = vshrl.u32 %v1528_v11, 16  ;;  %v1722_v39 = vshll.u32 %v1528_v11, 16  ;;  %v1711_v31 = vor.u32 %v1710_v13, %v1706_v17  ;;  %v6556_v55 = vld [vmem:[#allocation10 + $0x138] sm:$0xff]  }
 0x1f7   : > { %v1735_v61 = vor.u32 %v1734_v51, %v1730_v25  ;;  %v1740_v57 = vrot.slane %v1738_v12, 5  ;;  %v2037_v52 = vrot.slane %v1969_v0, 5  ;;  %v6559_v11 = vld [vmem:[#allocation10 + $0x178] sm:$0xff]   ;;  %v1975_v51 = vld [vmem:[#allocation2 + $0x1c] sm:$0xf] }
 0x1f8   : > { %6052 = vmatpush3.bf16.msra.mxu1 %v6548_v38  ;;  %6034 = vmatmul.mubr.bf16.gmra.mxu0 %v5414_v15  ;;  %v1701_v38 = vor.u32 %v1700_v3, %v1697_v16  ;;  %v1724_v22 = vrot.slane %v1722_v39, 5  ;;  %v1712_v56 = vrot.slane %v1711_v31, 4  ;;  %v1972_v16 = vld [vmem:[#allocation2 + $0x10] sm:$0xf]  ;;  %v1973_v3 = vld [vmem:[#allocation2 + $0x14] sm:$0x1] }
 0x1f9   : > { %6084 = vmatpush3.bf16.msra.mxu0 %v6549_v46  ;;  %6053 = vmatprep.subr.bf16.mxu1 %v6552_v59  ;;  %v1721_v46 = vrot.slane %v1719_v35, 4  ;;  %v1736_v15 = vrot.slane %v1735_v61, 4  ;;  %v2044_v35 = vrot.slane %v1972_v16, 5  ;;  %v2047_v39 = vrot.slane %v1973_v3, 5  ;;  %v1977_v61 = vld [vmem:[#allocation2 + $0x24] sm:$0xe] }
 0x1fa   : > { %6085 = vmatprep.subr.bf16.mxu0 %v6553_v63  ;;  %v1702_v23 = vrot.slane %v1701_v38, 4  ;;  %v1717_v2 = vsel %vm7401_vm8, %v1712_v56, %v1716_v28  ;;  %v2039_v28 = vrot.slane %v2037_v52, 4  ;;  %v6557_v38 = vld [vmem:[#allocation2 + $0xc] sm:$0xff]   ;;  %v1976_v56 = vld [vmem:[#allocation2 + $0x20] sm:$0x1] }
 0x1fb   : > { %6006 = vmatmul.mubr.bf16.gmra.mxu1 %v6551_v58  ;;  %v1725_v62 = vor.u32 %v1724_v22, %v1721_v46  ;;  %v2046_v12 = vrot.slane %v2044_v35, 4  ;;  %v6560_v46 = vld [vmem:[#allocation10 + $0x130] sm:$0xff]   ;;  %v1978_v0 = vld [vmem:[#allocation2 + $0x28] sm:$0xf] }
 0x1fc   : > { %6054 = vmatpush3.bf16.msra.mxu1 %v6552_v59  ;;  %v1707_v58 = vsel %vm7401_vm8, %v1702_v23, %v1706_v17  ;;  %v5426_v17 = vrot.slane %v1971_v7, 9  ;;  %v2041_v42 = vsel %vm7433_vm11, %v2039_v28, %v2040_v6  ;;  %v2058_v6 = vrot.slane %v1978_v0, 5  ;;  %v6566_v28 = vld [vmem:[#allocation10 + $0x120] sm:$0xff]   ;;  %v6569_v0 = vld [vmem:[#allocation2 + $0x3c] sm:$0xff]  }
 0x1fd   : > { %6086 = vmatpush3.bf16.msra.mxu0 %v6553_v63  ;;  %6055 = vmatprep.subr.bf16.mxu1 %v6554_v5  ;;  %v5425_v63 = vrot.slane %v1968_v32, 9  ;;  %v1726_v4 = vrot.slane %v1725_v62, 4  ;;  %v5415_v14 = vcombine.low %v1707_v58, %v1717_v2  ;;  %v2048_v22 = vsel %vm7433_vm11, %v2046_v12, %v2047_v39  ;;  %v6561_v2 = vld [vmem:[#allocation10 + $0x170] sm:$0xff]   ;;  %v6565_v39 = vld [vmem:[#allocation10 + $0x168] sm:$0xff]  }
 0x1fe   : > { %6087 = vmatprep.subr.bf16.mxu0 %v6555_v24  ;;  %v2045_v45 = vsel %vm7433_vm11, %v5426_v17, %v2044_v35  ;;  %v2051_v32 = vrot.slane %v1975_v51, 5  ;;  %v2054_v58 = vrot.slane %v1976_v56, 5  ;;  %v2061_v7 = vrot.slane %v1979_v1, 5  ;;  %v6563_v17 = vld [vmem:[#allocation2 + $0x24] sm:$0xff]   ;;  %v1980_v35 = vld [vmem:[#allocation2 + $0x30] sm:$0xe] }
 0x1ff   : > { %v1731_v10 = vsel %vm7401_vm8, %v1726_v4, %v1730_v25  ;;  %v2038_v13 = vsel %vm7433_vm11, %v5425_v63, %v2037_v52  ;;  %6037 = vmatprep.mubr.bf16.mxu0 %v5415_v14  ;;  %v5434_v23 = vcombine.low %v2045_v45, %v2048_v22  ;;  %v1974_v25 = vld [vmem:[#allocation2 + $0x18] sm:$0xe]  ;;  %v5428_v63 = vrot.slane %v1977_v61, 9  ;;  %v6562_v14 = vld [vmem:[#allocation10 + $0x128] sm:$0xff]   ;;  %v6568_v22 = vld [vmem:[#allocation10 + $0x118] sm:$0xff]  }
 0x200   : > { %6056 = vmatpush3.bf16.msra.mxu1 %v6554_v5  ;;  %v1741_v5 = vsel %vm7401_vm8, %v1736_v15, %v1740_v57  ;;  %v5433_v31 = vcombine.low %v2038_v13, %v2041_v42  ;;  %v5427_v62 = vrot.slane %v1974_v25, 9  ;;  %v6558_v57 = vld [vmem:[#allocation2 + $0x18] sm:$0xff]   ;;  %v2053_v52 = vrot.slane %v2051_v32, 4 }
 0x201   : > { %6088 = vmatpush3.bf16.msra.mxu0 %v6555_v24  ;;  %6105 = vmatprep.subr.bf16.mxu1 %v6556_v55  ;;  %v5416_v24 = vcombine.low %v1731_v10, %v1741_v5  ;;  %v2059_v16 = vsel %vm7433_vm11, %v5428_v63, %v2058_v6  ;;  %v2060_v3 = vrot.slane %v2058_v6, 4  ;;  %v6564_v5 = vld [vmem:[#allocation2 + $0x30] sm:$0xff]   ;;  %v5429_v42 = vrot.slane %v1980_v35, 9  ;;  %v6571_v6 = vld [vmem:[#allocation10 + $0x158] sm:$0xff]   ;;  %v1991_v35 = vld [vmem:[#allocation2 + $0x5c] sm:$0x1] }
 0x202   : > { %6137 = vmatprep.subr.bf16.mxu0 %v6559_v11  ;;  %6057 = vmatprep.mubr.bf16.mxu1 %v5433_v31  ;;  %v2052_v4 = vsel %vm7433_vm11, %v5427_v62, %v2051_v32  ;;  %v2055_v15 = vsel %vm7433_vm11, %v2053_v52, %v2054_v58  ;;  %v1983_v31 = vld [vmem:[#allocation2 + $0x3c] sm:$0xe]  ;;  %v6567_v32 = vld [vmem:[#allocation10 + $0x160] sm:$0xff]  }
 0x203   : > { %6038 = vmatmul.mubr.bf16.gmra.mxu0 %v5416_v24  ;;  %6058 = vmatmul.mubr.bf16.vlgmr.msra.gmra.mxu1 %v5434_v23  ;;  %v5435_v10 = vcombine.low %v2052_v4, %v2055_v15  ;;  %v1982_v24 = vld [vmem:[#allocation2 + $0x38] sm:$0x1]  ;;  %v5430_v23 = vrot.slane %v1983_v31, 9  ;;  %v6570_v52 = vld [vmem:[#allocation2 + $0x48] sm:$0xff]   ;;  %v1988_v15 = vld [vmem:[#allocation2 + $0x50] sm:$0x1] }
 0x204   : > { %6089 = vmatprep.mubr.bf16.mxu0 %v6557_v38  ;;  %6106 = vmatpush3.bf16.msra.mxu1 %v6556_v55  ;;  %v2062_v55 = vsel %vm7433_vm11, %v2060_v3, %v2061_v7  ;;  %v1981_v38 = vld [vmem:[#allocation2 + $0x34] sm:$0xf]  ;;  %v2068_v12 = vrot.slane %v1982_v24, 5  ;;  %v6572_v4 = vld [vmem:[#allocation10 + $0x110] sm:$0xff]   ;;  %v1986_v7 = vld [vmem:[#allocation2 + $0x48] sm:$0xe] }
 0x205   : > { %6107 = vmatprep.subr.bf16.mxu1 %v6560_v46  ;;  %6061 = vmatprep.mubr.bf16.mxu1 %v5435_v10  ;;  %v5436_v13 = vcombine.low %v2059_v16, %v2062_v55  ;;  %v2065_v45 = vrot.slane %v1981_v38, 5  ;;  %v5431_v16 = vrot.slane %v1986_v7, 9  ;;  %v6574_v3 = vld [vmem:[#allocation10 + $0x108] sm:$0xff]   ;;  %v2082_v55 = vrot.slane %v1988_v15, 5  ;;  %v2596_v15 = vld [vmem:[#allocation2 + $0x20] sm:$0x1] }
 0x206   : > { %v6575_v31 = vld [vmem:[#allocation2 + $0x54] sm:$0xff]  }
 0x207   : > { %v2066_v51 = vsel %vm7433_vm11, %v5429_v42, %v2065_v45  ;;  %v2067_v56 = vrot.slane %v2065_v45, 4  ;;  %v2089_v42 = vrot.slane %v1991_v35, 5 }
 0x208   : > { %6108 = vmatpush3.bf16.msra.mxu1 %v6560_v46  ;;  %v1984_v46 = vld [vmem:[#allocation2 + $0x40] sm:$0xf] }
 0x209   : > { %6109 = vmatprep.subr.bf16.mxu1 %v6562_v14  ;;  %v2072_v25 = vrot.slane %v1984_v46, 5 }
 0x20b   : > { %6090 = vmatmul.mubr.bf16.vlgmr.msra.gmra.mxu0 %v6558_v57  ;;  %6062 = vmatmul.mubr.bf16.gmra.mxu1 %v5436_v13  ;;  %v2073_v58 = vsel %vm7433_vm11, %v5430_v23, %v2072_v25  ;;  %v2074_v61 = vrot.slane %v2072_v25, 4  ;;  %v2069_v57 = vsel %vm7433_vm11, %v2067_v56, %v2068_v12  ;;  %v1989_v13 = vld [vmem:[#allocation2 + $0x54] sm:$0xe]  ;;  %v6576_v56 = vld [vmem:[#allocation2 + $0x60] sm:$0xff]  }
 0x20c   : > { %6138 = vmatpush3.bf16.msra.mxu0 %v6559_v11  ;;  %6093 = vmatprep.mubr.bf16.mxu0 %v6563_v17  ;;  %v1985_v11 = vld [vmem:[#allocation2 + $0x44] sm:$0x1]  ;;  %v5437_v1 = vcombine.low %v2066_v51, %v2069_v57  ;;  %v6573_v17 = vld [vmem:[#allocation10 + $0x150] sm:$0xff]   ;;  %v6577_v23 = vld [vmem:[#allocation10 + $0x148] sm:$0xff]  }
 0x20d   : > { %6139 = vmatprep.subr.bf16.mxu0 %v6561_v2  ;;  %6110 = vmatpush3.bf16.msra.mxu1 %v6562_v14  ;;  %v2075_v62 = vrot.slane %v1985_v11, 5  ;;  %v1987_v14 = vld [vmem:[#allocation2 + $0x4c] sm:$0xf] }
 0x20e   : > { %6111 = vmatprep.subr.bf16.mxu1 %v6566_v28  ;;  %6065 = vmatprep.mubr.bf16.mxu1 %v5437_v1  ;;  %v2079_v10 = vrot.slane %v1987_v14, 5  ;;  %v6578_v51 = vld [vmem:[#allocation10 + $0x100] sm:$0xff]   ;;  %v2595_v14 = vld [vmem:[#allocation2 + $0x1c] sm:$0xf] }
 0x20f   : > { %v2076_v63 = vsel %vm7433_vm11, %v2074_v61, %v2075_v62  ;;  %v2591_v62 = vld [vmem:[#allocation2 + $0xc] sm:$0xf]  ;;  %v2593_v61 = vld [vmem:[#allocation2 + $0x14] sm:$0x1]  ;;  %v2669_v35 = vshrl.u32 %v2595_v14, 16 }
 0x210   : > { %6140 = vmatpush3.bf16.msra.mxu0 %v6561_v2  ;;  %v5438_v2 = vcombine.low %v2073_v58, %v2076_v63  ;;  %v2080_v38 = vsel %vm7433_vm11, %v5431_v16, %v2079_v10  ;;  %v2081_v24 = vrot.slane %v2079_v10, 4  ;;  %v2592_v58 = vld [vmem:[#allocation2 + $0x10] sm:$0xf]  ;;  %v2632_v57 = vshrl.u32 %v2591_v62, 16 }
 0x211   : > { %6141 = vmatprep.subr.bf16.mxu0 %v6565_v39  ;;  %6112 = vmatpush3.bf16.msra.mxu1 %v6566_v28  ;;  %v1990_v28 = vld [vmem:[#allocation2 + $0x58] sm:$0xf]  ;;  %v2641_v1 = vshll.u32 %v2592_v58, 16  ;;  %v2645_v63 = vshrl.u32 %v2592_v58, 16 }
 0x212   : > { %6113 = vmatprep.subr.bf16.mxu1 %v6568_v22  ;;  %v2083_v46 = vsel %vm7433_vm11, %v2081_v24, %v2082_v55  ;;  %v2675_v24 = vshll.u32 %v2596_v15, 16 }
 0x213   : > { %6094 = vmatmul.mubr.bf16.gmra.mxu0 %v6564_v5  ;;  %6066 = vmatmul.mubr.bf16.gmra.mxu1 %v5438_v2  ;;  %v5432_v5 = vrot.slane %v1989_v13, 9  ;;  %v2651_v2 = vshll.u32 %v2593_v61, 16  ;;  %v2643_v16 = vrot.slane %v2641_v1, 5  ;;  %v2647_v10 = vrot.slane %v2645_v63, 4  ;;  %v3052_v61 = vld [vmem:[#allocation2 + $0x18] sm:$0xe] }
 0x214   : > { %6142 = vmatpush3.bf16.msra.mxu0 %v6565_v39  ;;  %6097 = vmatprep.mubr.bf16.mxu0 %v6569_v0  ;;  %v2086_v39 = vrot.slane %v1990_v28, 5  ;;  %v2635_v0 = vshll.u32 %v2591_v62, 16  ;;  %v3053_v1 = vld [vmem:[#allocation2 + $0x1c] sm:$0xf]  ;;  %v3054_v63 = vld [vmem:[#allocation2 + $0x20] sm:$0x1] }
 0x215   : > { %6143 = vmatprep.subr.bf16.mxu0 %v6567_v32  ;;  %6114 = vmatpush3.bf16.msra.mxu1 %v6568_v22  ;;  %v5439_v22 = vcombine.low %v2080_v38, %v2083_v46  ;;  %v2653_v55 = vrot.slane %v2651_v2, 5 }
 0x216   : > { %6115 = vmatprep.subr.bf16.mxu1 %v6572_v4  ;;  %v2087_v45 = vsel %vm7433_vm11, %v5432_v5, %v2086_v39  ;;  %v2088_v12 = vrot.slane %v2086_v39, 4  ;;  %v2637_v7 = vrot.slane %v2635_v0, 5  ;;  %v7477_v5 = vld [vmem:[#allocation10 + $0x1f8] sm:$0xff]   ;;  %v2648_v39 = vor.u32 %v2647_v10, %v2643_v16 }
 0x217   : > { %6069 = vmatprep.mubr.bf16.mxu1 %v5439_v22  ;;  %v2671_v22 = vrot.slane %v2669_v35, 4  ;;  %v2597_v35 = vld [vmem:[#allocation2 + $0x24] sm:$0xf] }
 0x218   : > { %6144 = vmatpush3.bf16.msra.mxu0 %v6567_v32  ;;  %v2090_v11 = vsel %vm7433_vm11, %v2088_v12, %v2089_v42  ;;  %v6579_v32 = vld [vmem:[#allocation10 + $0x140] sm:$0xff]  }
 0x219   : > { %6145 = vmatprep.subr.bf16.mxu0 %v6571_v6  ;;  %6116 = vmatpush3.bf16.msra.mxu1 %v6572_v4  ;;  %v5440_v25 = vcombine.low %v2087_v45, %v2090_v11  ;;  %v2594_v4 = vld [vmem:[#allocation2 + $0x18] sm:$0xf]  ;;  %v3049_v42 = vld [vmem:[#allocation2 + $0xc] sm:$0xe]  ;;  %v3050_v45 = vld [vmem:[#allocation2 + $0x10] sm:$0xf] }
 0x21a   : > { %6117 = vmatprep.subr.bf16.mxu1 %v6574_v3  ;;  %v2656_v13 = vshrl.u32 %v2594_v4, 16  ;;  %v3051_v11 = vld [vmem:[#allocation2 + $0x14] sm:$0x1]  ;;  %v5481_v62 = vrot.slane %v3049_v42, 9  ;;  %v3115_v58 = vrot.slane %v3050_v45, 5  ;;  %v6582_v42 = vld [vmem:[#allocation10 + $0x1b0] sm:$0xff]  }
 0x21b   : > { %6098 = vmatmul.mubr.bf16.gmra.mxu0 %v6570_v52  ;;  %6070 = vmatmul.mubr.bf16.gmra.mxu1 %v5440_v25  ;;  %v7475_v52 = vld [vmem:[#allocation10 + $0x1b8] sm:$0xff]   ;;  %v2649_v25 = vrot.slane %v2648_v39, 4  ;;  %v3118_v0 = vrot.slane %v3051_v11, 5  ;;  %v2598_v39 = vld [vmem:[#allocation2 + $0x28] sm:$0xf] }
 0x21c   : > { %6146 = vmatpush3.bf16.msra.mxu0 %v6571_v6  ;;  %6101 = vmatprep.mubr.bf16.mxu0 %v6575_v31  ;;  %v2634_v6 = vrot.slane %v2632_v57, 4  ;;  %v2658_v38 = vrot.slane %v2656_v13, 4  ;;  %v3122_v13 = vrot.slane %v3053_v1, 5  ;;  %v2599_v45 = vld [vmem:[#allocation2 + $0x2c] sm:$0x1]  ;;  %v2693_v11 = vshrl.u32 %v2598_v39, 16 }
 0x21d   : > { %6147 = vmatprep.subr.bf16.mxu0 %v6573_v17  ;;  %6118 = vmatpush3.bf16.msra.mxu1 %v6574_v3  ;;  %v2665_v3 = vshll.u32 %v2595_v14, 16  ;;  %v2654_v2 = vsel %vm7401_vm8, %v2649_v25, %v2653_v55  ;;  %v2699_v25 = vshll.u32 %v2599_v45, 16 }
 0x21e   : > { %6119 = vmatprep.subr.bf16.mxu1 %v6578_v51  ;;  %v2638_v28 = vor.u32 %v2637_v7, %v2634_v6  ;;  %v3117_v6 = vrot.slane %v3115_v58, 4  ;;  %v5482_v7 = vrot.slane %v3052_v61, 9  ;;  %v2601_v61 = vld [vmem:[#allocation2 + $0x34] sm:$0xf]  ;;  %v2695_v1 = vrot.slane %v2693_v11, 4 }
 0x21f   : > { %v2667_v46 = vrot.slane %v2665_v3, 5 }
 0x220   : > { %6148 = vmatpush3.bf16.msra.mxu0 %v6573_v17  ;;  %v2659_v17 = vshll.u32 %v2594_v4, 16  ;;  %v2639_v12 = vrot.slane %v2638_v28, 4  ;;  %v3116_v4 = vsel %vm7433_vm11, %v5481_v62, %v3115_v58  ;;  %v3125_v28 = vrot.slane %v3054_v63, 5 }
 0x221   : > { %6149 = vmatprep.subr.bf16.mxu0 %v6577_v23  ;;  %6120 = vmatpush3.bf16.msra.mxu1 %v6578_v51  ;;  %v2672_v57 = vor.u32 %v2671_v22, %v2667_v46  ;;  %v3123_v3 = vsel %vm7433_vm11, %v5482_v7, %v3122_v13  ;;  %v2689_v22 = vshll.u32 %v2598_v39, 16  ;;  %v2701_v63 = vrot.slane %v2699_v25, 5  ;;  %v6586_v39 = vld [vmem:[#allocation10 + $0x1a0] sm:$0xff]  }
 0x222   : > { %v2661_v31 = vrot.slane %v2659_v17, 5  ;;  %6169 = vmatprep.subr.bf16.mxu1 %v7475_v52  ;;  %v2713_v7 = vshll.u32 %v2601_v61, 16 }
 0x223   : > { %6102 = vmatmul.mubr.bf16.gmra.mxu0 %v6576_v56  ;;  %v2677_v56 = vrot.slane %v2675_v24, 5  ;;  %v2673_v10 = vrot.slane %v2672_v57, 4  ;;  %v3124_v24 = vrot.slane %v3122_v13, 4  ;;  %v6583_v57 = vld [vmem:[#allocation10 + $0x1f0] sm:$0xff]  }
 0x224   : > { %6150 = vmatpush3.bf16.msra.mxu0 %v6577_v23  ;;  %v2644_v23 = vsel %vm7401_vm8, %v2639_v12, %v2643_v16  ;;  %v2662_v51 = vor.u32 %v2661_v31, %v2658_v38  ;;  %v3119_v16 = vsel %vm7433_vm11, %v3117_v6, %v3118_v0  ;;  %v2680_v12 = vshrl.u32 %v2597_v35, 16 }
 0x225   : > { %6151 = vmatprep.subr.bf16.mxu0 %v6579_v32  ;;  %v5465_v14 = vcombine.low %v2644_v23, %v2654_v2  ;;  %v5489_v17 = vcombine.low %v3116_v4, %v3119_v16  ;;  %v2683_v31 = vshll.u32 %v2597_v35, 16  ;;  %v2602_v23 = vld [vmem:[#allocation2 + $0x38] sm:$0x1]  ;;  %v2691_v0 = vrot.slane %v2689_v22, 5  ;;  %v3055_v16 = vld [vmem:[#allocation2 + $0x24] sm:$0xe] }
 0x226   : > { %v2663_v15 = vrot.slane %v2662_v51, 4  ;;  %v2682_v62 = vrot.slane %v2680_v12, 4  ;;  %v2723_v13 = vshll.u32 %v2602_v23, 16  ;;  %v3057_v35 = vld [vmem:[#allocation2 + $0x2c] sm:$0x1]  ;;  %v5483_v12 = vrot.slane %v3055_v16, 9 }
 0x227   : > { %6121 = vmatprep.mubr.bf16.mxu1 %v5465_v14  ;;  %6153 = vmatprep.mubr.bf16.mxu0 %v5489_v17  ;;  %v2685_v58 = vrot.slane %v2683_v31, 5  ;;  %v6584_v14 = vld [vmem:[#allocation10 + $0x1a8] sm:$0xff]   ;;  %v2604_v16 = vld [vmem:[#allocation2 + $0x40] sm:$0xf] }
 0x228   : > { %6152 = vmatpush3.bf16.msra.mxu0 %v6579_v32  ;;  %v2668_v55 = vsel %vm7401_vm8, %v2663_v15, %v2667_v46  ;;  %v2678_v32 = vsel %vm7401_vm8, %v2673_v10, %v2677_v56  ;;  %v2600_v46 = vld [vmem:[#allocation2 + $0x30] sm:$0xf]  ;;  %v3126_v56 = vsel %vm7433_vm11, %v3124_v24, %v3125_v28  ;;  %v2696_v15 = vor.u32 %v2695_v1, %v2691_v0  ;;  %v3056_v28 = vld [vmem:[#allocation2 + $0x28] sm:$0xf] }
 0x229   : > { %6201 = vmatprep.subr.bf16.mxu0 %v7477_v5  ;;  %v5466_v38 = vcombine.low %v2668_v55, %v2678_v32  ;;  %v5490_v51 = vcombine.low %v3123_v3, %v3126_v56  ;;  %v2686_v2 = vor.u32 %v2685_v58, %v2682_v62  ;;  %v2704_v4 = vshrl.u32 %v2600_v46, 16  ;;  %v6585_v55 = vld [vmem:[#allocation10 + $0x1e8] sm:$0xff]   ;;  %v3060_v56 = vld [vmem:[#allocation2 + $0x38] sm:$0x1] }
 0x22a   : > { %v2707_v6 = vshll.u32 %v2600_v46, 16  ;;  %v2717_v10 = vshrl.u32 %v2601_v61, 16  ;;  %v2715_v3 = vrot.slane %v2713_v7, 5  ;;  %v2725_v45 = vrot.slane %v2723_v13, 5  ;;  %v3058_v31 = vld [vmem:[#allocation2 + $0x30] sm:$0xe] }
 0x22b   : > { %6122 = vmatmul.mubr.bf16.vlgmr.msra.gmra.mxu1 %v5466_v38  ;;  %6154 = vmatmul.mubr.bf16.vlgmr.msra.gmra.mxu0 %v5490_v51  ;;  %v2706_v32 = vrot.slane %v2704_v4, 4  ;;  %v2697_v38 = vrot.slane %v2696_v15, 4  ;;  %v3129_v25 = vrot.slane %v3056_v28, 5  ;;  %v3059_v46 = vld [vmem:[#allocation2 + $0x34] sm:$0xf]  ;;  %v3139_v7 = vrot.slane %v3060_v56, 5 }
 0x22c   : > { %6170 = vmatpush3.bf16.msra.mxu1 %v7475_v52  ;;  %6202 = vmatpush3.bf16.msra.mxu0 %v7477_v5  ;;  %v2687_v52 = vrot.slane %v2686_v2, 4  ;;  %v2709_v17 = vrot.slane %v2707_v6, 5  ;;  %v2719_v24 = vrot.slane %v2717_v10, 4  ;;  %v3132_v5 = vrot.slane %v3057_v35, 5  ;;  %v6587_v15 = vld [vmem:[#allocation10 + $0x1e0] sm:$0xff]  }
 0x22d   : > { %6171 = vmatprep.subr.bf16.mxu1 %v6582_v42  ;;  %6203 = vmatprep.subr.bf16.mxu0 %v6583_v57  ;;  %v2702_v62 = vsel %vm7401_vm8, %v2697_v38, %v2701_v63  ;;  %v3136_v61 = vrot.slane %v3059_v46, 5  ;;  %v3130_v1 = vsel %vm7433_vm11, %v5483_v12, %v3129_v25  ;;  %v3131_v2 = vrot.slane %v3129_v25, 4  ;;  %v6588_v63 = vld [vmem:[#allocation10 + $0x198] sm:$0xff]   ;;  %v2603_v13 = vld [vmem:[#allocation2 + $0x3c] sm:$0xf] }
 0x22e   : > { %v2692_v22 = vsel %vm7401_vm8, %v2687_v52, %v2691_v0  ;;  %v2710_v11 = vor.u32 %v2709_v17, %v2706_v32  ;;  %v2720_v58 = vor.u32 %v2719_v24, %v2715_v3  ;;  %v2605_v32 = vld [vmem:[#allocation2 + $0x44] sm:$0x1]  ;;  %v2728_v17 = vshrl.u32 %v2603_v13, 16  ;;  %v2606_v35 = vld [vmem:[#allocation2 + $0x48] sm:$0xf]  ;;  %v6590_v25 = vld [vmem:[#allocation10 + $0x190] sm:$0xff]  }
 0x22f   : > { %v5467_v23 = vcombine.low %v2692_v22, %v2702_v62  ;;  %v3138_v6 = vrot.slane %v3136_v61, 4  ;;  %v6589_v38 = vld [vmem:[#allocation10 + $0x1d8] sm:$0xff]   ;;  %v2607_v22 = vld [vmem:[#allocation2 + $0x4c] sm:$0xf]  ;;  %v2747_v46 = vshll.u32 %v2605_v32, 16  ;;  %v2752_v56 = vshrl.u32 %v2606_v35, 16 }
 0x230   : > { %6172 = vmatpush3.bf16.msra.mxu1 %v6582_v42  ;;  %v5484_v42 = vrot.slane %v3058_v31, 9  ;;  %6204 = vmatpush3.bf16.msra.mxu0 %v6583_v57  ;;  %v2711_v51 = vrot.slane %v2710_v11, 4  ;;  %v2721_v0 = vrot.slane %v2720_v58, 4  ;;  %v3133_v57 = vsel %vm7433_vm11, %v3131_v2, %v3132_v5  ;;  %v2608_v11 = vld [vmem:[#allocation2 + $0x50] sm:$0x1] }
 0x231   : > { %6173 = vmatprep.subr.bf16.mxu1 %v6584_v14  ;;  %6205 = vmatprep.subr.bf16.mxu0 %v6585_v55  ;;  %v5491_v28 = vcombine.low %v3130_v1, %v3133_v57  ;;  %v3140_v52 = vsel %vm7433_vm11, %v3138_v6, %v3139_v7  ;;  %v2737_v31 = vshll.u32 %v2604_v16, 16  ;;  %v2730_v5 = vrot.slane %v2728_v17, 4  ;;  %v3061_v2 = vld [vmem:[#allocation2 + $0x3c] sm:$0xe]  ;;  %v3062_v7 = vld [vmem:[#allocation2 + $0x40] sm:$0xf] }
 0x232   : > { %v3137_v4 = vsel %vm7433_vm11, %v5484_v42, %v3136_v61  ;;  %6125 = vmatprep.mubr.bf16.mxu1 %v5467_v23  ;;  %v2716_v10 = vsel %vm7401_vm8, %v2711_v51, %v2715_v3  ;;  %v2731_v3 = vshll.u32 %v2603_v13, 16  ;;  %v2755_v42 = vshll.u32 %v2606_v35, 16  ;;  %v3063_v13 = vld [vmem:[#allocation2 + $0x44] sm:$0x1] }
 0x233   : > { %v5492_v12 = vcombine.low %v3137_v4, %v3140_v52  ;;  %6157 = vmatprep.mubr.bf16.mxu0 %v5491_v28  ;;  %v2739_v58 = vrot.slane %v2737_v31, 5  ;;  %v2761_v61 = vshll.u32 %v2607_v22, 16  ;;  %v2754_v51 = vrot.slane %v2752_v56, 4  ;;  %v6591_v28 = vld [vmem:[#allocation10 + $0x1d0] sm:$0xff]  }
 0x234   : > { %6174 = vmatpush3.bf16.msra.mxu1 %v6584_v14  ;;  %v2726_v14 = vsel %vm7401_vm8, %v2721_v0, %v2725_v45  ;;  %6206 = vmatpush3.bf16.msra.mxu0 %v6585_v55  ;;  %v2741_v45 = vshrl.u32 %v2604_v16, 16  ;;  %v2733_v62 = vrot.slane %v2731_v3, 5  ;;  %v2749_v55 = vrot.slane %v2747_v46, 5 }
 0x235   : > { %6175 = vmatprep.subr.bf16.mxu1 %v6586_v39  ;;  %v5468_v24 = vcombine.low %v2716_v10, %v2726_v14  ;;  %6158 = vmatmul.mubr.bf16.gmra.mxu0 %v5492_v12  ;;  %v2765_v1 = vshrl.u32 %v2607_v22, 16  ;;  %v2763_v4 = vrot.slane %v2761_v61, 5  ;;  %v2771_v6 = vshll.u32 %v2608_v11, 16  ;;  %v6592_v12 = vld [vmem:[#allocation10 + $0x188] sm:$0xff]   ;;  %v3065_v11 = vld [vmem:[#allocation2 + $0x4c] sm:$0xf] }
 0x236   : > { %6207 = vmatprep.subr.bf16.mxu0 %v6587_v15  ;;  %v2743_v23 = vrot.slane %v2741_v45, 4  ;;  %v2734_v0 = vor.u32 %v2733_v62, %v2730_v5  ;;  %v5485_v16 = vrot.slane %v3061_v2, 9  ;;  %v3143_v14 = vrot.slane %v3062_v7, 5  ;;  %v3066_v5 = vld [vmem:[#allocation2 + $0x50] sm:$0x1]  ;;  %v6594_v7 = vld [vmem:[#allocation10 + $0x180] sm:$0xff]  }
 0x237   : > { %6126 = vmatmul.mubr.bf16.gmra.mxu1 %v5468_v24  ;;  %v2767_v57 = vrot.slane %v2765_v1, 4  ;;  %v2773_v17 = vrot.slane %v2771_v6, 5  ;;  %v3146_v35 = vrot.slane %v3063_v13, 5  ;;  %v3064_v24 = vld [vmem:[#allocation2 + $0x48] sm:$0xe]  ;;  %v3150_v56 = vrot.slane %v3065_v11, 5 }
 0x238   : > { %6176 = vmatpush3.bf16.msra.mxu1 %v6586_v39  ;;  %6208 = vmatpush3.bf16.msra.mxu0 %v6587_v15  ;;  %v2757_v39 = vrot.slane %v2755_v42, 5  ;;  %v2744_v10 = vor.u32 %v2743_v23, %v2739_v58  ;;  %v2735_v52 = vrot.slane %v2734_v0, 4  ;;  %v3144_v31 = vsel %vm7433_vm11, %v5485_v16, %v3143_v14  ;;  %v6593_v62 = vld [vmem:[#allocation10 + $0x1c8] sm:$0xff]   ;;  %v2610_v6 = vld [vmem:[#allocation2 + $0x58] sm:$0xf] }
 0x239   : > { %6177 = vmatprep.subr.bf16.mxu1 %v6588_v63  ;;  %6209 = vmatprep.subr.bf16.mxu0 %v6589_v38  ;;  %v2768_v3 = vor.u32 %v2767_v57, %v2763_v4  ;;  %v3145_v22 = vrot.slane %v3143_v14, 4  ;;  %v5486_v46 = vrot.slane %v3064_v24, 9  ;;  %v2785_v16 = vshll.u32 %v2610_v6, 16 }
 0x23a   : > { %v2758_v32 = vor.u32 %v2757_v39, %v2754_v51  ;;  %v2745_v15 = vrot.slane %v2744_v10, 4  ;;  %v3153_v51 = vrot.slane %v3066_v5, 5  ;;  %v2609_v39 = vld [vmem:[#allocation2 + $0x54] sm:$0xf]  ;;  %v2789_v14 = vshrl.u32 %v2610_v6, 16 }
 0x23b   : > { %v2769_v61 = vrot.slane %v2768_v3, 4  ;;  %v3147_v23 = vsel %vm7433_vm11, %v3145_v22, %v3146_v35  ;;  %v3151_v0 = vsel %vm7433_vm11, %v5486_v46, %v3150_v56  ;;  %v2776_v57 = vshrl.u32 %v2609_v39, 16  ;;  %v6595_v22 = vld [vmem:[#allocation10 + $0x1c0] sm:$0xff]  }
 0x23c   : > { %6178 = vmatpush3.bf16.msra.mxu1 %v6588_v63  ;;  %v2740_v63 = vsel %vm7401_vm8, %v2735_v52, %v2739_v58  ;;  %v2759_v45 = vrot.slane %v2758_v32, 4  ;;  %6210 = vmatpush3.bf16.msra.mxu0 %v6589_v38  ;;  %v2750_v42 = vsel %vm7401_vm8, %v2745_v15, %v2749_v55  ;;  %v5493_v58 = vcombine.low %v3144_v31, %v3147_v23  ;;  %v2612_v32 = vld [vmem:[#allocation2 + $0x60] sm:$0xf]  ;;  %v2614_v31 = vld [vmem:[#allocation2 + $0x68] sm:$0x1] }
 0x23d   : > { %6179 = vmatprep.subr.bf16.mxu1 %v6590_v25  ;;  %6211 = vmatprep.subr.bf16.mxu0 %v6591_v28  ;;  %v5469_v1 = vcombine.low %v2740_v63, %v2750_v42  ;;  %v2774_v38 = vsel %vm7401_vm8, %v2769_v61, %v2773_v17  ;;  %v3152_v55 = vrot.slane %v3150_v56, 4  ;;  %v2779_v13 = vshll.u32 %v2609_v39, 16  ;;  %v2613_v17 = vld [vmem:[#allocation2 + $0x64] sm:$0xf]  ;;  %v3069_v39 = vld [vmem:[#allocation2 + $0x5c] sm:$0x1] }
 0x23e   : > { %v2764_v2 = vsel %vm7401_vm8, %v2759_v45, %v2763_v4  ;;  %6161 = vmatprep.mubr.bf16.mxu0 %v5493_v58  ;;  %v2778_v24 = vrot.slane %v2776_v57, 4  ;;  %v2787_v3 = vrot.slane %v2785_v16, 5  ;;  %v2791_v11 = vrot.slane %v2789_v14, 4  ;;  %v7531_v61 = vld [vmem:[#allocation10 + $0x238] sm:$0xff]  }
 0x23f   : > { %6129 = vmatprep.mubr.bf16.mxu1 %v5469_v1  ;;  %v5470_v10 = vcombine.low %v2764_v2, %v2774_v38  ;;  %v3154_v4 = vsel %vm7433_vm11, %v3152_v55, %v3153_v51  ;;  %v2781_v15 = vrot.slane %v2779_v13, 5  ;;  %v2800_v63 = vshrl.u32 %v2612_v32, 16  ;;  %v3067_v1 = vld [vmem:[#allocation2 + $0x54] sm:$0xe]  ;;  %v3068_v2 = vld [vmem:[#allocation2 + $0x58] sm:$0xf] }
 0x240   : > { %6180 = vmatpush3.bf16.msra.mxu1 %v6590_v25  ;;  %v2611_v25 = vld [vmem:[#allocation2 + $0x5c] sm:$0x1]  ;;  %6212 = vmatpush3.bf16.msra.mxu0 %v6591_v28  ;;  %v5494_v35 = vcombine.low %v3151_v0, %v3154_v4  ;;  %v2803_v45 = vshll.u32 %v2612_v32, 16  ;;  %v2809_v56 = vshll.u32 %v2613_v17, 16  ;;  %v2813_v28 = vshrl.u32 %v2613_v17, 16 }
 0x241   : > { %6181 = vmatprep.subr.bf16.mxu1 %v6592_v12  ;;  %v2795_v52 = vshll.u32 %v2611_v25, 16  ;;  %6130 = vmatmul.mubr.bf16.gmra.mxu1 %v5470_v10  ;;  %v2782_v46 = vor.u32 %v2781_v15, %v2778_v24  ;;  %v2819_v42 = vshll.u32 %v2614_v31, 16  ;;  %v2802_v23 = vrot.slane %v2800_v63, 4  ;;  %v3070_v13 = vld [vmem:[#allocation2 + $0x60] sm:$0xe] }
 0x242   : > { %6213 = vmatprep.subr.bf16.mxu0 %v6593_v62  ;;  %6162 = vmatmul.mubr.bf16.gmra.mxu0 %v5494_v35  ;;  %v2805_v51 = vrot.slane %v2803_v45, 5  ;;  %v2811_v38 = vrot.slane %v2809_v56, 5  ;;  %v2815_v0 = vrot.slane %v2813_v28, 4  ;;  %v5487_v25 = vrot.slane %v3067_v1, 9 }
 0x243   : > { %v2797_v5 = vrot.slane %v2795_v52, 5  ;;  %v2783_v58 = vrot.slane %v2782_v46, 4  ;;  %v2821_v55 = vrot.slane %v2819_v42, 5  ;;  %v3157_v57 = vrot.slane %v3068_v2, 5  ;;  %v3672_v2 = vld [vmem:[#allocation2 + $0x20] sm:$0x1] }
 0x244   : > { %6182 = vmatpush3.bf16.msra.mxu1 %v6592_v12  ;;  %v2792_v12 = vor.u32 %v2791_v11, %v2787_v3  ;;  %6214 = vmatpush3.bf16.msra.mxu0 %v6593_v62  ;;  %v2806_v10 = vor.u32 %v2805_v51, %v2802_v23  ;;  %v2816_v4 = vor.u32 %v2815_v0, %v2811_v38  ;;  %v3160_v14 = vrot.slane %v3069_v39, 5  ;;  %v3071_v62 = vld [vmem:[#allocation2 + $0x64] sm:$0xf]  ;;  %v3670_v23 = vld [vmem:[#allocation2 + $0x18] sm:$0xf] }
 0x245   : > { %6183 = vmatprep.subr.bf16.mxu1 %v6594_v7  ;;  %6215 = vmatprep.subr.bf16.mxu0 %v6595_v22  ;;  %v2788_v16 = vsel %vm7401_vm8, %v2783_v58, %v2787_v3  ;;  %v5488_v52 = vrot.slane %v3070_v13, 9  ;;  %v3158_v35 = vsel %vm7433_vm11, %v5487_v25, %v3157_v57  ;;  %v3159_v24 = vrot.slane %v3157_v57, 4  ;;  %v3671_v51 = vld [vmem:[#allocation2 + $0x1c] sm:$0xf]  ;;  %v6597_v25 = vld [vmem:[#allocation2 + $0x24] sm:$0xff]  }
 0x246   : > { %v2793_v6 = vrot.slane %v2792_v12, 4  ;;  %v2807_v17 = vrot.slane %v2806_v10, 4  ;;  %v2817_v31 = vrot.slane %v2816_v4, 4  ;;  %v3164_v11 = vrot.slane %v3071_v62, 5  ;;  %v3674_v10 = vld [vmem:[#allocation2 + $0x28] sm:$0xf] }
 0x247   : > { %v3161_v45 = vsel %vm7433_vm11, %v3159_v24, %v3160_v14  ;;  %v3711_v58 = vshrl.u32 %v3670_v23, 16  ;;  %v3720_v0 = vshll.u32 %v3671_v51, 16  ;;  %v3730_v39 = vshll.u32 %v3672_v2, 16  ;;  %v3675_v4 = vld [vmem:[#allocation2 + $0x2c] sm:$0x1] }
 0x248   : > { %6184 = vmatpush3.bf16.msra.mxu1 %v6594_v7  ;;  %v3072_v7 = vld [vmem:[#allocation2 + $0x68] sm:$0x1]  ;;  %v2798_v32 = vsel %vm7401_vm8, %v2793_v6, %v2797_v5  ;;  %6216 = vmatpush3.bf16.msra.mxu0 %v6595_v22  ;;  %v2812_v3 = vsel %vm7401_vm8, %v2807_v17, %v2811_v38  ;;  %v2822_v5 = vsel %vm7401_vm8, %v2817_v31, %v2821_v55  ;;  %v3166_v28 = vrot.slane %v3164_v11, 4  ;;  %v6596_v22 = vld [vmem:[#allocation2 + $0x18] sm:$0xff]   ;;  %v3673_v6 = vld [vmem:[#allocation2 + $0x24] sm:$0xf] }
 0x249   : > { %6233 = vmatprep.subr.bf16.mxu1 %v7531_v61  ;;  %v5471_v15 = vcombine.low %v2788_v16, %v2798_v32  ;;  %v3167_v63 = vrot.slane %v3072_v7, 5  ;;  %v5495_v46 = vcombine.low %v3158_v35, %v3161_v45  ;;  %v3165_v56 = vsel %vm7433_vm11, %v5488_v52, %v3164_v11  ;;  %v6600_v31 = vld [vmem:[#allocation2 + $0x30] sm:$0xff]  }
 0x24a   : > { %v5472_v42 = vcombine.low %v2812_v3, %v2822_v5  ;;  %v3714_v38 = vshll.u32 %v3670_v23, 16  ;;  %v3724_v55 = vshrl.u32 %v3671_v51, 16  ;;  %v3713_v57 = vrot.slane %v3711_v58, 4  ;;  %v3676_v23 = vld [vmem:[#allocation2 + $0x30] sm:$0xf] }
 0x24b   : > { %6133 = vmatprep.mubr.bf16.mxu1 %v5471_v15  ;;  %6165 = vmatprep.mubr.bf16.mxu0 %v5495_v46  ;;  %v3168_v12 = vsel %vm7433_vm11, %v3166_v28, %v3167_v63  ;;  %v3722_v16 = vrot.slane %v3720_v0, 5  ;;  %v3735_v14 = vshrl.u32 %v3673_v6, 16  ;;  %v3732_v7 = vrot.slane %v3730_v39, 5  ;;  %v6599_v46 = vld [vmem:[#allocation10 + $0x230] sm:$0xff]   ;;  %v3677_v51 = vld [vmem:[#allocation2 + $0x34] sm:$0xf] }
 0x24c   : > { %6134 = vmatmul.mubr.bf16.gmra.mxu1 %v5472_v42  ;;  %v5496_v1 = vcombine.low %v3165_v56, %v3168_v12  ;;  %v3716_v13 = vrot.slane %v3714_v38, 5  ;;  %v3726_v62 = vrot.slane %v3724_v55, 4  ;;  %v3738_v52 = vshll.u32 %v3673_v6, 16  ;;  %v3678_v58 = vld [vmem:[#allocation2 + $0x38] sm:$0x1]  ;;  %v6602_v6 = vld [vmem:[#allocation10 + $0x228] sm:$0xff]  }
 0x24d   : > { %6185 = vmatprep.mubr.bf16.mxu1 %v6596_v22  ;;  %v3744_v32 = vshll.u32 %v3674_v10, 16  ;;  %v3737_v35 = vrot.slane %v3735_v14, 4  ;;  %v3748_v24 = vshrl.u32 %v3674_v10, 16  ;;  %v3754_v15 = vshll.u32 %v3675_v4, 16 }
 0x24e   : > { %6166 = vmatmul.mubr.bf16.gmra.mxu0 %v5496_v1  ;;  %v3717_v17 = vor.u32 %v3716_v13, %v3713_v57  ;;  %v3727_v11 = vor.u32 %v3726_v62, %v3722_v16  ;;  %v3740_v63 = vrot.slane %v3738_v52, 5  ;;  %v3759_v38 = vshrl.u32 %v3676_v23, 16  ;;  %v3679_v57 = vld [vmem:[#allocation2 + $0x3c] sm:$0xf] }
 0x24f   : > { %v3746_v3 = vrot.slane %v3744_v32, 5  ;;  %v3750_v5 = vrot.slane %v3748_v24, 4  ;;  %v3756_v22 = vrot.slane %v3754_v15, 5  ;;  %v3762_v0 = vshll.u32 %v3676_v23, 16  ;;  %v6604_v24 = vld [vmem:[#allocation2 + $0x48] sm:$0xff]  }
 0x250   : > { %v3718_v45 = vrot.slane %v3717_v17, 4  ;;  %v3728_v56 = vrot.slane %v3727_v11, 4  ;;  %v3741_v28 = vor.u32 %v3740_v63, %v3737_v35  ;;  %v3768_v10 = vshll.u32 %v3677_v51, 16  ;;  %v3681_v17 = vld [vmem:[#allocation2 + $0x44] sm:$0x1] }
 0x251   : > { %v3751_v12 = vor.u32 %v3750_v5, %v3746_v3  ;;  %v3761_v4 = vrot.slane %v3759_v38, 4  ;;  %v3764_v14 = vrot.slane %v3762_v0, 5  ;;  %v3778_v62 = vshll.u32 %v3678_v58, 16  ;;  %v6606_v38 = vld [vmem:[#allocation10 + $0x218] sm:$0xff]  }
 0x252   : > { %v3723_v42 = vsel %vm7401_vm8, %v3718_v45, %v3722_v16  ;;  %v3733_v1 = vsel %vm7401_vm8, %v3728_v56, %v3732_v7  ;;  %v3742_v2 = vrot.slane %v3741_v28, 4  ;;  %v6601_v16 = vld [vmem:[#allocation2 + $0x3c] sm:$0xff]   ;;  %v3770_v52 = vrot.slane %v3768_v10, 5  ;;  %v6603_v28 = vld [vmem:[#allocation10 + $0x220] sm:$0xff]  }
 0x253   : > { %v5521_v55 = vcombine.low %v3723_v42, %v3733_v1  ;;  %v3752_v39 = vrot.slane %v3751_v12, 4  ;;  %v3783_v35 = vshrl.u32 %v3679_v57, 16  ;;  %v3780_v11 = vrot.slane %v3778_v62, 5  ;;  %v3683_v10 = vld [vmem:[#allocation2 + $0x4c] sm:$0xf] }
 0x254   : > { %6186 = vmatmul.mubr.bf16.vlgmr.msra.gmra.mxu1 %v6597_v25  ;;  %v3772_v25 = vshrl.u32 %v3677_v51, 16  ;;  %v3747_v13 = vsel %vm7401_vm8, %v3742_v2, %v3746_v3  ;;  %v3786_v63 = vshll.u32 %v3679_v57, 16 }
 0x255   : > { %6234 = vmatpush3.bf16.msra.mxu1 %v7531_v61  ;;  %6189 = vmatprep.mubr.bf16.mxu1 %v6600_v31  ;;  %v3680_v61 = vld [vmem:[#allocation2 + $0x40] sm:$0xf]  ;;  %v3757_v7 = vsel %vm7401_vm8, %v3752_v39, %v3756_v22  ;;  %v3765_v31 = vor.u32 %v3764_v14, %v3761_v4  ;;  %v3785_v45 = vrot.slane %v3783_v35, 4  ;;  %v3802_v22 = vshll.u32 %v3681_v17, 16  ;;  %v3682_v39 = vld [vmem:[#allocation2 + $0x48] sm:$0xf] }
 0x256   : > { %6235 = vmatprep.subr.bf16.mxu1 %v6599_v46  ;;  %6217 = vmatprep.mubr.bf16.mxu0 %v5521_v55  ;;  %v3774_v32 = vrot.slane %v3772_v25, 4  ;;  %v5522_v15 = vcombine.low %v3747_v13, %v3757_v7  ;;  %v3792_v5 = vshll.u32 %v3680_v61, 16  ;;  %v3796_v56 = vshrl.u32 %v3680_v61, 16  ;;  %v6605_v13 = vld [vmem:[#allocation2 + $0x54] sm:$0xff]  }
 0x257   : > { %v3766_v42 = vrot.slane %v3765_v31, 4  ;;  %v3788_v12 = vrot.slane %v3786_v63, 5  ;;  %v3804_v58 = vrot.slane %v3802_v22, 5  ;;  %v3807_v4 = vshrl.u32 %v3682_v39, 16  ;;  %v3687_v31 = vld [vmem:[#allocation2 + $0x5c] sm:$0x1] }
 0x258   : > { %v3775_v3 = vor.u32 %v3774_v32, %v3770_v52  ;;  %6218 = vmatmul.mubr.bf16.vlgmr.msra.gmra.mxu0 %v5522_v15  ;;  %v3794_v51 = vrot.slane %v3792_v5, 5  ;;  %v3798_v1 = vrot.slane %v3796_v56, 4  ;;  %v3810_v14 = vshll.u32 %v3682_v39, 16  ;;  %v6607_v32 = vld [vmem:[#allocation10 + $0x210] sm:$0xff]   ;;  %v6608_v5 = vld [vmem:[#allocation2 + $0x60] sm:$0xff]  }
 0x259   : > { %6236 = vmatpush3.bf16.msra.mxu1 %v6599_v46  ;;  %v3771_v46 = vsel %vm7401_vm8, %v3766_v42, %v3770_v52  ;;  %v3789_v2 = vor.u32 %v3788_v12, %v3785_v45  ;;  %v3816_v61 = vshll.u32 %v3683_v10, 16  ;;  %v3685_v52 = vld [vmem:[#allocation2 + $0x54] sm:$0xf]  ;;  %v3809_v35 = vrot.slane %v3807_v4, 4  ;;  %v3686_v15 = vld [vmem:[#allocation2 + $0x58] sm:$0xf] }
 0x25a   : > { %6237 = vmatprep.subr.bf16.mxu1 %v6602_v6  ;;  %v3776_v23 = vrot.slane %v3775_v3, 4  ;;  %v3799_v55 = vor.u32 %v3798_v1, %v3794_v51  ;;  %v3831_v12 = vshrl.u32 %v3685_v52, 16  ;;  %v3834_v22 = vshll.u32 %v3685_v52, 16  ;;  %v3688_v4 = vld [vmem:[#allocation2 + $0x60] sm:$0xf] }
 0x25b   : > { %v3790_v57 = vrot.slane %v3789_v2, 4  ;;  %v3818_v63 = vrot.slane %v3816_v61, 5  ;;  %v3850_v1 = vshll.u32 %v3687_v31, 16  ;;  %v3690_v61 = vld [vmem:[#allocation2 + $0x68] sm:$0x1] }
 0x25c   : > { %6190 = vmatmul.mubr.bf16.gmra.mxu1 %v6601_v16  ;;  %v3781_v0 = vsel %vm7401_vm8, %v3776_v23, %v3780_v11  ;;  %v3684_v16 = vld [vmem:[#allocation2 + $0x50] sm:$0x1]  ;;  %v3800_v62 = vrot.slane %v3799_v55, 4  ;;  %v3833_v2 = vrot.slane %v3831_v12, 4  ;;  %v6611_v31 = vld [vmem:[#allocation10 + $0x200] sm:$0xff]  }
 0x25d   : > { %6238 = vmatpush3.bf16.msra.mxu1 %v6602_v6  ;;  %6193 = vmatprep.mubr.bf16.mxu1 %v6604_v24  ;;  %v5523_v25 = vcombine.low %v3771_v46, %v3781_v0  ;;  %v3820_v6 = vshrl.u32 %v3683_v10, 16  ;;  %v3826_v7 = vshll.u32 %v3684_v16, 16  ;;  %v3795_v17 = vsel %vm7401_vm8, %v3790_v57, %v3794_v51  ;;  %v6609_v57 = vld [vmem:[#allocation2 + $0x6c] sm:$0xff]  }
 0x25e   : > { %6239 = vmatprep.subr.bf16.mxu1 %v6603_v28  ;;  %v3812_v24 = vrot.slane %v3810_v14, 5  ;;  %v3805_v11 = vsel %vm7401_vm8, %v3800_v62, %v3804_v58  ;;  %v3840_v51 = vshll.u32 %v3686_v15, 16  ;;  %v3836_v0 = vrot.slane %v3834_v22, 5  ;;  %v6610_v58 = vld [vmem:[#allocation10 + $0x208] sm:$0xff]  }
 0x25f   : > { %6221 = vmatprep.mubr.bf16.mxu0 %v5523_v25  ;;  %v3822_v3 = vrot.slane %v3820_v6, 4  ;;  %v3828_v45 = vrot.slane %v3826_v7, 5  ;;  %v5524_v56 = vcombine.low %v3795_v17, %v3805_v11  ;;  %v3852_v25 = vrot.slane %v3850_v1, 5  ;;  %v3693_v22 = vld [vmem:[#allocation2 + $0x74] sm:$0x1] }
 0x260   : > { %v3813_v42 = vor.u32 %v3812_v24, %v3809_v35  ;;  %v3842_v39 = vrot.slane %v3840_v51, 5  ;;  %v3837_v16 = vor.u32 %v3836_v0, %v3833_v2  ;;  %v3855_v6 = vshrl.u32 %v3688_v4, 16 }
 0x261   : > { %6240 = vmatpush3.bf16.msra.mxu1 %v6603_v28  ;;  %v3823_v23 = vor.u32 %v3822_v3, %v3818_v63  ;;  %v3844_v28 = vshrl.u32 %v3686_v15, 16  ;;  %6222 = vmatmul.mubr.bf16.gmra.mxu0 %v5524_v56  ;;  %v3858_v7 = vshll.u32 %v3688_v4, 16  ;;  %v3691_v15 = vld [vmem:[#allocation2 + $0x6c] sm:$0xf]  ;;  %v3692_v56 = vld [vmem:[#allocation2 + $0x70] sm:$0xf] }
 0x262   : > { %6241 = vmatprep.subr.bf16.mxu1 %v6606_v38  ;;  %v3814_v46 = vrot.slane %v3813_v42, 4  ;;  %v3838_v17 = vrot.slane %v3837_v16, 4  ;;  %v3882_v1 = vshll.u32 %v3691_v15, 16  ;;  %v3892_v4 = vshrl.u32 %v3692_v56, 16 }
 0x263   : > { %v3824_v55 = vrot.slane %v3823_v23, 4  ;;  %v3846_v10 = vrot.slane %v3844_v28, 4  ;;  %v3860_v3 = vrot.slane %v3858_v7, 5  ;;  %v3879_v23 = vshrl.u32 %v3691_v15, 16 }
 0x264   : > { %6194 = vmatmul.mubr.bf16.gmra.mxu1 %v6605_v13  ;;  %v3819_v13 = vsel %vm7401_vm8, %v3814_v46, %v3818_v63  ;;  %v3857_v63 = vrot.slane %v3855_v6, 4  ;;  %v4131_v6 = vld [vmem:[#allocation2 + $0x24] sm:$0xe] }
 0x265   : > { %6242 = vmatpush3.bf16.msra.mxu1 %v6606_v38  ;;  %6197 = vmatprep.mubr.bf16.mxu1 %v6608_v5  ;;  %v3829_v14 = vsel %vm7401_vm8, %v3824_v55, %v3828_v45  ;;  %v3847_v62 = vor.u32 %v3846_v10, %v3842_v39  ;;  %v3689_v38 = vld [vmem:[#allocation2 + $0x64] sm:$0xf]  ;;  %v3874_v5 = vshll.u32 %v3690_v61, 16  ;;  %v3843_v45 = vsel %vm7401_vm8, %v3838_v17, %v3842_v39  ;;  %v4128_v10 = vld [vmem:[#allocation2 + $0x18] sm:$0xe] }
 0x266   : > { %6243 = vmatprep.subr.bf16.mxu1 %v6607_v32  ;;  %v5525_v52 = vcombine.low %v3819_v13, %v3829_v14  ;;  %v3864_v35 = vshll.u32 %v3689_v38, 16  ;;  %v3868_v24 = vshrl.u32 %v3689_v38, 16  ;;  %v3861_v51 = vor.u32 %v3860_v3, %v3857_v63  ;;  %v4129_v13 = vld [vmem:[#allocation2 + $0x1c] sm:$0xf] }
 0x267   : > { %v3848_v11 = vrot.slane %v3847_v62, 4  ;;  %v3876_v28 = vrot.slane %v3874_v5, 5  ;;  %v3881_v0 = vrot.slane %v3879_v23, 4  ;;  %v3888_v55 = vshll.u32 %v3692_v56, 16  ;;  %v4130_v62 = vld [vmem:[#allocation2 + $0x20] sm:$0x1] }
 0x268   : > { %6225 = vmatprep.mubr.bf16.mxu0 %v5525_v52  ;;  %v3866_v42 = vrot.slane %v3864_v35, 5  ;;  %v3870_v12 = vrot.slane %v3868_v24, 4  ;;  %v3862_v16 = vrot.slane %v3861_v51, 4  ;;  %v3884_v39 = vrot.slane %v3882_v1, 5  ;;  %v4132_v35 = vld [vmem:[#allocation2 + $0x28] sm:$0xf] }
 0x269   : > { %6244 = vmatpush3.bf16.msra.mxu1 %v6607_v32  ;;  %v3853_v32 = vsel %vm7401_vm8, %v3848_v11, %v3852_v25  ;;  %v3898_v14 = vshll.u32 %v3693_v22, 16  ;;  %v3890_v25 = vrot.slane %v3888_v55, 5  ;;  %v4194_v61 = vrot.slane %v4129_v13, 5  ;;  %v4133_v24 = vld [vmem:[#allocation2 + $0x2c] sm:$0x1] }
 0x26a   : > { %6245 = vmatprep.subr.bf16.mxu1 %v6610_v58  ;;  %v5526_v46 = vcombine.low %v3843_v45, %v3853_v32  ;;  %v3871_v2 = vor.u32 %v3870_v12, %v3866_v42  ;;  %v3867_v7 = vsel %vm7401_vm8, %v3862_v16, %v3866_v42  ;;  %v3894_v52 = vrot.slane %v3892_v4, 4  ;;  %v4134_v5 = vld [vmem:[#allocation2 + $0x30] sm:$0xe]  ;;  %v4135_v56 = vld [vmem:[#allocation2 + $0x34] sm:$0xf] }
 0x26b   : > { %v3900_v17 = vrot.slane %v3898_v14, 5  ;;  %v4196_v63 = vrot.slane %v4194_v61, 4  ;;  %v4197_v3 = vrot.slane %v4130_v62, 5  ;;  %v5538_v42 = vrot.slane %v4131_v6, 9  ;;  %v4136_v23 = vld [vmem:[#allocation2 + $0x38] sm:$0x1] }
 0x26c   : > { %6198 = vmatmul.mubr.bf16.gmra.mxu1 %v6609_v57  ;;  %6226 = vmatmul.mubr.bf16.gmra.mxu0 %v5526_v46  ;;  %v3872_v38 = vrot.slane %v3871_v2, 4  ;;  %v5537_v57 = vrot.slane %v4128_v10, 9  ;;  %v3895_v22 = vor.u32 %v3894_v52, %v3890_v25  ;;  %v4201_v51 = vrot.slane %v4132_v35, 5  ;;  %v4137_v10 = vld [vmem:[#allocation2 + $0x3c] sm:$0xe] }
 0x26d   : > { %6246 = vmatpush3.bf16.msra.mxu1 %v6610_v58  ;;  %v3885_v58 = vor.u32 %v3884_v39, %v3881_v0  ;;  %v4198_v32 = vsel %vm7433_vm11, %v4196_v63, %v4197_v3  ;;  %v4204_v1 = vrot.slane %v4133_v24, 5  ;;  %v5539_v46 = vrot.slane %v4134_v5, 9  ;;  %v4139_v13 = vld [vmem:[#allocation2 + $0x44] sm:$0x1]  ;;  %v4140_v14 = vld [vmem:[#allocation2 + $0x48] sm:$0xe] }
 0x26e   : > { %6247 = vmatprep.subr.bf16.mxu1 %v6611_v31  ;;  %v3877_v15 = vsel %vm7401_vm8, %v3872_v38, %v3876_v28  ;;  %v4195_v11 = vsel %vm7433_vm11, %v5537_v57, %v4194_v61  ;;  %v4138_v28 = vld [vmem:[#allocation2 + $0x40] sm:$0xf]  ;;  %v3896_v2 = vrot.slane %v3895_v22, 4  ;;  %v4208_v55 = vrot.slane %v4135_v56, 5  ;;  %v4141_v61 = vld [vmem:[#allocation2 + $0x4c] sm:$0xf] }
 0x26f   : > { %v5527_v45 = vcombine.low %v3867_v7, %v3877_v15  ;;  %v3886_v12 = vrot.slane %v3885_v58, 4  ;;  %v5545_v0 = vcombine.low %v4195_v11, %v4198_v32  ;;  %v4202_v16 = vsel %vm7433_vm11, %v5538_v42, %v4201_v51  ;;  %v4142_v6 = vld [vmem:[#allocation2 + $0x50] sm:$0x1]  ;;  %v4143_v24 = vld [vmem:[#allocation2 + $0x54] sm:$0xe] }
 0x270   : > { %v4203_v39 = vrot.slane %v4201_v51, 4  ;;  %v4211_v4 = vrot.slane %v4136_v23, 5  ;;  %v3901_v62 = vsel %vm7401_vm8, %v3896_v2, %v3900_v17  ;;  %v4209_v38 = vsel %vm7433_vm11, %v5539_v46, %v4208_v55  ;;  %v4144_v15 = vld [vmem:[#allocation2 + $0x58] sm:$0xf]  ;;  %v4147_v5 = vld [vmem:[#allocation2 + $0x64] sm:$0xf] }
 0x271   : > { %6248 = vmatpush3.bf16.msra.mxu1 %v6611_v31  ;;  %6229 = vmatprep.mubr.bf16.mxu0 %v5527_v45  ;;  %v3891_v31 = vsel %vm7401_vm8, %v3886_v12, %v3890_v25  ;;  %v4210_v57 = vrot.slane %v4208_v55, 4  ;;  %v4215_v25 = vrot.slane %v4138_v28, 5  ;;  %v5540_v52 = vrot.slane %v4137_v10, 9  ;;  %v4145_v22 = vld [vmem:[#allocation2 + $0x5c] sm:$0x1] }
 0x272   : > { %6249 = vmatprep.mubr.bf16.mxu1 %v5545_v0  ;;  %v5528_v7 = vcombine.low %v3891_v31, %v3901_v62  ;;  %v4205_v58 = vsel %vm7433_vm11, %v4203_v39, %v4204_v1  ;;  %v4218_v35 = vrot.slane %v4139_v13, 5  ;;  %v5541_v3 = vrot.slane %v4140_v14, 9  ;;  %v4146_v42 = vld [vmem:[#allocation2 + $0x60] sm:$0xe]  ;;  %v4148_v51 = vld [vmem:[#allocation2 + $0x68] sm:$0x1] }
 0x273   : > { %v5546_v11 = vcombine.low %v4202_v16, %v4205_v58  ;;  %v4212_v17 = vsel %vm7433_vm11, %v4210_v57, %v4211_v4  ;;  %v4217_v63 = vrot.slane %v4215_v25, 4  ;;  %v4222_v45 = vrot.slane %v4141_v61, 5  ;;  %v4149_v2 = vld [vmem:[#allocation2 + $0x6c] sm:$0xe]  ;;  %v4150_v0 = vld [vmem:[#allocation2 + $0x70] sm:$0xf] }
 0x274   : > { %6230 = vmatmul.mubr.bf16.gmra.mxu0 %v5528_v7  ;;  %v5547_v56 = vcombine.low %v4209_v38, %v4212_v17  ;;  %v4225_v12 = vrot.slane %v4142_v6, 5  ;;  %v5542_v23 = vrot.slane %v4143_v24, 9  ;;  %v4229_v32 = vrot.slane %v4144_v15, 5  ;;  %v4151_v39 = vld [vmem:[#allocation2 + $0x74] sm:$0x1] }
 0x275   : > { %6250 = vmatmul.mubr.bf16.vlgmr.msra.gmra.mxu1 %v5546_v11  ;;  %v4216_v1 = vsel %vm7433_vm11, %v5540_v52, %v4215_v25  ;;  %v4219_v46 = vsel %vm7433_vm11, %v4217_v63, %v4218_v35  ;;  %v4224_v28 = vrot.slane %v4222_v45, 4  ;;  %v4236_v31 = vrot.slane %v4147_v5, 5  ;;  %v7618_v5 = vld [vmem:[%s8187_s5] ss:$0 sm:$0xff] }
 0x276   : > { %6253 = vmatprep.mubr.bf16.mxu1 %v5547_v56  ;;  %v4223_v55 = vsel %vm7433_vm11, %v5541_v3, %v4222_v45  ;;  %v4231_v10 = vrot.slane %v4229_v32, 4  ;;  %v4232_v13 = vrot.slane %v4145_v22, 5  ;;  %v5543_v16 = vrot.slane %v4146_v42, 9 }
 0x277   : > { %v4226_v4 = vsel %vm7433_vm11, %v4224_v28, %v4225_v12  ;;  %v4239_v14 = vrot.slane %v4148_v51, 5  ;;  %v4243_v62 = vrot.slane %v4150_v0, 5  ;;  %v5548_v38 = vcombine.low %v4216_v1, %v4219_v46 }
 0x278   : > { %v4238_v57 = vrot.slane %v4236_v31, 4  ;;  %v5544_v25 = vrot.slane %v4149_v2, 9  ;;  %v5549_v61 = vcombine.low %v4223_v55, %v4226_v4  ;;  %v4246_v7 = vrot.slane %v4151_v39, 5 }
 0x279   : > { %v4245_v6 = vrot.slane %v4243_v62, 4  ;;  %v4230_v58 = vsel %vm7433_vm11, %v5542_v23, %v4229_v32  ;;  %v4233_v52 = vsel %vm7433_vm11, %v4231_v10, %v4232_v13  ;;  %v4237_v35 = vsel %vm7433_vm11, %v5543_v16, %v4236_v31 }
 0x27a   : > { %v4240_v24 = vsel %vm7433_vm11, %v4238_v57, %v4239_v14  ;;  %v5550_v15 = vcombine.low %v4230_v58, %v4233_v52  ;;  %v4244_v17 = vsel %vm7433_vm11, %v5544_v25, %v4243_v62 }
 0x27b   : > { %v5551_v11 = vcombine.low %v4237_v35, %v4240_v24  ;;  %v4247_v63 = vsel %vm7433_vm11, %v4245_v6, %v4246_v7 }
 0x27c   : > { %v5552_v3 = vcombine.low %v4244_v17, %v4247_v63 }
 0x27d   : > { %6254 = vmatmul.mubr.bf16.gmra.mxu1 %v5548_v38 }
 0x27e   : > { %6257 = vmatprep.mubr.bf16.mxu1 %v5549_v61 }
 0x285   : > { %6258 = vmatmul.mubr.bf16.gmra.mxu1 %v5550_v15  ;;  %v6612_v15 = vld [vmem:[#allocation12 + $0x38] sm:$0xff]  }
 0x286   : > { %6261 = vmatprep.mubr.bf16.mxu1 %v5551_v11  ;;  %6265 = vmatprep.subr.bf16.mxu0 %v6612_v15 }
 0x287   : > { %6266 = vmatpush3.bf16.msra.mxu0 %v6612_v15 }
 0x28d   : > { %6262 = vmatmul.mubr.bf16.gmra.mxu1 %v5552_v3 }
 0x2a3   : > { %v5995_v56 = vpop.f32.mrf.mxu1 }
 0x2a4   : > { %v1477_v45 = vadd.f32 %v5995_v56, %v7618_v5  ;;  %v6027_v12 = vpop.f32.mrf.mxu0 }
 0x2a5   : > { %v1412_v22 = vpop.f32.mrf.mxu1 }
 0x2a6   : > { %v1475_v42 = vadd.f32 %v7618_v5, %v1412_v22  ;;  %v7622_v23 = vadd.f32 %v6027_v12, %v1477_v45  ;;  %v1873_v32 = vpop.f32.mrf.mxu0  ;;  %v6613_v22 = vld [vmem:[#allocation12 + $0x30] sm:$0xff]  }
 0x2a7   : > { %v5996_v51 = vpop.f32.mrf.mxu1  ;;  %6267 = vmatprep.subr.bf16.mxu0 %v6613_v22 }
 0x2a8   : > { %v1478_v59 = vadd.f32 %v5996_v51, %v7618_v5  ;;  %v7625_v1 = vadd.f32 %v1873_v32, %v1475_v42  ;;  %v6028_v46 = vpop.f32.mrf.mxu0  ;;  %6268 = vmatpush3.bf16.msra.mxu0 %v6613_v22 }
 0x2a9   : > { %v1415_v28 = vpop.f32.mrf.mxu1 }
 0x2aa   : > { %v1476_v31 = vadd.f32 %v7618_v5, %v1415_v28  ;;  %v7628_v2 = vadd.f32 %v6028_v46, %v1478_v59  ;;  %v1876_v0 = vpop.f32.mrf.mxu0 }
 0x2ab   : > { %v5999_v55 = vpop.f32.mrf.mxu1 }
 0x2ac   : > { %v7630_v10 = vadd.f32 %v1876_v0, %v1476_v31  ;;  %v1481_v13 = vadd.f32 %v5999_v55, %v7618_v5  ;;  %v6614_v0 = vld [vmem:[#allocation12 + $0x28] sm:$0xff]  }
 0x2ad   : > { %v1428_v16 = vpop.f32.mrf.mxu1  ;;  %6269 = vmatprep.subr.bf16.mxu0 %v6614_v0 }
 0x2ae   : > { %v1479_v39 = vadd.f32 %v7618_v5, %v1428_v16  ;;  %v6031_v14 = vpop.f32.mrf.mxu0  ;;  %6270 = vmatpush3.bf16.msra.mxu0 %v6614_v0  ;;  %v7686_v0 = vld [vmem:[#allocation13 + $0x20] sm:$0xff]  }
 0x2af   : > { %v6000_v4 = vpop.f32.mrf.mxu1  ;;  %v7634_v62 = vadd.f32 %v6031_v14, %v1481_v13  ;;  %8287 = vst [vmem:[#allocation40_spill] sm:$0xff] %v7686_v0 }
 0x2b0   : > { %v1482_v38 = vadd.f32 %v6000_v4, %v7618_v5  ;;  %v1889_v25 = vpop.f32.mrf.mxu0 }
 0x2b1   : > { %v1431_v57 = vpop.f32.mrf.mxu1  ;;  %v7637_v61 = vadd.f32 %v1889_v25, %v1479_v39  ;;  %v7654_v39 = vld [vmem:[#allocation13 + $0x38] sm:$0xff]  }
 0x2b2   : > { %v1480_v6 = vadd.f32 %v7618_v5, %v1431_v57  ;;  %v6032_v58 = vpop.f32.mrf.mxu0  ;;  %8284 = vst [vmem:[#allocation37_spill] sm:$0xff] %v7654_v39  ;;  %6329 = vmatprep.subr.bf16.mxu1 %v7654_v39 }
 0x2b3   : > { %v6003_v7 = vpop.f32.mrf.mxu1  ;;  %v7640_v52 = vadd.f32 %v6032_v58, %v1482_v38  ;;  %v6616_v38 = vld [vmem:[#allocation12 + $0x20] sm:$0xff]   ;;  %6337 = vmatpush3.bf16.msra.mxu1 %v7654_v39 }
 0x2b4   : > { %v1892_v24 = vpop.f32.mrf.mxu0  ;;  %v1485_v63 = vadd.f32 %v6003_v7, %v7618_v5  ;;  %6271 = vmatprep.subr.bf16.mxu0 %v6616_v38 }
 0x2b5   : > { %v1444_v35 = vpop.f32.mrf.mxu1  ;;  %v7642_v11 = vadd.f32 %v1892_v24, %v1480_v6  ;;  %v7662_v6 = vld [vmem:[#allocation13 + $0x30] sm:$0xff]   ;;  %6272 = vmatpush3.bf16.msra.mxu0 %v6616_v38  ;;  %v6618_v24 = vld [vmem:[#allocation12 + $0x18] sm:$0xff]  }
 0x2b6   : > { %v1483_v56 = vadd.f32 %v7618_v5, %v1444_v35  ;;  %8285 = vst [vmem:[#allocation38_spill] sm:$0xff] %v7662_v6  ;;  %6330 = vmatprep.subr.bf16.mxu1 %v7662_v6  ;;  %6273 = vmatprep.subr.bf16.mxu0 %v6618_v24 }
 0x2b7   : > { %v6004_v17 = vpop.f32.mrf.mxu1  ;;  %6338 = vmatpush3.bf16.msra.mxu1 %v7662_v6 }
 0x2b8   : > { %v6035_v45 = vpop.f32.mrf.mxu0  ;;  %v1486_v32 = vadd.f32 %v6004_v17, %v7618_v5 }
 0x2b9   : > { %v1447_v3 = vpop.f32.mrf.mxu1  ;;  %v7646_v42 = vadd.f32 %v6035_v45, %v1485_v63  ;;  %6274 = vmatpush3.bf16.msra.mxu0 %v6618_v24  ;;  %v6624_v24 = vld [vmem:[#allocation12] sm:$0xff]  }
 0x2ba   : > { %v1905_v51 = vpop.f32.mrf.mxu0  ;;  %v1484_v28 = vadd.f32 %v7618_v5, %v1447_v3 }
 0x2bb   : > { %v6007_v12 = vpop.f32.mrf.mxu1  ;;  %v7649_v46 = vadd.f32 %v1905_v51, %v1483_v56  ;;  %v7672_v56 = vld [vmem:[#allocation13 + $0x28] sm:$0xff]   ;;  %v6620_v51 = vld [vmem:[#allocation12 + $0x10] sm:$0xff]  }
 0x2bc   : > { %v6036_v31 = vpop.f32.mrf.mxu0  ;;  %v1489_v14 = vadd.f32 %v6007_v12, %v7618_v5  ;;  %8286 = vst [vmem:[#allocation39_spill] sm:$0xff] %v7672_v56  ;;  %6331 = vmatprep.subr.bf16.mxu1 %v7672_v56  ;;  %6275 = vmatprep.subr.bf16.mxu0 %v6620_v51 }
 0x2bd   : > { %v1460_v59 = vpop.f32.mrf.mxu1  ;;  %v7652_v55 = vadd.f32 %v6036_v31, %v1486_v32  ;;  %6339 = vmatpush3.bf16.msra.mxu1 %v7672_v56  ;;  %6276 = vmatpush3.bf16.msra.mxu0 %v6620_v51  ;;  %v4734_v51 = vshll.u32 %v7229_v26, 16 }
 0x2be   : > { %v1908_v13 = vpop.f32.mrf.mxu0  ;;  %v1487_v57 = vadd.f32 %v7618_v5, %v1460_v59  ;;  %6332 = vmatprep.subr.bf16.mxu1 %v7686_v0 }
 0x2bf   : > { %v6008_v16 = vpop.f32.mrf.mxu1  ;;  %v7656_v4 = vadd.f32 %v1908_v13, %v1484_v28 }
 0x2c0   : > { %v1490_v35 = vadd.f32 %v6008_v16, %v7618_v5 }
 0x2c1   : > { %v1463_v25 = vpop.f32.mrf.mxu1  ;;  %6340 = vmatpush3.bf16.msra.mxu1 %v7686_v0 }
 0x2c2   : > { %v1488_v63 = vadd.f32 %v7618_v5, %v1463_v25  ;;  %v7700_v25 = vld [vmem:[#allocation13 + $0x18] sm:$0xff]  }
 0x2c3   : > { %v6039_v7 = vpop.f32.mrf.mxu0  ;;  %v6059_v3 = vpop.f32.mrf.mxu1  ;;  %8288 = vst [vmem:[#allocation41_spill] sm:$0xff] %v7700_v25  ;;  %6333 = vmatprep.subr.bf16.mxu1 %v7700_v25 }
 0x2c4   : > { %v7664_v58 = vadd.f32 %v6039_v7, %v1489_v14  ;;  %v7675_v12 = vadd.f32 %v6059_v3, %v7622_v23  ;;  %v6622_v14 = vld [vmem:[#allocation12 + $0x8] sm:$0xff]   ;;  %v7714_v3 = vld [vmem:[#allocation13 + $0x10] sm:$0xff]  }
 0x2c5   : > { %v1921_v15 = vpop.f32.mrf.mxu0  ;;  %v2222_v32 = vpop.f32.mrf.mxu1  ;;  %6277 = vmatprep.subr.bf16.mxu0 %v6622_v14  ;;  %6341 = vmatpush3.bf16.msra.mxu1 %v7700_v25  ;;  %8289 = vst [vmem:[#allocation42_spill] sm:$0xff] %v7714_v3 }
 0x2c6   : > { %v7669_v17 = vadd.f32 %v1921_v15, %v1487_v57  ;;  %v7681_v28 = vadd.f32 %v2222_v32, %v7625_v1  ;;  %6278 = vmatpush3.bf16.msra.mxu0 %v6622_v14  ;;  %6334 = vmatprep.subr.bf16.mxu1 %v7714_v3  ;;  %v4755_v14 = vshrl.u32 %v7239_v30, 16 }
 0x2c7   : > { %v6040_v45 = vpop.f32.mrf.mxu0  ;;  %v6060_v31 = vpop.f32.mrf.mxu1  ;;  %6279 = vmatprep.subr.bf16.mxu0 %v6624_v24 }
 0x2c8   : > { %v7677_v22 = vadd.f32 %v6040_v45, %v1490_v35  ;;  %v7691_v13 = vadd.f32 %v6060_v31, %v7628_v2 }
 0x2c9   : > { %v1924_v59 = vpop.f32.mrf.mxu0  ;;  %v2225_v16 = vpop.f32.mrf.mxu1  ;;  %6342 = vmatpush3.bf16.msra.mxu1 %v7714_v3 }
 0x2ca   : > { %v7684_v5 = vadd.f32 %v1924_v59, %v1488_v63  ;;  %v7697_v38 = vadd.f32 %v2225_v16, %v7630_v10  ;;  %6280 = vmatpush3.bf16.msra.mxu0 %v6624_v24  ;;  %v4740_v59 = vshll.u32 %v7232_v27, 16  ;;  %v7735_v24 = vld [vmem:[#allocation13 + $0x8] sm:$0xff]  }
 0x2cb   : > { %v7688_v23 = vpop.f32.mrf.mxu0  ;;  %v6063_v57 = vpop.f32.mrf.mxu1  ;;  %6297 = vmatprep.subr.bf16.mxu0 %v7654_v39  ;;  %8290 = vst [vmem:[#allocation43_spill] sm:$0xff] %v7735_v24  ;;  %6335 = vmatprep.subr.bf16.mxu1 %v7735_v24 }
 0x2cc   : > { %v7705_v2 = vadd.f32 %v6063_v57, %v7634_v62  ;;  %v4758_v57 = vshll.u32 %v7239_v30, 16  ;;  %v4742_v21 = vrot.slane %v4740_v59, 5  ;;  %v4750_v30 = vshll.u32 %v7236_v29, 16 }
 0x2cd   : > { %v7694_v1 = vpop.f32.mrf.mxu0  ;;  %v2238_v35 = vpop.f32.mrf.mxu1  ;;  %6343 = vmatpush3.bf16.msra.mxu1 %v7735_v24  ;;  %v4768_v59 = vshrl.u32 %v7248_v33, 16  ;;  %v4806_v24 = vshll.u32 %v7270_v41, 16 }
 0x2ce   : > { %v7711_v10 = vadd.f32 %v2238_v35, %v7637_v61  ;;  %v4731_v61 = vshrl.u32 %v7229_v26, 16  ;;  %v4736_v26 = vrot.slane %v4734_v51, 5  ;;  %v4760_v3 = vrot.slane %v4758_v57, 5 }
 0x2cf   : > { %v7702_v7 = vpop.f32.mrf.mxu0  ;;  %v6064_v63 = vpop.f32.mrf.mxu1 }
 0x2d0   : > { %v7719_v62 = vadd.f32 %v6064_v63, %v7640_v52  ;;  %v4744_v52 = vshrl.u32 %v7232_v27, 16  ;;  %v4733_v63 = vrot.slane %v4731_v61, 4 }
 0x2d1   : > { %v7708_v15 = vpop.f32.mrf.mxu0  ;;  %v2241_v32 = vpop.f32.mrf.mxu1 }
 0x2d2   : > { %v7729_v16 = vadd.f32 %v2241_v32, %v7642_v11  ;;  %v4746_v11 = vrot.slane %v4744_v52, 4  ;;  %v4757_v32 = vrot.slane %v4755_v14, 4  ;;  %v4737_v27 = vor.u32 %v4736_v26, %v4733_v63  ;;  %v7752_v14 = vld [vmem:[#allocation13] sm:$0xff]  }
 0x2d3   : > { %v7716_v45 = vpop.f32.mrf.mxu0  ;;  %v6067_v35 = vpop.f32.mrf.mxu1  ;;  %8291 = vst [vmem:[#allocation44_spill] sm:$0xff] %v7752_v14  ;;  %v4766_v63 = vrot.slane %v4764_v20, 5  ;;  %6336 = vmatprep.subr.bf16.mxu1 %v7752_v14 }
 0x2d4   : > { %v7740_v18 = vadd.f32 %v6067_v35, %v7646_v42  ;;  %v4747_v42 = vor.u32 %v4746_v11, %v4742_v21  ;;  %v4761_v51 = vor.u32 %v4760_v3, %v4757_v32  ;;  %v4738_v57 = vrot.slane %v4737_v27, 4  ;;  %6344 = vmatpush3.bf16.msra.mxu1 %v7752_v14 }
 0x2d5   : > { %v7726_v31 = vpop.f32.mrf.mxu0  ;;  %v2254_v0 = vpop.f32.mrf.mxu1  ;;  %v4752_v35 = vrot.slane %v4750_v30, 5  ;;  %v4774_v3 = vshll.u32 %v7251_v34, 16  ;;  %v4779_v11 = vshrl.u32 %v7255_v36, 16 }
 0x2d6   : > { %v7748_v61 = vadd.f32 %v2254_v0, %v7649_v46  ;;  %v4748_v56 = vrot.slane %v4747_v42, 4  ;;  %v4762_v46 = vrot.slane %v4761_v51, 4  ;;  %v4770_v0 = vrot.slane %v4768_v59, 4 }
 0x2d7   : > { %v7737_v25 = vpop.f32.mrf.mxu0  ;;  %v6068_v52 = vpop.f32.mrf.mxu1  ;;  %v4743_v33 = vsel %vm7401_vm8, %v4738_v57, %v4742_v21  ;;  %v4776_v21 = vrot.slane %v4774_v3, 5  ;;  %v4781_v51 = vrot.slane %v4779_v11, 4  ;;  %v4782_v57 = vshll.u32 %v7255_v36, 16 }
 0x2d8   : > { %v7757_v26 = vadd.f32 %v6068_v52, %v7652_v55  ;;  %v4753_v55 = vsel %vm7401_vm8, %v4748_v56, %v4752_v35  ;;  %v4771_v27 = vor.u32 %v4770_v0, %v4766_v63  ;;  %v4767_v42 = vsel %vm7401_vm8, %v4762_v46, %v4766_v63 }
 0x2d9   : > { %v7745_v19 = vpop.f32.mrf.mxu0  ;;  %v2257_v6 = vpop.f32.mrf.mxu1  ;;  %v5572_v30 = vcombine.low %v4743_v33, %v4753_v55  ;;  %v4798_v56 = vshll.u32 %v7267_v40, 16  ;;  %v4803_v35 = vshrl.u32 %v7270_v41, 16  ;;  %v4784_v33 = vrot.slane %v4782_v57, 5 }
 0x2da   : > { %v7767_v20 = vadd.f32 %v2257_v6, %v7656_v4  ;;  %v4772_v52 = vrot.slane %v4771_v27, 4  ;;  %v4788_v4 = vshll.u32 %v7258_v37, 16  ;;  %v4792_v6 = vshrl.u32 %v7258_v37, 16 }
 0x2db   : > { %v7754_v29 = vpop.f32.mrf.mxu0  ;;  %v6071_v59 = vpop.f32.mrf.mxu1  ;;  %6317 = vmatprep.mubr.bf16.mxu1 %v5572_v30  ;;  %v4785_v40 = vor.u32 %v4784_v33, %v4781_v51  ;;  %v4822_v51 = vshll.u32 %v7277_v44, 16 }
 0x2dc   : > { %v7780_v14 = vadd.f32 %v6071_v59, %v7664_v58  ;;  %v4777_v0 = vsel %vm7401_vm8, %v4772_v52, %v4776_v21  ;;  %v4790_v36 = vrot.slane %v4788_v4, 5  ;;  %v4794_v3 = vrot.slane %v4792_v6, 4 }
 0x2dd   : > { %v7764_v32 = vpop.f32.mrf.mxu0  ;;  %v2270_v46 = vpop.f32.mrf.mxu1  ;;  %v5573_v37 = vcombine.low %v4767_v42, %v4777_v0  ;;  %v4800_v58 = vrot.slane %v4798_v56, 5  ;;  %v4805_v59 = vrot.slane %v4803_v35, 4  ;;  %v4812_v21 = vshll.u32 %v7274_v43, 16 }
 0x2de   : > { %v7789_v11 = vadd.f32 %v2270_v46, %v7669_v17  ;;  %v4795_v30 = vor.u32 %v4794_v3, %v4790_v36  ;;  %v4816_v52 = vshrl.u32 %v7274_v43, 16  ;;  %v4786_v57 = vrot.slane %v4785_v40, 4 }
 0x2df   : > { %v7774_v34 = vpop.f32.mrf.mxu0  ;;  %v6072_v27 = vpop.f32.mrf.mxu1  ;;  %6318 = vmatmul.mubr.bf16.vlgmr.msra.gmra.mxu1 %v5573_v37  ;;  %v4808_v6 = vrot.slane %v4806_v24, 5  ;;  %v4814_v41 = vrot.slane %v4812_v21, 5  ;;  %v4824_v3 = vrot.slane %v4822_v51, 5  ;;  %v4827_v37 = vshrl.u32 %v7284_v47, 16 }
 0x2e0   : > { %v7795_v39 = vadd.f32 %v6072_v27, %v7677_v22  ;;  %v4796_v4 = vrot.slane %v4795_v30, 4  ;;  %v4818_v35 = vrot.slane %v4816_v52, 4  ;;  %v4791_v22 = vsel %vm7401_vm8, %v4786_v57, %v4790_v36 }
 0x2e1   : > { %v7784_v63 = vpop.f32.mrf.mxu0  ;;  %v2273_v42 = vpop.f32.mrf.mxu1  ;;  %v4809_v43 = vor.u32 %v4808_v6, %v4805_v59  ;;  %v4836_v27 = vshll.u32 %v7287_v48, 16  ;;  %v4840_v40 = vshrl.u32 %v7287_v48, 16  ;;  %v4829_v30 = vrot.slane %v4827_v37, 4 }
 0x2e2   : > { %v7803_v56 = vadd.f32 %v2273_v42, %v7684_v5  ;;  %v4801_v46 = vsel %vm7401_vm8, %v4796_v4, %v4800_v58  ;;  %v4819_v33 = vor.u32 %v4818_v35, %v4814_v41  ;;  %v4830_v5 = vshll.u32 %v7284_v47, 16 }
 0x2e3   : > { %v7791_v55 = vpop.f32.mrf.mxu0  ;;  %v5574_v0 = vcombine.low %v4791_v22, %v4801_v46  ;;  %v4810_v44 = vrot.slane %v4809_v43, 4  ;;  %v4846_v58 = vshll.u32 %v7290_v49, 16  ;;  %v4838_v52 = vrot.slane %v4836_v27, 5 }
 0x2e4   : > { %8292 = vst [vmem:[#allocation45_spill] sm:$0xff] %v7803_v56  ;;  %v4820_v36 = vrot.slane %v4819_v33, 4  ;;  %v4832_v21 = vrot.slane %v4830_v5, 5  ;;  %v4842_v42 = vrot.slane %v4840_v40, 4  ;;  %v4851_v47 = vshrl.u32 %v7293_v50, 16 }
 0x2e5   : > { %v7799_v17 = vpop.f32.mrf.mxu0  ;;  %6321 = vmatprep.mubr.bf16.mxu1 %v5574_v0  ;;  %v4815_v59 = vsel %vm7401_vm8, %v4810_v44, %v4814_v41  ;;  %v4848_v4 = vrot.slane %v4846_v58, 5  ;;  %v4854_v6 = vshll.u32 %v7293_v50, 16  ;;  %v4860_v49 = vshll.u32 %v7300_v53, 16 }
 0x2e6   : > { %v4825_v57 = vsel %vm7401_vm8, %v4820_v36, %v4824_v3  ;;  %v4833_v35 = vor.u32 %v4832_v21, %v4829_v30  ;;  %v4843_v22 = vor.u32 %v4842_v42, %v4838_v52  ;;  %v4853_v41 = vrot.slane %v4851_v47, 4 }
 0x2e7   : > { %v7810_v24 = vpop.f32.mrf.mxu0  ;;  %v5575_v51 = vcombine.low %v4815_v59, %v4825_v57  ;;  %v4856_v43 = vrot.slane %v4854_v6, 5  ;;  %v4864_v0 = vshrl.u32 %v7300_v53, 16  ;;  %v4870_v33 = vshll.u32 %v7303_v54, 16 }
 0x2e8   : > { %v4834_v3 = vrot.slane %v4833_v35, 4  ;;  %v4844_v37 = vrot.slane %v4843_v22, 4  ;;  %v4862_v44 = vrot.slane %v4860_v49, 5 }
 0x2e9   : > { %v7822_v48 = vpop.f32.mrf.mxu0  ;;  %6322 = vmatmul.mubr.bf16.gmra.mxu1 %v5575_v51  ;;  %v4857_v5 = vor.u32 %v4856_v43, %v4853_v41  ;;  %v4866_v27 = vrot.slane %v4864_v0, 4  ;;  %v4872_v54 = vrot.slane %v4870_v33, 5 }
 0x2ea   : > { %8293 = vst [vmem:[#allocation46_spill] sm:$0xff] %v7822_v48  ;;  %v4839_v36 = vsel %vm7401_vm8, %v4834_v3, %v4838_v52  ;;  %v4849_v30 = vsel %vm7401_vm8, %v4844_v37, %v4848_v4 }
 0x2eb   : > { %v7825_v46 = vpop.f32.mrf.mxu1  ;;  %v7831_v40 = vpop.f32.mrf.mxu0  ;;  %v5576_v58 = vcombine.low %v4839_v36, %v4849_v30  ;;  %v4858_v53 = vrot.slane %v4857_v5, 4  ;;  %v4867_v59 = vor.u32 %v4866_v27, %v4862_v44 }
 0x2ed   : > { %v7829_v50 = vpop.f32.mrf.mxu1  ;;  %v7837_v21 = vpop.f32.mrf.mxu0  ;;  %6325 = vmatprep.mubr.bf16.mxu1 %v5576_v58  ;;  %v4863_v57 = vsel %vm7401_vm8, %v4858_v53, %v4862_v44  ;;  %v4868_v47 = vrot.slane %v4867_v59, 4 }
 0x2ef   : > { %v6124_v42 = vpop.f32.mrf.mxu1  ;;  %v7841_v6 = vpop.f32.mrf.mxu0  ;;  %v4873_v52 = vsel %vm7401_vm8, %v4868_v47, %v4872_v54 }
 0x2f0   : > { %v5577_v51 = vcombine.low %v4863_v57, %v4873_v52 }
 0x2f1   : > { %v2957_v35 = vpop.f32.mrf.mxu1  ;;  %v7845_v4 = vpop.f32.mrf.mxu0 }
 0x2f2   : > { %6326 = vmatmul.mubr.bf16.gmra.mxu1 %v5577_v51 }
 0x2f5   : > { %v7849_v49 = vpop.f32.mrf.mxu0 }
 0x2f7   : > { %v7847_v22 = vpop.f32.mrf.mxu1  ;;  %v7853_v43 = vpop.f32.mrf.mxu0 }
 0x2f9   : > { %v7851_v41 = vpop.f32.mrf.mxu1  ;;  %v7857_v33 = vpop.f32.mrf.mxu0 }
 0x2fb   : > { %v7855_v0 = vpop.f32.mrf.mxu1  ;;  %v7861_v37 = vpop.f32.mrf.mxu0 }
 0x2fc   : > { %8294 = vst [vmem:[#allocation47_spill] sm:$0xff] %v7861_v37 }
 0x2fd   : > { %v7859_v3 = vpop.f32.mrf.mxu1 }
 0x301   : > { %v7863_v44 = vpop.f32.mrf.mxu1 }
 0x302   : > { %8295 = vst [vmem:[#allocation48_spill] sm:$0xff] %v7863_v44  ;;  %v7867_v27 = vpop.f32.mrf.mxu0 }
 0x303   : > { %v7865_v5 = vpop.f32.mrf.mxu1  ;;  %8297 = vst [vmem:[#allocation50_spill] sm:$0xff] %v7867_v27 }
 0x304   : > { %8296 = vst [vmem:[#allocation49_spill] sm:$0xff] %v7865_v5  ;;  %v7869_v36 = vpop.f32.mrf.mxu0 }
 0x305   : > { %8298 = vst [vmem:[#allocation51_spill] sm:$0xff] %v7869_v36  ;;  %v7871_v30 = vpop.f32.mrf.mxu1 }
 0x306   : > { %8299 = vst [vmem:[#allocation52_spill] sm:$0xff] %v7871_v30  ;;  %v7873_v58 = vpop.f32.mrf.mxu0 }
 0x307   : > { %8300 = vst [vmem:[#allocation53_spill] sm:$0xff] %v7873_v58  ;;  %v7875_v53 = vpop.f32.mrf.mxu1 }
 0x308   : > { %8301 = vst [vmem:[#allocation54_spill] sm:$0xff] %v7875_v53  ;;  %v7877_v59 = vpop.f32.mrf.mxu0 }
 0x309   : > { %8302 = vst [vmem:[#allocation55_spill] sm:$0xff] %v7877_v59 }
 0x30c   : > { %v7879_v54 = vpop.f32.mrf.mxu1 }
 0x30d   : > { %8303 = vst [vmem:[#allocation56_spill] sm:$0xff] %v7879_v54 }
 0x30e   : > { %v7881_v57 = vpop.f32.mrf.mxu1  ;;  %v7883_v47 = vpop.f32.mrf.mxu0 }
 0x30f   : > { %8304 = vst [vmem:[#allocation57_spill] sm:$0xff] %v7881_v57  ;;  %8305 = vst [vmem:[#allocation58_spill] sm:$0xff] %v7883_v47 }
 0x310   : > { %v7885_v52 = vpop.f32.mrf.mxu1  ;;  %v7887_v51 = vpop.f32.mrf.mxu0 }
 0x311   : > { %8306 = vst [vmem:[#allocation59_spill] sm:$0xff] %v7885_v52  ;;  %8307 = vst [vmem:[#allocation60_spill] sm:$0xff] %v7887_v51 }
 0x312   : > { %v7889_v60 = vpop.f32.mrf.mxu1  ;;  %v7891_v9 = vpop.f32.mrf.mxu0 }
 0x313   : > { %8308 = vst [vmem:[#allocation61_spill] sm:$0xff] %v7889_v60  ;;  %8309 = vst [vmem:[#allocation62_spill] sm:$0xff] %v7891_v9 }
 0x314   : > { %v6187_v36 = vpop.f32.mrf.mxu1  ;;  %v7893_v27 = vpop.f32.mrf.mxu0 }
 0x315   : > { %8310 = vst [vmem:[#allocation63_spill] sm:$0xff] %v7893_v27 }
 0x316   : > { %v3575_v58 = vpop.f32.mrf.mxu1 }
 0x318   : > { %v6188_v53 = vpop.f32.mrf.mxu1  ;;  %v6219_v48 = vpop.f32.mrf.mxu0 }
 0x31a   : > { %v3578_v59 = vpop.f32.mrf.mxu1  ;;  %v4033_v56 = vpop.f32.mrf.mxu0 }
 0x31c   : > { %v6191_v54 = vpop.f32.mrf.mxu1  ;;  %v6220_v47 = vpop.f32.mrf.mxu0 }
 0x31e   : > { %v7895_v57 = vpop.f32.mrf.mxu1  ;;  %v4036_v51 = vpop.f32.mrf.mxu0 }
 0x31f   : > { %8311 = vst [vmem:[#allocation64_spill] sm:$0xff] %v7895_v57 }
 0x320   : > { %v7897_v8 = vpop.f32.mrf.mxu1 }
 0x321   : > { %8312 = vst [vmem:[#allocation65_spill] sm:$0xff] %v7897_v8  ;;  %v7905_v30 = vpop.f32.mrf.mxu0 }
 0x322   : > { %v7899_v52 = vpop.f32.mrf.mxu1  ;;  %8316 = vst [vmem:[#allocation69_spill] sm:$0xff] %v7905_v30 }
 0x323   : > { %8313 = vst [vmem:[#allocation66_spill] sm:$0xff] %v7899_v52  ;;  %v7911_v37 = vpop.f32.mrf.mxu0  ;;  %v2561_v52 = vadd.f32 %v7688_v23, %v7675_v12 }
 0x324   : > { %v7901_v60 = vpop.f32.mrf.mxu1  ;;  %8319 = vst [vmem:[#allocation72_spill] sm:$0xff] %v7911_v37 }
 0x325   : > { %8314 = vst [vmem:[#allocation67_spill] sm:$0xff] %v7901_v60  ;;  %v7919_v8 = vpop.f32.mrf.mxu0  ;;  %v2562_v60 = vadd.f32 %v7702_v7, %v7691_v13 }
 0x326   : > { %v7903_v9 = vpop.f32.mrf.mxu1  ;;  %8322 = vst [vmem:[#allocation75_spill] sm:$0xff] %v7919_v8 }
 0x327   : > { %8315 = vst [vmem:[#allocation68_spill] sm:$0xff] %v7903_v9  ;;  %v2559_v9 = vadd.f32 %v7694_v1, %v7681_v28  ;;  %v3020_v37 = vadd.f32 %v6124_v42, %v2562_v60  ;;  %v7931_v30 = vpop.f32.mrf.mxu0  ;;  %v2565_v28 = vadd.f32 %v7716_v45, %v7705_v2  ;;  %v2564_v2 = vadd.f32 %v7745_v19, %v7729_v16 }
 0x328   : > { %v7907_v27 = vpop.f32.mrf.mxu1 }
 0x329   : > { %8317 = vst [vmem:[#allocation70_spill] sm:$0xff] %v7907_v27  ;;  %v3019_v27 = vadd.f32 %v7825_v46, %v2561_v52  ;;  %v3366_v1 = vadd.f32 %v7841_v6, %v3020_v37  ;;  %v2570_v6 = vadd.f32 %v7774_v34, %v7757_v26  ;;  %v3022_v19 = vadd.f32 %v7859_v3, %v2564_v2 }
 0x32a   : > { %v7909_v5 = vpop.f32.mrf.mxu1  ;;  %v8329_v52 = vld [vmem:[#allocation66_spill] sm:$0xff] }
 0x32b   : > { %8318 = vst [vmem:[#allocation71_spill] sm:$0xff] %v7909_v5  ;;  %v3365_v12 = vadd.f32 %v7831_v40, %v3019_v27  ;;  %v3641_v40 = vadd.f32 %v6188_v53, %v3366_v1 }
 0x32c   : > { %v7913_v44 = vpop.f32.mrf.mxu1  ;;  %v7944_v60 = vpop.f32.mrf.mxu0 }
 0x32d   : > { %8320 = vst [vmem:[#allocation73_spill] sm:$0xff] %v7913_v44  ;;  %v2560_v44 = vadd.f32 %v7708_v15, %v7697_v38  ;;  %v3640_v7 = vadd.f32 %v6187_v36, %v3365_v12  ;;  %v2563_v38 = vadd.f32 %v7726_v31, %v7711_v10  ;;  %v3023_v15 = vadd.f32 %v7847_v22, %v2565_v28 }
 0x32e   : > { %v7915_v57 = vpop.f32.mrf.mxu1  ;;  %v2569_v10 = vadd.f32 %v7754_v29, %v7740_v18  ;;  %v2567_v31 = vadd.f32 %v7764_v32, %v7748_v61  ;;  %v7961_v16 = vpop.f32.mrf.mxu0  ;;  %v4099_v18 = vadd.f32 %v6220_v47, %v3641_v40  ;;  %v2571_v61 = vadd.f32 %v7799_v17, %v7789_v11  ;;  %v8326_v17 = vld [vmem:[#allocation65_spill] sm:$0xff]  ;;  %v8335_v40 = vld [vmem:[#allocation54_spill] sm:$0xff] }
 0x32f   : > { %8321 = vst [vmem:[#allocation74_spill] sm:$0xff] %v7915_v57  ;;  %v3017_v57 = vadd.f32 %v7829_v50, %v2559_v9  ;;  %v3018_v23 = vadd.f32 %v2957_v35, %v2560_v44  ;;  %v2566_v9 = vadd.f32 %v7737_v25, %v7719_v62  ;;  %v3021_v45 = vadd.f32 %v7851_v41, %v2563_v38  ;;  %v8324_v44 = vld [vmem:[#allocation47_spill] sm:$0xff]  ;;  %v8332_v38 = vld [vmem:[#allocation45_spill] sm:$0xff] }
 0x330   : > { %v7926_v5 = vpop.f32.mrf.mxu1  ;;  %v4098_v25 = vadd.f32 %v6219_v48, %v3640_v7  ;;  %v2568_v35 = vadd.f32 %v7784_v63, %v7767_v20  ;;  %v3369_v22 = vadd.f32 %v7849_v49, %v3023_v15  ;;  %v2573_v48 = vadd.f32 %v7791_v55, %v7780_v14  ;;  %v8323_v49 = vld [vmem:[#allocation48_spill] sm:$0xff]  ;;  %v7975_v36 = vpop.f32.mrf.mxu0 }
 0x331   : > { %v3363_v13 = vadd.f32 %v7837_v21, %v3017_v57  ;;  %v3364_v46 = vadd.f32 %v7845_v4, %v3018_v23  ;;  %v3024_v21 = vadd.f32 %v7855_v0, %v2566_v9  ;;  %v3367_v26 = vadd.f32 %v7853_v43, %v3021_v45  ;;  %v8325_v14 = vld [vmem:[#allocation64_spill] sm:$0xff]  ;;  %v8331_v23 = vld [vmem:[#allocation69_spill] sm:$0xff]  ;;  %v8333_v9 = vld [vmem:[#allocation46_spill] sm:$0xff] }
 0x332   : > { %v7934_v8 = vpop.f32.mrf.mxu1  ;;  %v3644_v34 = vadd.f32 %v6191_v54, %v3369_v22  ;;  %v3027_v37 = vadd.f32 %v8323_v49, %v2569_v10  ;;  %v3368_v27 = vadd.f32 %v8324_v44, %v3022_v19  ;;  %v8328_v57 = vld [vmem:[#allocation52_spill] sm:$0xff]  ;;  %v2572_v15 = vadd.f32 %v8333_v9, %v8332_v38  ;;  %v4068_v45 = vpop.f32.mrf.mxu0  ;;  %v8343_v44 = vld [vmem:[#allocation55_spill] sm:$0xff]  ;;  %v8351_v38 = vld [vmem:[#allocation58_spill] sm:$0xff] }
 0x333   : > { %v3638_v50 = vadd.f32 %v3575_v58, %v3363_v13  ;;  %v3639_v62 = vadd.f32 %v3578_v59, %v3364_v46  ;;  %v3370_v32 = vadd.f32 %v7857_v33, %v3024_v21  ;;  %v3642_v55 = vadd.f32 %v8325_v14, %v3367_v26  ;;  %v8327_v59 = vld [vmem:[#allocation49_spill] sm:$0xff]  ;;  %v8334_v46 = vld [vmem:[#allocation50_spill] sm:$0xff]  ;;  %v8336_v10 = vld [vmem:[#allocation72_spill] sm:$0xff] }
 0x334   : > { %v3025_v54 = vadd.f32 %v8327_v59, %v2567_v31  ;;  %v3028_v47 = vadd.f32 %v8328_v57, %v2570_v6  ;;  %v4102_v28 = vadd.f32 %v8331_v23, %v3644_v34  ;;  %v3026_v2 = vadd.f32 %v8335_v40, %v2568_v35  ;;  %v8341_v35 = vld [vmem:[#allocation67_spill] sm:$0xff]  ;;  %v8342_v49 = vld [vmem:[#allocation56_spill] sm:$0xff]  ;;  %v8347_v57 = vld [vmem:[#allocation57_spill] sm:$0xff] }
 0x335   : > { %v6251_v42 = vpop.f32.mrf.mxu1  ;;  %v4096_v41 = vadd.f32 %v4033_v56, %v3638_v50  ;;  %v4097_v63 = vadd.f32 %v4036_v51, %v3639_v62  ;;  %v2574_v56 = vadd.f32 %v7810_v24, %v7795_v39  ;;  %v3645_v43 = vadd.f32 %v8326_v17, %v3370_v32  ;;  %v8330_v51 = vld [vmem:[#allocation30_spill] sm:$0xff]  ;;  %v8337_v62 = vld [vmem:[#allocation75_spill] sm:$0xff]  ;;  %v8344_v14 = vld [vmem:[#allocation68_spill] sm:$0xff] }
 0x336   : > { %v4444_v29 = vadd.f32 %v6251_v42, %v4098_v25  ;;  %v3643_v39 = vadd.f32 %v8329_v52, %v3368_v27  ;;  %v4683_v12 = vshrl.u32 %v8330_v51, 16  ;;  %v3373_v50 = vadd.f32 %v8334_v46, %v3027_v37  ;;  %v8340_v32 = vld [vmem:[#allocation31_spill] sm:$0xff]  ;;  %v8352_v46 = vld [vmem:[#allocation61_spill] sm:$0xff] }
 0x337   : > { %v4379_v4 = vpop.f32.mrf.mxu1  ;;  %v4686_v42 = vshll.u32 %v8330_v51, 16  ;;  %v4100_v25 = vadd.f32 %v8336_v10, %v3642_v55  ;;  %v4103_v31 = vadd.f32 %v8337_v62, %v3645_v43  ;;  %v3031_v37 = vadd.f32 %v8342_v49, %v2573_v48  ;;  %v8348_v52 = vld [vmem:[#allocation59_spill] sm:$0xff]  ;;  %v8360_v49 = vld [vmem:[#allocation34_spill] sm:$0xff] }
 0x338   : > { %v4442_v0 = vadd.f32 %v4379_v4, %v4096_v41  ;;  %v4492_v33 = vmax.f32 %v4444_v29, 0.0  ;;  %v8338_v4 = vld [vmem:[#allocation51_spill] sm:$0xff]  ;;  %v8339_v41 = vld [vmem:[#allocation53_spill] sm:$0xff]  ;;  %v7992_v26 = vrot.slane %v4683_v12, 4  ;;  %v3648_v34 = vadd.f32 %v8341_v35, %v3373_v50  ;;  %v8350_v12 = vld [vmem:[#allocation38_spill] sm:$0xff] }
 0x339   : > { %v6252_v20 = vpop.f32.mrf.mxu1  ;;  %v3371_v22 = vadd.f32 %v8338_v4, %v3025_v54  ;;  %v3372_v27 = vadd.f32 %v8343_v44, %v3026_v2  ;;  %v4696_v43 = vshrl.u32 %v8340_v32, 16  ;;  %v3032_v48 = vadd.f32 %v8348_v52, %v2574_v56  ;;  %v8355_v4 = vld [vmem:[#allocation39_spill] sm:$0xff] }
 0x33a   : > { %v4445_v3 = vadd.f32 %v6252_v20, %v4099_v18  ;;  %v4490_v13 = vmax.f32 %v4442_v0, 0.0  ;;  %v3374_v18 = vadd.f32 %v8339_v41, %v3028_v47  ;;  %v4692_v20 = vshll.u32 %v8340_v32, 16 }
 0x33b   : > { %v4382_v11 = vpop.f32.mrf.mxu1  ;;  %v3646_v55 = vadd.f32 %v8344_v14, %v3371_v22  ;;  %v3029_v47 = vadd.f32 %v8347_v57, %v2571_v61  ;;  %v4688_v23 = vrot.slane %v4686_v42, 5  ;;  %v3377_v9 = vadd.f32 %v8351_v38, %v3031_v37 }
 0x33c   : > { %v4493_v58 = vmax.f32 %v4445_v3, 0.0  ;;  %v4443_v53 = vadd.f32 %v4382_v11, %v4097_v63  ;;  %v4101_v63 = vadd.f32 %v7931_v30, %v3643_v39  ;;  %v6231_v11 = vpop.f32.mrf.mxu0  ;;  %v8346_v30 = vld [vmem:[#allocation37_spill] sm:$0xff]  ;;  %v8349_v39 = vld [vmem:[#allocation71_spill] sm:$0xff]  ;;  %v3030_v50 = vadd.f32 %v8352_v46, %v2572_v15 }
 0x33d   : > { %v6255_v24 = vpop.f32.mrf.mxu1  ;;  %v8010_v61 = vrot.slane %v4692_v20, 5  ;;  %v4698_v56 = vrot.slane %v4696_v43, 4  ;;  %v8356_v15 = vld [vmem:[#allocation33_spill] sm:$0xff]  ;;  %v8358_v20 = vld [vmem:[#allocation63_spill] sm:$0xff]  ;;  %v4716_v37 = vshll.u32 %v8360_v49, 16  ;;  %v4720_v44 = vshrl.u32 %v8360_v49, 16 }
 0x33e   : > { %v4507_v1 = vpack.c.bf16 %v4493_v58, %v4492_v33  ;;  %v4491_v7 = vmax.f32 %v4443_v53, 0.0  ;;  %v4448_v19 = vadd.f32 %v6255_v24, %v4102_v28  ;;  %v8345_v33 = vld [vmem:[#allocation70_spill] sm:$0xff]  ;;  %v3647_v24 = vadd.f32 %v8349_v39, %v3372_v27  ;;  %v4081_v40 = vpop.f32.mrf.mxu0 }
 0x33f   : > { %v4395_v21 = vpop.f32.mrf.mxu1  ;;  %v3649_v58 = vadd.f32 %v8345_v33, %v3374_v18  ;;  %v4106_v28 = vadd.f32 %v7944_v60, %v3648_v34  ;;  %v8353_v60 = vld [vmem:[#allocation60_spill] sm:$0xff]  ;;  %v4707_v22 = vshrl.u32 %v8356_v15, 16  ;;  %v4710_v41 = vshll.u32 %v8356_v15, 16  ;;  %v8357_v18 = vld [vmem:[#allocation73_spill] sm:$0xff]  ;;  %v8359_v34 = vld [vmem:[#allocation74_spill] sm:$0xff] }
 0x340   : > { %v4506_v6 = vpack.c.bf16 %v4491_v7, %v4490_v13  ;;  %v4446_v0 = vadd.f32 %v4395_v21, %v4100_v25  ;;  %v4496_v53 = vmax.f32 %v4448_v19, 0.0  ;;  %v4104_v21 = vadd.f32 %v7961_v16, %v3646_v55  ;;  %v8361_v33 = vld [vmem:[#allocation40_spill] sm:$0xff] }
 0x341   : > { %v6256_v29 = vpop.f32.mrf.mxu1  ;;  %v4107_v10 = vadd.f32 %v7975_v36, %v3649_v58  ;;  %v3375_v62 = vadd.f32 %v8353_v60, %v3029_v47  ;;  %v4105_v16 = vadd.f32 %v4068_v45, %v3647_v24  ;;  %v3376_v35 = vadd.f32 %v8358_v20, %v3030_v50 }
 0x342   : > { %v4449_v3 = vadd.f32 %v6256_v29, %v4103_v31  ;;  %6281 = vmatprep.mubr.bf16.mxu0 %v4506_v6  ;;  %v4494_v13 = vmax.f32 %v4446_v0, 0.0  ;;  %v8354_v31 = vld [vmem:[#allocation62_spill] sm:$0xff]  ;;  %v3652_v29 = vadd.f32 %v8357_v18, %v3377_v9  ;;  %v6232_v0 = vpop.f32.mrf.mxu0  ;;  %v4689_v58 = vor.u32 %v4688_v23, %v7992_v26  ;;  %v8363_v23 = vld [vmem:[#allocation41_spill] sm:$0xff] }
 0x343   : > { %v4398_v17 = vpop.f32.mrf.mxu1  ;;  %6282 = vmatmul.mubr.bf16.vlgmr.msra.gmra.mxu0 %v4507_v1  ;;  %v3378_v6 = vadd.f32 %v8354_v31, %v3032_v48  ;;  %v3651_v45 = vadd.f32 %v7934_v8, %v3376_v35  ;;  %v4709_v39 = vrot.slane %v4707_v22, 4  ;;  %v4712_v24 = vrot.slane %v4710_v41, 5  ;;  %v8368_v35 = vld [vmem:[#allocation44_spill] sm:$0xff] }
 0x344   : > { %v4497_v59 = vmax.f32 %v4449_v3, 0.0  ;;  %v4447_v54 = vadd.f32 %v4398_v17, %v4101_v63  ;;  %6298 = vmatpush3.bf16.msra.mxu0 %v8346_v30  ;;  %v3650_v63 = vadd.f32 %v8359_v34, %v3375_v62  ;;  %v4110_v30 = vadd.f32 %v6231_v11, %v3652_v29  ;;  %v4084_v52 = vpop.f32.mrf.mxu0  ;;  %v8365_v62 = vld [vmem:[#allocation42_spill] sm:$0xff] }
 0x345   : > { %v6259_v51 = vpop.f32.mrf.mxu1  ;;  %6299 = vmatprep.subr.bf16.mxu0 %v8350_v12  ;;  %v3653_v27 = vadd.f32 %v7926_v5, %v3378_v6  ;;  %v4109_v9 = vadd.f32 %v4084_v52, %v3651_v45  ;;  %v8062_v45 = vld [vmem:[%s8369_s4] ss:$0 sm:$0xff] }
 0x346   : > { %v4509_v1 = vpack.c.bf16 %v4497_v59, %v4496_v53  ;;  %v4495_v7 = vmax.f32 %v4447_v54, 0.0  ;;  %v4452_v42 = vadd.f32 %v6259_v51, %v4106_v28  ;;  %v4699_v53 = vor.u32 %v4698_v56, %v8010_v61  ;;  %v8362_v59 = vld [vmem:[#allocation32_spill] sm:$0xff] }
 0x347   : > { %v4411_v2 = vpop.f32.mrf.mxu1  ;;  %v4702_v54 = vshll.u32 %v8362_v59, 16  ;;  %v4718_v51 = vrot.slane %v4716_v37, 5  ;;  %v4108_v8 = vadd.f32 %v4081_v40, %v3650_v63  ;;  %v4111_v28 = vadd.f32 %v6232_v0, %v3653_v27 }
 0x348   : > { %v4508_v25 = vpack.c.bf16 %v4495_v7, %v4494_v13  ;;  %6300 = vmatpush3.bf16.msra.mxu0 %v8350_v12  ;;  %v4450_v32 = vadd.f32 %v4411_v2, %v4104_v21  ;;  %v4500_v14 = vmax.f32 %v4452_v42, 0.0  ;;  %v4722_v12 = vrot.slane %v4720_v44, 4  ;;  %v8364_v21 = vld [vmem:[#allocation35_spill] sm:$0xff] }
 0x349   : > { %v6260_v19 = vpop.f32.mrf.mxu1  ;;  %6301 = vmatprep.subr.bf16.mxu0 %v8355_v4  ;;  %v4690_v7 = vrot.slane %v4689_v58, 4  ;;  %v4700_v11 = vrot.slane %v4699_v53, 4  ;;  %v4704_v38 = vrot.slane %v4702_v54, 5  ;;  %v4713_v56 = vor.u32 %v4712_v24, %v4709_v39  ;;  %v8068_v53 = vld [vmem:[%s8370_s10] ss:$0 sm:$0xff] }
 0x34a   : > { %v4453_v36 = vadd.f32 %v6260_v19, %v4107_v10  ;;  %6285 = vmatprep.mubr.bf16.mxu0 %v4508_v25  ;;  %v4498_v57 = vmax.f32 %v4450_v32, 0.0  ;;  %v4726_v40 = vshll.u32 %v8364_v21, 16  ;;  %v4723_v60 = vor.u32 %v4722_v12, %v4718_v51 }
 0x34b   : > { %v4414_v3 = vpop.f32.mrf.mxu1  ;;  %6286 = vmatmul.mubr.bf16.gmra.mxu0 %v4509_v1  ;;  %v4695_v6 = vsel %vm7401_vm8, %v4690_v7, %v8010_v61  ;;  %v4705_v19 = vsel %vm7401_vm8, %v4700_v11, %v4704_v38 }
 0x34c   : > { %v4501_v55 = vmax.f32 %v4453_v36, 0.0  ;;  %v4451_v17 = vadd.f32 %v4414_v3, %v4105_v16  ;;  %6302 = vmatpush3.bf16.msra.mxu0 %v8355_v4  ;;  %v4728_v41 = vrot.slane %v4726_v40, 5  ;;  %v5570_v29 = vcombine.low %v4695_v6, %v4705_v19  ;;  %v8367_v36 = vld [vmem:[#allocation43_spill] sm:$0xff] }
 0x34d   : > { %v6263_v43 = vpop.f32.mrf.mxu1  ;;  %6303 = vmatprep.subr.bf16.mxu0 %v8361_v33  ;;  %v4714_v16 = vrot.slane %v4713_v56, 4  ;;  %v4724_v32 = vrot.slane %v4723_v60, 4 }
 0x34e   : > { %v4511_v47 = vpack.c.bf16 %v4501_v55, %v4500_v14  ;;  %v4499_v5 = vmax.f32 %v4451_v17, 0.0  ;;  %v4456_v1 = vadd.f32 %v6263_v43, %v4110_v30 }
 0x34f   : > { %v4427_v48 = vpop.f32.mrf.mxu1  ;;  %v4719_v61 = vsel %vm7401_vm8, %v4714_v16, %v4718_v51  ;;  %v4729_v20 = vsel %vm7401_vm8, %v4724_v32, %v4728_v41 }
 0x350   : > { %v4510_v13 = vpack.c.bf16 %v4499_v5, %v4498_v57  ;;  %6304 = vmatpush3.bf16.msra.mxu0 %v8361_v33  ;;  %v4454_v46 = vadd.f32 %v4427_v48, %v4108_v8  ;;  %v4504_v10 = vmax.f32 %v4456_v1, 0.0  ;;  %v5571_v34 = vcombine.low %v4719_v61, %v4729_v20 }
 0x351   : > { %v6264_v26 = vpop.f32.mrf.mxu1  ;;  %6305 = vmatprep.subr.bf16.mxu0 %v8363_v23 }
 0x352   : > { %v4457_v50 = vadd.f32 %v6264_v26, %v4111_v28  ;;  %6289 = vmatprep.mubr.bf16.mxu0 %v4510_v13  ;;  %v4502_v4 = vmax.f32 %v4454_v46, 0.0 }
 0x353   : > { %v4430_v2 = vpop.f32.mrf.mxu1  ;;  %6290 = vmatmul.mubr.bf16.gmra.mxu0 %v4511_v47 }
 0x354   : > { %v4505_v25 = vmax.f32 %v4457_v50, 0.0  ;;  %v4455_v42 = vadd.f32 %v4430_v2, %v4109_v9  ;;  %6306 = vmatpush3.bf16.msra.mxu0 %v8363_v23 }
 0x355   : > { %6307 = vmatprep.subr.bf16.mxu0 %v8365_v62 }
 0x356   : > { %v4513_v15 = vpack.c.bf16 %v4505_v25, %v4504_v10  ;;  %v4503_v22 = vmax.f32 %v4455_v42, 0.0 }
 0x358   : > { %v4512_v18 = vpack.c.bf16 %v4503_v22, %v4502_v4  ;;  %6308 = vmatpush3.bf16.msra.mxu0 %v8365_v62 }
 0x359   : > { %6309 = vmatprep.subr.bf16.mxu0 %v8367_v36 }
 0x35a   : > { %6293 = vmatprep.mubr.bf16.mxu0 %v4512_v18 }
 0x35b   : > { %6294 = vmatmul.mubr.bf16.gmra.mxu0 %v4513_v15 }
 0x35c   : > { %6310 = vmatpush3.bf16.msra.mxu0 %v8367_v36  ;;  %6313 = vmatprep.mubr.bf16.mxu0 %v5570_v29 }
 0x35d   : > { %6311 = vmatprep.subr.bf16.mxu0 %v8368_v35 }
 0x360   : > { %6312 = vmatpush3.bf16.msra.mxu0 %v8368_v35 }
 0x363   : > { %6314 = vmatmul.mubr.bf16.vlgmr.msra.gmra.mxu0 %v5571_v34 }
 0x39f   : > { %v6319_v63 = vpop.f32.mrf.mxu1 }
 0x3a1   : > { %v5020_v0 = vpop.f32.mrf.mxu1 }
 0x3a3   : > { %v6320_v3 = vpop.f32.mrf.mxu1 }
 0x3a5   : > { %v5023_v49 = vpop.f32.mrf.mxu1 }
 0x3a9   : > { %v6323_v27 = vpop.f32.mrf.mxu1 }
 0x3ab   : > { %v5036_v17 = vpop.f32.mrf.mxu1 }
 0x3ad   : > { %v6324_v59 = vpop.f32.mrf.mxu1 }
 0x3af   : > { %v5039_v39 = vpop.f32.mrf.mxu1 }
 0x3b2   : > { %v6327_v11 = vpop.f32.mrf.mxu1 }
 0x3b4   : > { %v5052_v42 = vpop.f32.mrf.mxu1 }
 0x3b6   : > { %v6328_v29 = vpop.f32.mrf.mxu1 }
 0x403   : > { %v8051_v37 = vpop.f32.mrf.mxu0 }
 0x405   : > { %v8053_v44 = vpop.f32.mrf.mxu0 }
 0x407   : > { %v8055_v14 = vpop.f32.mrf.mxu0 }
 0x409   : > { %v8057_v55 = vpop.f32.mrf.mxu0 }
 0x40b   : > { %v6287_v43 = vpop.f32.mrf.mxu0 }
 0x40c   : > { %v4644_v33 = vadd.f32 %v6287_v43, %v8062_v45 }
 0x40d   : > { %v4635_v58 = vpop.f32.mrf.mxu0 }
 0x40e   : > { %v4636_v54 = vadd.f32 %v8062_v45, %v4635_v58  ;;  %v5073_v30 = vadd.f32 %v6319_v63, %v4644_v33 }
 0x40f   : > { %v6288_v57 = vpop.f32.mrf.mxu0 }
 0x410   : > { %v5096_v47 = vadd.f32 %v8068_v53, %v5073_v30  ;;  %v4647_v5 = vadd.f32 %v6288_v57, %v8062_v45  ;;  %v5071_v52 = vadd.f32 %v5020_v0, %v4636_v54 }
 0x411   : > { %v4638_v48 = vpop.f32.mrf.mxu0 }
 0x412   : > { %v5112_v24 = vmax.f32 %v5096_v47, 0.0  ;;  %v5094_v51 = vadd.f32 %v8068_v53, %v5071_v52  ;;  %v4639_v12 = vadd.f32 %v8062_v45, %v4638_v48  ;;  %v5074_v8 = vadd.f32 %v6320_v3, %v4647_v5 }
 0x413   : > { %v6291_v28 = vpop.f32.mrf.mxu0  ;;  %v4628_v3 = vadd.f32 %v8051_v37, %v8062_v45  ;;  %v4631_v5 = vadd.f32 %v8055_v14, %v8062_v45 }
 0x414   : > { %5128 = vst [vmem:[%s7395_s9 + $0x30] sm:$0xff] %v5112_v24  ;;  %v5110_v13 = vmax.f32 %v5094_v51, 0.0  ;;  %v5097_v1 = vadd.f32 %v8068_v53, %v5074_v8  ;;  %v4660_v26 = vadd.f32 %v6291_v28, %v8062_v45  ;;  %v5072_v23 = vadd.f32 %v5023_v49, %v4639_v12 }
 0x415   : > { %v4651_v7 = vpop.f32.mrf.mxu0  ;;  %v4623_v51 = vadd.f32 %v8062_v45, %v8057_v55 }
 0x416   : > { %5126 = vst [vmem:[%s7395_s9 + $0x20] sm:$0xff] %v5110_v13  ;;  %v5113_v38 = vmax.f32 %v5097_v1, 0.0  ;;  %v5095_v9 = vadd.f32 %v8068_v53, %v5072_v23  ;;  %v4652_v46 = vadd.f32 %v8062_v45, %v4651_v7  ;;  %v5077_v50 = vadd.f32 %v6323_v27, %v4660_v26  ;;  %v5055_v27 = vpop.f32.mrf.mxu1 }
 0x417   : > { %v6292_v2 = vpop.f32.mrf.mxu0 }
 0x418   : > { %5129 = vst [vmem:[%s7395_s9 + $0x38] sm:$0xff] %v5113_v38  ;;  %v5111_v56 = vmax.f32 %v5095_v9, 0.0  ;;  %v5100_v21 = vadd.f32 %v8068_v53, %v5077_v50  ;;  %v4663_v40 = vadd.f32 %v6292_v2, %v8062_v45  ;;  %v5075_v10 = vadd.f32 %v5036_v17, %v4652_v46 }
 0x419   : > { %v4654_v25 = vpop.f32.mrf.mxu0 }
 0x41a   : > { %5127 = vst [vmem:[%s7395_s9 + $0x28] sm:$0xff] %v5111_v56  ;;  %v5116_v60 = vmax.f32 %v5100_v21, 0.0  ;;  %v5098_v62 = vadd.f32 %v8068_v53, %v5075_v10  ;;  %v4655_v31 = vadd.f32 %v8062_v45, %v4654_v25  ;;  %v5078_v6 = vadd.f32 %v6324_v59, %v4663_v40 }
 0x41b   : > { %v6295_v19 = vpop.f32.mrf.mxu0  ;;  %v4620_v59 = vadd.f32 %v8062_v45, %v8053_v44 }
 0x41c   : > { %5132 = vst [vmem:[%s7395_s9 + $0x50] sm:$0xff] %v5116_v60  ;;  %v5114_v4 = vmax.f32 %v5098_v62, 0.0  ;;  %v5101_v15 = vadd.f32 %v8068_v53, %v5078_v6  ;;  %v4676_v22 = vadd.f32 %v6295_v19, %v8062_v45  ;;  %v5076_v41 = vadd.f32 %v5039_v39, %v4655_v31 }
 0x41d   : > { %v4667_v18 = vpop.f32.mrf.mxu0 }
 0x41e   : > { %5130 = vst [vmem:[%s7395_s9 + $0x40] sm:$0xff] %v5114_v4  ;;  %v5117_v16 = vmax.f32 %v5101_v15, 0.0  ;;  %v5099_v32 = vadd.f32 %v8068_v53, %v5076_v41  ;;  %v4668_v36 = vadd.f32 %v8062_v45, %v4667_v18  ;;  %v5081_v61 = vadd.f32 %v6327_v11, %v4676_v22 }
 0x41f   : > { %v6296_v20 = vpop.f32.mrf.mxu0 }
 0x420   : > { %5133 = vst [vmem:[%s7395_s9 + $0x58] sm:$0xff] %v5117_v16  ;;  %v5115_v35 = vmax.f32 %v5099_v32, 0.0  ;;  %v5104_v34 = vadd.f32 %v8068_v53, %v5081_v61  ;;  %v4679_v63 = vadd.f32 %v6296_v20, %v8062_v45  ;;  %v5079_v0 = vadd.f32 %v5052_v42, %v4668_v36 }
 0x421   : > { %v4670_v49 = vpop.f32.mrf.mxu0 }
 0x422   : > { %5131 = vst [vmem:[%s7395_s9 + $0x48] sm:$0xff] %v5115_v35  ;;  %v5120_v17 = vmax.f32 %v5104_v34, 0.0  ;;  %v5102_v43 = vadd.f32 %v8068_v53, %v5079_v0  ;;  %v4671_v33 = vadd.f32 %v8062_v45, %v4670_v49  ;;  %v5082_v58 = vadd.f32 %v6328_v29, %v4679_v63 }
 0x423   : > { %v6315_v54 = vpop.f32.mrf.mxu0 }
 0x424   : > { %5136 = vst [vmem:[%s7395_s9 + $0x70] sm:$0xff] %v5120_v17  ;;  %v5118_v30 = vmax.f32 %v5102_v43, 0.0  ;;  %v5105_v37 = vadd.f32 %v8068_v53, %v5082_v58  ;;  %v5069_v57 = vadd.f32 %v6315_v54, %v4628_v3  ;;  %v5080_v47 = vadd.f32 %v5055_v27, %v4671_v33 }
 0x425   : > { %v5004_v52 = vpop.f32.mrf.mxu0 }
 0x426   : > { %5134 = vst [vmem:[%s7395_s9 + $0x60] sm:$0xff] %v5118_v30  ;;  %v5121_v48 = vmax.f32 %v5105_v37, 0.0  ;;  %v5092_v44 = vadd.f32 %v8068_v53, %v5069_v57  ;;  %v5103_v39 = vadd.f32 %v8068_v53, %v5080_v47  ;;  %v5067_v24 = vadd.f32 %v5004_v52, %v4620_v59 }
 0x427   : > { %v6316_v12 = vpop.f32.mrf.mxu0 }
 0x428   : > { %5137 = vst [vmem:[%s7395_s9 + $0x78] sm:$0xff] %v5121_v48  ;;  %v5108_v14 = vmax.f32 %v5092_v44, 0.0  ;;  %v5119_v8 = vmax.f32 %v5103_v39, 0.0  ;;  %v5090_v28 = vadd.f32 %v8068_v53, %v5067_v24  ;;  %v5070_v13 = vadd.f32 %v6316_v12, %v4631_v5 }
 0x429   : > { %v5007_v1 = vpop.f32.mrf.mxu0 }
 0x42a   : > { %5124 = vst [vmem:[%s7395_s9 + $0x10] sm:$0xff] %v5108_v14  ;;  %5135 = vst [vmem:[%s7395_s9 + $0x68] sm:$0xff] %v5119_v8  ;;  %v5106_v26 = vmax.f32 %v5090_v28, 0.0  ;;  %v5093_v23 = vadd.f32 %v8068_v53, %v5070_v13  ;;  %v5068_v55 = vadd.f32 %v5007_v1, %v4623_v51 }
 0x42c   : > { %5122 = vst [vmem:[%s7395_s9] sm:$0xff] %v5106_v26  ;;  %v5109_v45 = vmax.f32 %v5093_v23, 0.0  ;;  %v5091_v7 = vadd.f32 %v8068_v53, %v5068_v55 }
 0x42e   : > { %5125 = vst [vmem:[%s7395_s9 + $0x18] sm:$0xff] %v5109_v45  ;;  %v5107_v11 = vmax.f32 %v5091_v7, 0.0 }
 0x430   : > { %5123 = vst [vmem:[%s7395_s9 + $0x8] sm:$0xff] %v5107_v11 }
 0x431   : > { %6801 = shalt.err (!%p6798_p3)
}
 0x432   : > { %s6802_s9 = scalar_lea.hbm %s8128_s24, 2048  ;;  %s6806_s4 = scalar_lea.hbm %s8373_s25, 8192 }
 0x433   : > { %p6803_p13 = scmp.ne.s32.totalorder %s8128_s24, %s6802_s9  ;;  %p6807_p4 = scmp.lt.s32.totalorder %s8128_s24, %s8373_s25 }
 0x434   : > { %p6808_p11 = scmp.lt.s32.totalorder %s6806_s4, %s6802_s9 }
 0x435   : > { %p6804_p0 = pnand %p6803_p13, %p7107_p12 }
 0x436   : > { %p6809_p7 = por %p6808_p11, %p6807_p4 }
 0x437   : > { %p6805_p5 = pneg %p6804_p0 }
 0x439   : > { %p6810_p1 = pnand %p6809_p7, %p6805_p5 }
 0x43b   : > { %6813 = shalt.err (!%p6810_p1)
}
 0x43c   : > { %s6915_s10 = smov 128   ;;  %s6916_s6 = smov 8  }
 0x43d   : > { %6373 = dma.vmem_to_hbm [thread:$0]  (%p7107_p12), %s8122_s7, 2048, %s8128_s24, %s5139_s23, %s6915_s10, %s6915_s10, %s6916_s6  }
 0x43e PF: > { %s8374_s11 = sld [smem:[#allocation22_spill]]  ;;  %p6408_p9 = scmp.ge.s32.totalorder %s6900_s20, 2 }
 0x440   : > { %p6396_p10 = pnand %p6408_p9, %p7027_p6 }
 0x442   : > { %p6397_p8 = pneg %p6396_p10 }
 0x444   : > { %s5170_s16 = sand.u32 1, %s8374_s11  }
 0x445   : > { %s5171_s17 = scalar_lea.sflag [#allocation6], %s5170_s16 }
 0x446   : > { %6867 = dma.done.wait (%p6397_p8), %s5171_s17, 2048  }
 0x447   : > { %6869 = vsyncadd (%p6397_p8), %s5171_s17, 4294965248  ;;  %s31_s20 = sadd.s32 1, %s6900_s20   ;;  %s8376_s8 = sld [smem:[#allocation23_spill]] }
 0x448   : > { %p28_p2 = scmp.ge.s32.totalorder %s31_s20, 6   ;;  %s8377_s15 = sld [smem:[#allocation29_spill]] }
 0x449   : > { %s8378_s0 = sld [smem:[#allocation26_spill]]  ;;  %s8380_s13 = smov %s6876_s14 }
 0x44a   : > { %s8379_s29 = sld [smem:[#allocation28_spill]]  ;;  %s8382_s16 = smov %s6892_s18 }
 0x44b   : > { %s8383_s17 = smov %s6896_s19 }
 0x44c   :  { %30 = sbr.rel (!%p28_p2) target bundleno = 20 (0x14), region = 153 }
 0x44d   : > { %s8381_s14 = smov %s8376_s8 }
 0x44f   : > { %s8384_s18 = smov %s8378_s0 }
 0x450   : > { %s8385_s19 = smov %s8379_s29 }
 0x451   :  { %5176 = vsyncpa [#allocation5], 1 }
 0x452   :  { %5178 = vsyncpa [#allocation5 + $0x1], 1 }
 0x453   :  { %5179 = vsyncpa [#allocation8], 1 }
 0x454   :  { %5181 = vsyncpa [#allocation8 + $0x1], 1 }
 0x455   :  { %5182 = vsyncpa [#allocation11], 1 }
 0x456   :  { %5183 = vsyncpa [#allocation14], 1 }
 0x457   :  { %5184 = vsyncpa [#allocation6], 1 }
 0x458   :  { %5186 = vsyncpa [#allocation6 + $0x1], 1 }

</bundles_post_ra>
